<compile_context>
chip_gen: v5e
topology: v5e:2x2
jax: 0.10.0
libtpu: 0.0.40
codegen_flags: <defaults>
</compile_context>

<pallas_src>
import functools

import jax
import jax.numpy as jnp
from jax.experimental import pallas as pl
from jax.experimental.pallas import tpu as pltpu

# Small, safe scoped-VMEM budget on every generation (v7x has 64 MiB physical).
_VMEM_LIMIT = 32 * 1024 * 1024


def _round_up(x, m):
    return ((x + m - 1) // m) * m


# ----------------------------------------------------------------------------
# Kernel A: fused main_conv1 (1x1 + BN) and ext_conv1 (1x1 + BN + ReLU).
# One HBM read of the x tile, two resident-weight matmuls, two outputs.
# ----------------------------------------------------------------------------
def _main_ext1_kernel(x_ref, wm_ref, bm_ref, we_ref, be_ref, main_ref, ext_ref):
    x = x_ref[...]                                                   # (tm, Cin) bf16
    main = jnp.dot(x, wm_ref[...], preferred_element_type=jnp.float32)
    main_ref[...] = (main + bm_ref[...]).astype(main_ref.dtype)      # no activation
    e = jnp.dot(x, we_ref[...], preferred_element_type=jnp.float32)
    ext_ref[...] = jnp.maximum(e + be_ref[...], 0.0).astype(ext_ref.dtype)


def main_ext1(x, w_main, b_main, w_e1, b_e1, *, tile_m=512):
    m, cin = x.shape
    out_ch = w_main.shape[1]
    int_ch = w_e1.shape[1]
    tm = min(tile_m, _round_up(m, 16))
    m_pad = _round_up(m, tm)
    if m_pad != m:
        x = jnp.pad(x, ((0, m_pad - m), (0, 0)))
    main, ext = pl.pallas_call(
        _main_ext1_kernel,
        out_shape=(jax.ShapeDtypeStruct((m_pad, out_ch), jnp.float32),
                   jax.ShapeDtypeStruct((m_pad, int_ch), jnp.bfloat16)),
        grid=(m_pad // tm,),
        in_specs=[
            pl.BlockSpec((tm, cin), lambda i: (i, 0)),        # activation tile
            pl.BlockSpec((cin, out_ch), lambda i: (0, 0)),    # resident main weight
            pl.BlockSpec((1, out_ch), lambda i: (0, 0)),      # main BN bias
            pl.BlockSpec((cin, int_ch), lambda i: (0, 0)),    # resident ext1 weight
            pl.BlockSpec((1, int_ch), lambda i: (0, 0)),      # ext1 BN bias
        ],
        out_specs=(pl.BlockSpec((tm, out_ch), lambda i: (i, 0)),
                   pl.BlockSpec((tm, int_ch), lambda i: (i, 0))),
        compiler_params=pltpu.CompilerParams(
            dimension_semantics=("parallel",),
            vmem_limit_bytes=_VMEM_LIMIT,
        ),
    )(x.astype(jnp.bfloat16),
      w_main.astype(jnp.bfloat16), b_main.reshape(1, -1).astype(jnp.float32),
      w_e1.astype(jnp.bfloat16), b_e1.reshape(1, -1).astype(jnp.float32))
    if m_pad != m:
        main, ext = main[:m], ext[:m]
    return main, ext


# ----------------------------------------------------------------------------
# Kernel B: fused ConvTranspose2d(3,s=2,p=1,op=1)+BN+ReLU -> 1x1 conv+BN+ReLU
#           -> Dropout(p=0) -> MaxUnpool2d(2) + residual add + ReLU.
# Two MXU matmuls per tile; epilogue is cheap VPU select/add; lane-dense store.
# ----------------------------------------------------------------------------
def _deconv_ext3_unpool_kernel(p_ref, w2_ref, b2_ref, w3_ref, b3_ref,
                               main_ref, quad_ref, o_ref):
    # ext_conv2: all 4 output phases in one matmul (phase weights stacked on N).
    h2 = jnp.dot(p_ref[...], w2_ref[...], preferred_element_type=jnp.float32)
    h2 = jnp.maximum(h2 + b2_ref[...], 0.0)                      # (tm, 4*Ci)
    # ext_conv3: block-diagonal (4*Ci, 4*Cout) weight keeps phases independent.
    e3 = jnp.dot(h2.astype(jnp.bfloat16), w3_ref[...],
                 preferred_element_type=jnp.float32)
    e3 = jnp.maximum(e3 + b3_ref[...], 0.0)                      # (tm, 4*Cout)
    # TODO(synk): nonzero dropout_prob would mask e3 here via pltpu.prng_random_bits.
    # MaxUnpool2d(2): the pooled value lands only in its stored quadrant.
    main = main_ref[...]                                         # (tm, Cout) f32
    quad = quad_ref[...]                                         # (tm, Cout) int32
    unpooled = jnp.concatenate(
        [jnp.where(quad == q, main, 0.0) for q in range(4)], axis=-1)
    o_ref[...] = jnp.maximum(e3 + unpooled, 0.0).astype(o_ref.dtype)


def deconv_ext3_unpool(patches, w2, b2, w3, b3, main, quad, *, tile_m=512):
    m, k4 = patches.shape
    n2 = w2.shape[1]          # 4*int_ch
    n3 = w3.shape[1]          # 4*out_ch
    out_ch = n3 // 4
    tm = min(tile_m, _round_up(m, 16))
    m_pad = _round_up(m, tm)
    if m_pad != m:
        pad = ((0, m_pad - m), (0, 0))
        patches = jnp.pad(patches, pad)
        main = jnp.pad(main, pad)
        quad = jnp.pad(quad, pad)
    out = pl.pallas_call(
        _deconv_ext3_unpool_kernel,
        out_shape=jax.ShapeDtypeStruct((m_pad, n3), jnp.float32),
        grid=(m_pad // tm,),
        in_specs=[
            pl.BlockSpec((tm, k4), lambda i: (i, 0)),         # 2x2 neighborhood patches
            pl.BlockSpec((k4, n2), lambda i: (0, 0)),         # stacked phase weights
            pl.BlockSpec((1, n2), lambda i: (0, 0)),          # tiled BN2 bias
            pl.BlockSpec((n2, n3), lambda i: (0, 0)),         # block-diag ext3 weight
            pl.BlockSpec((1, n3), lambda i: (0, 0)),          # tiled BN3 bias
            pl.BlockSpec((tm, out_ch), lambda i: (i, 0)),     # main branch (low-res)
            pl.BlockSpec((tm, out_ch), lambda i: (i, 0)),     # unpool quadrant index
        ],
        out_specs=pl.BlockSpec((tm, n3), lambda i: (i, 0)),
        compiler_params=pltpu.CompilerParams(
            dimension_semantics=("parallel",),
            vmem_limit_bytes=_VMEM_LIMIT,
        ),
    )(patches.astype(jnp.bfloat16), w2.astype(jnp.bfloat16),
      b2.reshape(1, -1).astype(jnp.float32), w3.astype(jnp.bfloat16),
      b3.reshape(1, -1).astype(jnp.float32), main.astype(jnp.float32),
      quad.astype(jnp.int32))
    return out[:m] if m_pad != m else out


# ----------------------------------------------------------------------------
# Parameter construction (deterministic, synthetic) and BN folding.
# ----------------------------------------------------------------------------
def fold_bn(gamma, beta, mean, var, eps=1e-5):
    scale = gamma / jnp.sqrt(var + eps)
    bias = beta - mean * scale
    return scale.astype(jnp.float32), bias.astype(jnp.float32)


def make_params(key, in_ch, out_ch, internal_ratio=4):
    int_ch = in_ch // internal_ratio
    ks = jax.random.split(key, 8)

    def bn(k, c):
        k1, k2, k3, k4 = jax.random.split(k, 4)
        gamma = 1.0 + 0.1 * jax.random.normal(k1, (c,), jnp.float32)
        beta = 0.1 * jax.random.normal(k2, (c,), jnp.float32)
        mean = 0.1 * jax.random.normal(k3, (c,), jnp.float32)
        var = 1.0 + 0.1 * jax.random.uniform(k4, (c,), jnp.float32)
        return fold_bn(gamma, beta, mean, var)

    p = {}
    p["main_w"] = 0.1 * jax.random.normal(ks[0], (in_ch, out_ch), jnp.float32)
    p["main_bn"] = bn(ks[1], out_ch)
    p["ext1_w"] = 0.1 * jax.random.normal(ks[2], (in_ch, int_ch), jnp.float32)
    p["ext1_bn"] = bn(ks[3], int_ch)
    # ConvTranspose2d weight, PyTorch layout (Cin, Cout, kH, kW)
    p["ext2_wt"] = 0.1 * jax.random.normal(ks[4], (int_ch, int_ch, 3, 3), jnp.float32)
    p["ext2_bn"] = bn(ks[5], int_ch)
    p["ext3_w"] = 0.1 * jax.random.normal(ks[6], (int_ch, out_ch), jnp.float32)
    p["ext3_bn"] = bn(ks[7], out_ch)
    return p, int_ch


def build_deconv_phase_weights(wt):
    """ConvTranspose2d(k=3, s=2, p=1, op=1) as one (4*Ci, 4*Co) matmul weight.

    wt: PyTorch layout (Cin, Cout, kh, kw).  Patch rows are the 2x2 low-res
    neighborhood [x(a,b), x(a,b+1), x(a+1,b), x(a+1,b+1)] (zero past the
    right/bottom edge); output column block q produces pixel (2a+q//2, 2b+q%2).
    Derived from oh = 2*ih - 1 + kh (and likewise for ow).
    """
    ci, co = wt.shape[0], wt.shape[1]
    w = lambda kh, kw: wt[:, :, kh, kw]          # (Ci, Co) tap matrix
    z = jnp.zeros((ci, co), wt.dtype)
    phases = [
        [w(1, 1), z,       z,       z      ],   # (2a,   2b  )
        [w(1, 2), w(1, 0), z,       z      ],   # (2a,   2b+1)
        [w(2, 1), z,       w(0, 1), z      ],   # (2a+1, 2b  )
        [w(2, 2), w(2, 0), w(0, 2), w(0, 0)],   # (2a+1, 2b+1)
    ]
    return jnp.concatenate(
        [jnp.concatenate(p, axis=0) for p in phases], axis=1)   # (4*Ci, 4*Co)


# ----------------------------------------------------------------------------
# Forward pass
# ----------------------------------------------------------------------------
def upsampling_bottleneck(x_nchw, max_indices_nchw, params):
    n, cin, h, w = x_nchw.shape
    int_ch = params["ext1_w"].shape[1]
    out_ch = params["main_w"].shape[1]
    m1 = n * h * w

    # NCHW -> NHWC (channels on lanes), flatten spatial into matmul rows.
    x_flat = jnp.transpose(x_nchw, (0, 2, 3, 1)).astype(jnp.float32).reshape(m1, cin)

    # Fold BN scales into the weights; biases go to the kernel epilogues.
    ms, mbias = params["main_bn"]
    w_main = params["main_w"] * ms[None, :]
    s1, b1 = params["ext1_bn"]
    w_e1 = params["ext1_w"] * s1[None, :]
    s2, b2 = params["ext2_bn"]
    w2 = build_deconv_phase_weights(params["ext2_wt"]) * jnp.tile(s2, 4)[None, :]
    b2t = jnp.tile(b2, 4)
    s3, b3 = params["ext3_bn"]
    w_e3 = params["ext3_w"] * s3[None, :]
    w3_block = jnp.kron(jnp.eye(4, dtype=w_e3.dtype), w_e3)      # (4*Ci, 4*Cout)
    b3t = jnp.tile(b3, 4)

    # ---- Kernel A: main (1x1+BN) and ext1 (1x1+BN+ReLU), one pass over x ----
    main, ext = main_ext1(x_flat, w_main, mbias, w_e1, b1)       # (M1,Cout),(M1,Ci)
    ext = ext.reshape(n, h, w, int_ch)

    # 2x2 neighborhood patches (right/bottom zero pad) — the only expansion is
    # 4x of the smallest (low-res, int_ch, bf16) tensor; no 9-tap im2col.
    ext_pad = jnp.pad(ext, ((0, 0), (0, 1), (0, 1), (0, 0)))
    patches = jnp.concatenate(
        [ext_pad[:, dh:dh + h, dw:dw + w, :] for dh in (0, 1) for dw in (0, 1)],
        axis=-1,
    ).reshape(m1, 4 * int_ch)

    # MaxUnpool2d(2): quadrant of each pooled value inside its 2x2 block.
    idx = max_indices_nchw.astype(jnp.int32)                     # (N,Cout,H,W)
    quad = 2 * ((idx // (2 * w)) % 2) + (idx % 2)
    quad = jnp.transpose(quad, (0, 2, 3, 1)).reshape(m1, out_ch)

    # ---- Kernel B: ConvT+BN+ReLU -> 1x1+BN+ReLU -> Dropout(p=0) -> unpool+add+ReLU
    fused = deconv_ext3_unpool(patches, w2, b2t, w3_block, b3t, main, quad)

    # (M1, 4*Cout) -> (N, Cout, 2H, 2W): interleave the 4 phase blocks.
    out = fused.reshape(n, h, w, 2, 2, out_ch)
    out = jnp.transpose(out, (0, 5, 1, 3, 2, 4)).reshape(n, out_ch, 2 * h, 2 * w)
    return out


# ----------------------------------------------------------------------------
if __name__ == "__main__":
    N, IN_CH, OUT_CH, H, W = 2, 64, 32, 16, 16
    key = jax.random.PRNGKey(0)
    kx, kdh, kdw, kp = jax.random.split(key, 4)

    x = jax.random.normal(kx, (N, IN_CH, H, W), jnp.float32)

    # max_indices as produced by MaxPool2d(2, return_indices=True) on a
    # (N, OUT_CH, 2H, 2W) tensor: flat index within the 2Hx2W map, lying
    # inside the 2x2 window of each pooled location.
    dh = jax.random.randint(kdh, (N, OUT_CH, H, W), 0, 2)
    dw = jax.random.randint(kdw, (N, OUT_CH, H, W), 0, 2)
    hg = jnp.arange(H).reshape(1, 1, H, 1)
    wg = jnp.arange(W).reshape(1, 1, 1, W)
    max_indices = ((2 * hg + dh) * (2 * W) + (2 * wg + dw)).astype(jnp.int32)

    params, _ = make_params(kp, IN_CH, OUT_CH, internal_ratio=4)

    fwd = jax.jit(upsampling_bottleneck)
    out = jax.block_until_ready(fwd(x, max_indices, params))

    assert out.shape == (N, OUT_CH, 2 * H, 2 * W)
    assert bool(jnp.all(jnp.isfinite(out)))
    print("KERNEL_OK")
</pallas_src>

<mosaic_0001>
module attributes {stable_mosaic.version = 11 : i64} {
  func.func @_main_ext1_kernel(%arg0: i32, %arg1: memref<512x64xbf16, #tpu.memory_space<vmem>>, %arg2: memref<64x32xbf16, #tpu.memory_space<vmem>>, %arg3: memref<1x32xf32, #tpu.memory_space<vmem>>, %arg4: memref<64x16xbf16, #tpu.memory_space<vmem>>, %arg5: memref<1x16xf32, #tpu.memory_space<vmem>>, %arg6: memref<512x32xf32, #tpu.memory_space<vmem>>, %arg7: memref<512x16xbf16, #tpu.memory_space<vmem>>) attributes {dimension_semantics = [#tpu.dimension_semantics<parallel>], iteration_bounds = array<i64: 1>, scalar_prefetch = 0 : i64, scratch_operands = 0 : i64, tpu.core_type = #tpu.core_type<tc>, window_params = [{transform_indices = @transform_0, window_bounds = array<i64: 512, 64>}, {pipeline_mode = #tpu.pipeline_mode<synchronous>, transform_indices = @transform_1, window_bounds = array<i64: 64, 32>}, {pipeline_mode = #tpu.pipeline_mode<synchronous>, transform_indices = @transform_2, window_bounds = array<i64: 1, 32>}, {pipeline_mode = #tpu.pipeline_mode<synchronous>, transform_indices = @transform_3, window_bounds = array<i64: 64, 16>}, {pipeline_mode = #tpu.pipeline_mode<synchronous>, transform_indices = @transform_4, window_bounds = array<i64: 1, 16>}, {transform_indices = @transform_5, window_bounds = array<i64: 512, 32>}, {transform_indices = @transform_6, window_bounds = array<i64: 512, 16>}]} {
    %c0 = arith.constant 0 : index
    %c0_0 = arith.constant 0 : index
    %0 = vector.load %arg1[%c0, %c0_0] : memref<512x64xbf16, #tpu.memory_space<vmem>>, vector<512x64xbf16>
    %c0_1 = arith.constant 0 : index
    %c0_2 = arith.constant 0 : index
    %1 = vector.load %arg2[%c0_1, %c0_2] : memref<64x32xbf16, #tpu.memory_space<vmem>>, vector<64x32xbf16>
    %cst = arith.constant dense<0.000000e+00> : vector<512x32xf32>
    %2 = tpu.matmul %0, %1, %cst {dimension_numbers = #tpu.dot_dimension_numbers<[1], [0], [0], [1], [0, 0, 1, 1], [], []>} : vector<512x64xbf16>, vector<64x32xbf16>, vector<512x32xf32> -> vector<512x32xf32>
    %c0_3 = arith.constant 0 : index
    %c0_4 = arith.constant 0 : index
    %3 = vector.load %arg3[%c0_3, %c0_4] : memref<1x32xf32, #tpu.memory_space<vmem>>, vector<1x32xf32>
    %4 = vector.broadcast %3 : vector<1x32xf32> to vector<512x32xf32>
    %5 = arith.addf %2, %4 : vector<512x32xf32>
    %c0_5 = arith.constant 0 : index
    %c0_6 = arith.constant 0 : index
    %6 = vector.load %arg6[%c0_5, %c0_6] : memref<512x32xf32, #tpu.memory_space<vmem>>, vector<512x32xf32>
    tpu.vector_store %arg6[%c0_5, %c0_6], %5 {strides = array<i32>} : memref<512x32xf32, #tpu.memory_space<vmem>>, vector<512x32xf32>,
    %c0_7 = arith.constant 0 : index
    %c0_8 = arith.constant 0 : index
    %7 = vector.load %arg4[%c0_7, %c0_8] : memref<64x16xbf16, #tpu.memory_space<vmem>>, vector<64x16xbf16>
    %cst_9 = arith.constant dense<0.000000e+00> : vector<512x16xf32>
    %8 = tpu.matmul %0, %7, %cst_9 {dimension_numbers = #tpu.dot_dimension_numbers<[1], [0], [0], [1], [0, 0, 1, 1], [], []>} : vector<512x64xbf16>, vector<64x16xbf16>, vector<512x16xf32> -> vector<512x16xf32>
    %c0_10 = arith.constant 0 : index
    %c0_11 = arith.constant 0 : index
    %9 = vector.load %arg5[%c0_10, %c0_11] : memref<1x16xf32, #tpu.memory_space<vmem>>, vector<1x16xf32>
    %10 = vector.broadcast %9 : vector<1x16xf32> to vector<512x16xf32>
    %11 = arith.addf %8, %10 : vector<512x16xf32>
    %cst_12 = arith.constant 0.000000e+00 : f32
    %12 = vector.broadcast %cst_12 : f32 to vector<512x16xf32>
    %13 = arith.maximumf %11, %12 : vector<512x16xf32>
    %14 = arith.truncf %13 : vector<512x16xf32> to vector<512x16xbf16>
    %c0_13 = arith.constant 0 : index
    %c0_14 = arith.constant 0 : index
    %15 = vector.load %arg7[%c0_13, %c0_14] : memref<512x16xbf16, #tpu.memory_space<vmem>>, vector<512x16xbf16>
    tpu.vector_store %arg7[%c0_13, %c0_14], %14 {strides = array<i32>} : memref<512x16xbf16, #tpu.memory_space<vmem>>, vector<512x16xbf16>,
    return
  }
  func.func @transform_0(%arg0: i32) -> (i32, i32) {
    %c0_i32 = arith.constant 0 : i32
    %c0_i32_0 = arith.constant 0 : i32
    return %arg0, %c0_i32 : i32, i32
  }
  func.func @transform_1(%arg0: i32) -> (i32, i32) {
    %c0_i32 = arith.constant 0 : i32
    %c0_i32_0 = arith.constant 0 : i32
    %c0_i32_1 = arith.constant 0 : i32
    return %c0_i32, %c0_i32_0 : i32, i32
  }
  func.func @transform_2(%arg0: i32) -> (i32, i32) {
    %c0_i32 = arith.constant 0 : i32
    %c0_i32_0 = arith.constant 0 : i32
    %c0_i32_1 = arith.constant 0 : i32
    return %c0_i32, %c0_i32_0 : i32, i32
  }
  func.func @transform_3(%arg0: i32) -> (i32, i32) {
    %c0_i32 = arith.constant 0 : i32
    %c0_i32_0 = arith.constant 0 : i32
    %c0_i32_1 = arith.constant 0 : i32
    return %c0_i32, %c0_i32_0 : i32, i32
  }
  func.func @transform_4(%arg0: i32) -> (i32, i32) {
    %c0_i32 = arith.constant 0 : i32
    %c0_i32_0 = arith.constant 0 : i32
    %c0_i32_1 = arith.constant 0 : i32
    return %c0_i32, %c0_i32_0 : i32, i32
  }
  func.func @transform_5(%arg0: i32) -> (i32, i32) {
    %c0_i32 = arith.constant 0 : i32
    %c0_i32_0 = arith.constant 0 : i32
    return %arg0, %c0_i32 : i32, i32
  }
  func.func @transform_6(%arg0: i32) -> (i32, i32) {
    %c0_i32 = arith.constant 0 : i32
    %c0_i32_0 = arith.constant 0 : i32
    return %arg0, %c0_i32 : i32, i32
  }
}

module attributes {stable_mosaic.version = 11 : i64} {
  func.func @_deconv_ext3_unpool_kernel(%arg0: i32, %arg1: memref<512x64xbf16, #tpu.memory_space<vmem>>, %arg2: memref<64x64xbf16, #tpu.memory_space<vmem>>, %arg3: memref<1x64xf32, #tpu.memory_space<vmem>>, %arg4: memref<64x128xbf16, #tpu.memory_space<vmem>>, %arg5: memref<1x128xf32, #tpu.memory_space<vmem>>, %arg6: memref<512x32xf32, #tpu.memory_space<vmem>>, %arg7: memref<512x32xi32, #tpu.memory_space<vmem>>, %arg8: memref<512x128xf32, #tpu.memory_space<vmem>>) attributes {dimension_semantics = [#tpu.dimension_semantics<parallel>], iteration_bounds = array<i64: 1>, scalar_prefetch = 0 : i64, scratch_operands = 0 : i64, tpu.core_type = #tpu.core_type<tc>, window_params = [{transform_indices = @transform_0, window_bounds = array<i64: 512, 64>}, {pipeline_mode = #tpu.pipeline_mode<synchronous>, transform_indices = @transform_1, window_bounds = array<i64: 64, 64>}, {pipeline_mode = #tpu.pipeline_mode<synchronous>, transform_indices = @transform_2, window_bounds = array<i64: 1, 64>}, {pipeline_mode = #tpu.pipeline_mode<synchronous>, transform_indices = @transform_3, window_bounds = array<i64: 64, 128>}, {pipeline_mode = #tpu.pipeline_mode<synchronous>, transform_indices = @transform_4, window_bounds = array<i64: 1, 128>}, {transform_indices = @transform_5, window_bounds = array<i64: 512, 32>}, {transform_indices = @transform_6, window_bounds = array<i64: 512, 32>}, {transform_indices = @transform_7, window_bounds = array<i64: 512, 128>}]} {
    %c0 = arith.constant 0 : index
    %c0_0 = arith.constant 0 : index
    %0 = vector.load %arg1[%c0, %c0_0] : memref<512x64xbf16, #tpu.memory_space<vmem>>, vector<512x64xbf16>
    %c0_1 = arith.constant 0 : index
    %c0_2 = arith.constant 0 : index
    %1 = vector.load %arg2[%c0_1, %c0_2] : memref<64x64xbf16, #tpu.memory_space<vmem>>, vector<64x64xbf16>
    %cst = arith.constant dense<0.000000e+00> : vector<512x64xf32>
    %2 = tpu.matmul %0, %1, %cst {dimension_numbers = #tpu.dot_dimension_numbers<[1], [0], [0], [1], [0, 0, 1, 1], [], []>} : vector<512x64xbf16>, vector<64x64xbf16>, vector<512x64xf32> -> vector<512x64xf32>
    %c0_3 = arith.constant 0 : index
    %c0_4 = arith.constant 0 : index
    %3 = vector.load %arg3[%c0_3, %c0_4] : memref<1x64xf32, #tpu.memory_space<vmem>>, vector<1x64xf32>
    %4 = vector.broadcast %3 : vector<1x64xf32> to vector<512x64xf32>
    %5 = arith.addf %2, %4 : vector<512x64xf32>
    %cst_5 = arith.constant 0.000000e+00 : f32
    %6 = vector.broadcast %cst_5 : f32 to vector<512x64xf32>
    %7 = arith.maximumf %5, %6 : vector<512x64xf32>
    %8 = arith.truncf %7 : vector<512x64xf32> to vector<512x64xbf16>
    %c0_6 = arith.constant 0 : index
    %c0_7 = arith.constant 0 : index
    %9 = vector.load %arg4[%c0_6, %c0_7] : memref<64x128xbf16, #tpu.memory_space<vmem>>, vector<64x128xbf16>
    %cst_8 = arith.constant dense<0.000000e+00> : vector<512x128xf32>
    %10 = tpu.matmul %8, %9, %cst_8 {dimension_numbers = #tpu.dot_dimension_numbers<[1], [0], [0], [1], [0, 0, 1, 1], [], []>} : vector<512x64xbf16>, vector<64x128xbf16>, vector<512x128xf32> -> vector<512x128xf32>
    %c0_9 = arith.constant 0 : index
    %c0_10 = arith.constant 0 : index
    %11 = vector.load %arg5[%c0_9, %c0_10] : memref<1x128xf32, #tpu.memory_space<vmem>>, vector<1x128xf32>
    %12 = vector.broadcast %11 : vector<1x128xf32> to vector<512x128xf32>
    %13 = arith.addf %10, %12 : vector<512x128xf32>
    %cst_11 = arith.constant 0.000000e+00 : f32
    %14 = vector.broadcast %cst_11 : f32 to vector<512x128xf32>
    %15 = arith.maximumf %13, %14 : vector<512x128xf32>
    %c0_12 = arith.constant 0 : index
    %c0_13 = arith.constant 0 : index
    %16 = vector.load %arg6[%c0_12, %c0_13] : memref<512x32xf32, #tpu.memory_space<vmem>>, vector<512x32xf32>
    %c0_14 = arith.constant 0 : index
    %c0_15 = arith.constant 0 : index
    %17 = vector.load %arg7[%c0_14, %c0_15] : memref<512x32xi32, #tpu.memory_space<vmem>>, vector<512x32xi32>
    %c0_i32 = arith.constant 0 : i32
    %18 = vector.broadcast %c0_i32 : i32 to vector<512x32xi32>
    %19 = arith.cmpi eq, %17, %18 : vector<512x32xi32>
    %cst_16 = arith.constant 0.000000e+00 : f32
    %20 = vector.broadcast %cst_16 : f32 to vector<512x32xf32>
    %21 = arith.select %19, %16, %20 : vector<512x32xi1>, vector<512x32xf32>
    %c1_i32 = arith.constant 1 : i32
    %22 = vector.broadcast %c1_i32 : i32 to vector<512x32xi32>
    %23 = arith.cmpi eq, %17, %22 : vector<512x32xi32>
    %cst_17 = arith.constant 0.000000e+00 : f32
    %24 = vector.broadcast %cst_17 : f32 to vector<512x32xf32>
    %25 = arith.select %23, %16, %24 : vector<512x32xi1>, vector<512x32xf32>
    %c2_i32 = arith.constant 2 : i32
    %26 = vector.broadcast %c2_i32 : i32 to vector<512x32xi32>
    %27 = arith.cmpi eq, %17, %26 : vector<512x32xi32>
    %cst_18 = arith.constant 0.000000e+00 : f32
    %28 = vector.broadcast %cst_18 : f32 to vector<512x32xf32>
    %29 = arith.select %27, %16, %28 : vector<512x32xi1>, vector<512x32xf32>
    %c3_i32 = arith.constant 3 : i32
    %30 = vector.broadcast %c3_i32 : i32 to vector<512x32xi32>
    %31 = arith.cmpi eq, %17, %30 : vector<512x32xi32>
    %cst_19 = arith.constant 0.000000e+00 : f32
    %32 = vector.broadcast %cst_19 : f32 to vector<512x32xf32>
    %33 = arith.select %31, %16, %32 : vector<512x32xi1>, vector<512x32xf32>
    %34 = tpu.concatenate %21, %25, %29, %33 in 1 : vector<512x32xf32>, vector<512x32xf32>, vector<512x32xf32>, vector<512x32xf32> -> vector<512x128xf32>
    %35 = arith.addf %15, %34 : vector<512x128xf32>
    %cst_20 = arith.constant 0.000000e+00 : f32
    %36 = vector.broadcast %cst_20 : f32 to vector<512x128xf32>
    %37 = arith.maximumf %35, %36 : vector<512x128xf32>
    %c0_21 = arith.constant 0 : index
    %c0_22 = arith.constant 0 : index
    %38 = vector.load %arg8[%c0_21, %c0_22] : memref<512x128xf32, #tpu.memory_space<vmem>>, vector<512x128xf32>
    tpu.vector_store %arg8[%c0_21, %c0_22], %37 {strides = array<i32>} : memref<512x128xf32, #tpu.memory_space<vmem>>, vector<512x128xf32>,
    return
  }
  func.func @transform_0(%arg0: i32) -> (i32, i32) {
    %c0_i32 = arith.constant 0 : i32
    %c0_i32_0 = arith.constant 0 : i32
    return %arg0, %c0_i32 : i32, i32
  }
  func.func @transform_1(%arg0: i32) -> (i32, i32) {
    %c0_i32 = arith.constant 0 : i32
    %c0_i32_0 = arith.constant 0 : i32
    %c0_i32_1 = arith.constant 0 : i32
    return %c0_i32, %c0_i32_0 : i32, i32
  }
  func.func @transform_2(%arg0: i32) -> (i32, i32) {
    %c0_i32 = arith.constant 0 : i32
    %c0_i32_0 = arith.constant 0 : i32
    %c0_i32_1 = arith.constant 0 : i32
    return %c0_i32, %c0_i32_0 : i32, i32
  }
  func.func @transform_3(%arg0: i32) -> (i32, i32) {
    %c0_i32 = arith.constant 0 : i32
    %c0_i32_0 = arith.constant 0 : i32
    %c0_i32_1 = arith.constant 0 : i32
    return %c0_i32, %c0_i32_0 : i32, i32
  }
  func.func @transform_4(%arg0: i32) -> (i32, i32) {
    %c0_i32 = arith.constant 0 : i32
    %c0_i32_0 = arith.constant 0 : i32
    %c0_i32_1 = arith.constant 0 : i32
    return %c0_i32, %c0_i32_0 : i32, i32
  }
  func.func @transform_5(%arg0: i32) -> (i32, i32) {
    %c0_i32 = arith.constant 0 : i32
    %c0_i32_0 = arith.constant 0 : i32
    return %arg0, %c0_i32 : i32, i32
  }
  func.func @transform_6(%arg0: i32) -> (i32, i32) {
    %c0_i32 = arith.constant 0 : i32
    %c0_i32_0 = arith.constant 0 : i32
    return %arg0, %c0_i32 : i32, i32
  }
  func.func @transform_7(%arg0: i32) -> (i32, i32) {
    %c0_i32 = arith.constant 0 : i32
    %c0_i32_0 = arith.constant 0 : i32
    return %arg0, %c0_i32 : i32, i32
  }
}

</mosaic_0001>

<bundles_post_ra>
// kernel: mul.42
= control target key start
LH: loop header
LB: loop body
LE: loop exit
PB: predicated region body
PF: predicated region fallthrough
CT: control target
= control target key end

     0   :  { %s37_s8 = smov 16   ;;  %s38_s9 = smov 32   ;;  %vm7_vm0 = vcmask 130048   ;;  %vm13_vm1 = vcmask 523648   ;;  %vm19_vm2 = vcmask 392448   ;;  %vm25_vm3 = vcmask 261248   ;;  %s55_s0 = inlined_call_operand.vmem [shape: f32[4,16], index: 0, kind: input, shape index: {}]   ;;  %s56_s1 = inlined_call_operand.vmem [shape: f32[64], index: 1, kind: output, shape index: {}]  }
   0x1   :  { %v4_v0 = vld [vmem:[%s55_s0] sm:$0xf]  ;;  %s36_s0 = smov 48  }
   0x2   :  { %5 = vst [vmem:[#allocation1] sm:$0xf] %v4_v0 }
   0x9   :  { %v10_v1 = vld [vmem:[#allocation1 + $0x3] sm:$0x1]   ;;  %v22_v2 = vld [vmem:[#allocation1 + $0x1] sm:$0x1]   ;;  %v16_v3 = vld [vmem:[#allocation1 + $0x2] sm:$0x1]  }
   0xa   :  { %11 = vrot.lane.b32.xlu0 %v10_v1, %s36_s0  ;;  %23 = vrot.lane.b32.xlu1 %v22_v2, %s37_s8  ;;  %v6_v4 = vld [vmem:[#allocation1] sm:$0x1]  }
   0xb   :  { %8 = vst.msk [vmem:[#allocation0] sm:$0x1] %vm7_vm0, %v6_v4  }
  0x12   :  { %17 = vrot.lane.b32.xlu0 %v16_v3, %s38_s9 }
  0x7c   :  { %v12_v5 = vpop.permute.xlu0 %11   ;;  %v24_v6 = vpop.permute.xlu1 %23  }
  0x7d   :  { %14 = vst.msk [vmem:[#allocation0] sm:$0x1] %vm13_vm1, %v12_v5  }
  0x84   :  { %v18_v7 = vpop.permute.xlu0 %17  }
  0x85   :  { %20 = vst.msk [vmem:[#allocation0] sm:$0x1] %vm19_vm2, %v18_v7  }
  0x86   :  { %26 = vst.msk [vmem:[#allocation0] sm:$0x1] %vm25_vm3, %v24_v6  }
  0x8d   :  { %v29_v8 = vld [vmem:[#allocation0] sm:$0x1] }
  0x8e   :  { %32 = vst [vmem:[%s56_s1] sm:$0x1] %v29_v8 }

// kernel: tile.18
= control target key start
LH: loop header
LB: loop body
LE: loop exit
PB: predicated region body
PF: predicated region fallthrough
CT: control target
= control target key end

     0   :  { %s22_s0 = inlined_call_operand.vmem [shape: f32[16], index: 0, kind: input, shape index: {}]   ;;  %s23_s1 = inlined_call_operand.vmem [shape: f32[4,16], index: 1, kind: output, shape index: {}]  }
   0x1   :  { %v4_v0 = vld [vmem:[%s22_s0] ss:$0 sm:$0xff] }
   0x2   :  { %5 = vst [vmem:[%s23_s1] sm:$0xf] %v4_v0 }

// kernel: tile.28
= control target key start
LH: loop header
LB: loop body
LE: loop exit
PB: predicated region body
PF: predicated region fallthrough
CT: control target
= control target key end

     0   :  { %s37_s8 = smov 16   ;;  %s38_s9 = smov 32   ;;  %vm7_vm0 = vcmask 130048   ;;  %vm13_vm1 = vcmask 523648   ;;  %vm19_vm2 = vcmask 392448   ;;  %vm25_vm3 = vcmask 261248   ;;  %s55_s0 = inlined_call_operand.vmem [shape: f32[4,16], index: 0, kind: input, shape index: {}]   ;;  %s56_s1 = inlined_call_operand.vmem [shape: f32[1,64], index: 1, kind: output, shape index: {}]  }
   0x1   :  { %v4_v0 = vld [vmem:[%s55_s0] sm:$0xf]  ;;  %s36_s0 = smov 48  }
   0x2   :  { %5 = vst [vmem:[#allocation1] sm:$0xf] %v4_v0 }
   0x9   :  { %v10_v1 = vld [vmem:[#allocation1 + $0x3] sm:$0x1]   ;;  %v22_v2 = vld [vmem:[#allocation1 + $0x1] sm:$0x1]   ;;  %v16_v3 = vld [vmem:[#allocation1 + $0x2] sm:$0x1]  }
   0xa   :  { %11 = vrot.lane.b32.xlu0 %v10_v1, %s36_s0  ;;  %23 = vrot.lane.b32.xlu1 %v22_v2, %s37_s8  ;;  %v6_v4 = vld [vmem:[#allocation1] sm:$0x1]  }
   0xb   :  { %8 = vst.msk [vmem:[#allocation0] sm:$0x1] %vm7_vm0, %v6_v4  }
  0x12   :  { %17 = vrot.lane.b32.xlu0 %v16_v3, %s38_s9 }
  0x7c   :  { %v12_v5 = vpop.permute.xlu0 %11   ;;  %v24_v6 = vpop.permute.xlu1 %23  }
  0x7d   :  { %14 = vst.msk [vmem:[#allocation0] sm:$0x1] %vm13_vm1, %v12_v5  }
  0x84   :  { %v18_v7 = vpop.permute.xlu0 %17  }
  0x85   :  { %20 = vst.msk [vmem:[#allocation0] sm:$0x1] %vm19_vm2, %v18_v7  }
  0x86   :  { %26 = vst.msk [vmem:[#allocation0] sm:$0x1] %vm25_vm3, %v24_v6  }
  0x8d   :  { %v29_v8 = vld [vmem:[#allocation0] sm:$0x1] }
  0x8e   :  { %32 = vst [vmem:[%s56_s1] sm:$0x1] %v29_v8 }

// kernel: tile.27
= control target key start
LH: loop header
LB: loop body
LE: loop exit
PB: predicated region body
PF: predicated region fallthrough
CT: control target
= control target key end

     0   :  { %s22_s0 = inlined_call_operand.vmem [shape: f32[32], index: 0, kind: input, shape index: {}]   ;;  %s23_s1 = inlined_call_operand.vmem [shape: f32[4,32], index: 1, kind: output, shape index: {}]  }
   0x1   :  { %v4_v0 = vld [vmem:[%s22_s0] ss:$0 sm:$0xff] }
   0x2   :  { %5 = vst [vmem:[%s23_s1] sm:$0xf] %v4_v0 }

// kernel: tile.29
= control target key start
LH: loop header
LB: loop body
LE: loop exit
PB: predicated region body
PF: predicated region fallthrough
CT: control target
= control target key end

     0   :  { %s37_s8 = smov 32   ;;  %s38_s9 = smov 64   ;;  %vm7_vm0 = vcmask 261120   ;;  %vm13_vm1 = vcmask 1048320   ;;  %vm19_vm2 = vcmask 785920   ;;  %vm25_vm3 = vcmask 523520   ;;  %s55_s0 = inlined_call_operand.vmem [shape: f32[4,32], index: 0, kind: input, shape index: {}]   ;;  %s56_s1 = inlined_call_operand.vmem [shape: f32[1,128], index: 1, kind: output, shape index: {}]  }
   0x1   :  { %v4_v0 = vld [vmem:[%s55_s0] sm:$0xf]  ;;  %s36_s0 = smov 96  }
   0x2   :  { %5 = vst [vmem:[#allocation1] sm:$0xf] %v4_v0 }
   0x9   :  { %v10_v1 = vld [vmem:[#allocation1 + $0x3] sm:$0x1]   ;;  %v22_v2 = vld [vmem:[#allocation1 + $0x1] sm:$0x1]   ;;  %v16_v3 = vld [vmem:[#allocation1 + $0x2] sm:$0x1]  }
   0xa   :  { %11 = vrot.lane.b32.xlu0 %v10_v1, %s36_s0  ;;  %23 = vrot.lane.b32.xlu1 %v22_v2, %s37_s8  ;;  %v6_v4 = vld [vmem:[#allocation1] sm:$0x1]  }
   0xb   :  { %8 = vst.msk [vmem:[#allocation0] sm:$0x1] %vm7_vm0, %v6_v4  }
  0x12   :  { %17 = vrot.lane.b32.xlu0 %v16_v3, %s38_s9 }
  0x7c   :  { %v12_v5 = vpop.permute.xlu0 %11   ;;  %v24_v6 = vpop.permute.xlu1 %23  }
  0x7d   :  { %14 = vst.msk [vmem:[#allocation0] sm:$0x1] %vm13_vm1, %v12_v5  }
  0x84   :  { %v18_v7 = vpop.permute.xlu0 %17  }
  0x85   :  { %20 = vst.msk [vmem:[#allocation0] sm:$0x1] %vm19_vm2, %v18_v7  }
  0x86   :  { %26 = vst.msk [vmem:[#allocation0] sm:$0x1] %vm25_vm3, %v24_v6  }
  0x8d   :  { %v29_v8 = vld [vmem:[#allocation0] sm:$0x1] }
  0x8e   :  { %32 = vst [vmem:[%s56_s1] sm:$0x1] %v29_v8 }

// kernel: upsampling_bottleneck.2
= control target key start
LH: loop header
LB: loop body
LE: loop exit
PB: predicated region body
PF: predicated region fallthrough
CT: control target
= control target key end

     0   :  { %vm283_vm0 = vcmask 523264   ;;  %vm549_vm1 = vcmask 261120   ;;  %vm947_vm2 = vcmask 125952   ;;  %s2158_s1 = inlined_call_operand.vmem [shape: bf16[64,32], index: 1, kind: input, shape index: {}]   ;;  %s2159_s3 = inlined_call_operand.vmem [shape: bf16[64,16], index: 3, kind: input, shape index: {}]   ;;  %s2160_s4 = inlined_call_operand.vmem [shape: f32[1,16], index: 4, kind: input, shape index: {}]   ;;  %s2161_s0 = inlined_call_operand.vmem [shape: bf16[512,64], index: 0, kind: input, shape index: {}]   ;;  %s2162_s2 = inlined_call_operand.vmem [shape: f32[1,32], index: 2, kind: input, shape index: {}]   ;;  %s2163_s5 = inlined_call_operand.vmem [shape: f32[512,32], index: 5, kind: output, shape index: {0}]   ;;  %s2164_s6 = inlined_call_operand.vmem [shape: bf16[512,16], index: 6, kind: output, shape index: {1}]  }
   0x1   :  { %v1279_v0 = vld [vmem:[%s2158_s1 + $0x18] sm:$0xff]  ;;  %v1278_v2 = vld [vmem:[%s2158_s1 + $0x10] sm:$0xff]  ;;  %v1277_v4 = vld [vmem:[%s2158_s1 + $0x8] sm:$0xff] }
   0x2   :  { %v1283_v1 = vld [vmem:[%s2159_s3 + $0x18] sm:$0xff]  ;;  %1284 = vmatpush.bf16.msra.mxu2 %v1279_v0  ;;  %v1282_v3 = vld [vmem:[%s2159_s3 + $0x10] sm:$0xff]  ;;  %384 = vmatpush.bf16.msra.mxu0 %v1279_v0  ;;  %v1281_v5 = vld [vmem:[%s2159_s3 + $0x8] sm:$0xff] }
   0x3   :  { %654 = vmatpush.bf16.msra.mxu1 %v1283_v1  ;;  %1288 = vmatpush.bf16.msra.mxu3 %v1283_v1  ;;  %v1276_v6 = vld [vmem:[%s2158_s1] sm:$0xff]  ;;  %v1261_v10 = vld [vmem:[%s2161_s0 + $0x88] sm:$0xff]  ;;  %v1262_v12 = vld [vmem:[%s2161_s0 + $0x90] sm:$0xff] }
   0x4   :  { %v1280_v7 = vld [vmem:[%s2159_s3] sm:$0xff]  ;;  %v1245_v11 = vld [vmem:[%s2161_s0 + $0x8] sm:$0xff]  ;;  %v1246_v13 = vld [vmem:[%s2161_s0 + $0x10] sm:$0xff] }
   0x5   :  { %v1260_v8 = vld [vmem:[%s2161_s0 + $0x80] sm:$0xff]  ;;  %v1263_v14 = vld [vmem:[%s2161_s0 + $0x98] sm:$0xff]  ;;  %v1265_v18 = vld [vmem:[%s2161_s0 + $0xa8] sm:$0xff] }
   0x6   :  { %1285 = vmatpush.bf16.msra.mxu2 %v1278_v2  ;;  %385 = vmatpush.bf16.msra.mxu0 %v1278_v2  ;;  %v1244_v9 = vld [vmem:[%s2161_s0] sm:$0xff]  ;;  %v1247_v15 = vld [vmem:[%s2161_s0 + $0x18] sm:$0xff]  ;;  %v1249_v19 = vld [vmem:[%s2161_s0 + $0x28] sm:$0xff] }
   0x7   :  { %655 = vmatpush.bf16.msra.mxu1 %v1282_v3  ;;  %1289 = vmatpush.bf16.msra.mxu3 %v1282_v3  ;;  %v1264_v16 = vld [vmem:[%s2161_s0 + $0xa0] sm:$0xff]  ;;  %v1266_v20 = vld [vmem:[%s2161_s0 + $0xb0] sm:$0xff]  ;;  %v1267_v22 = vld [vmem:[%s2161_s0 + $0xb8] sm:$0xff] }
   0x8   :  { %v1248_v17 = vld [vmem:[%s2161_s0 + $0x20] sm:$0xff]  ;;  %v1250_v21 = vld [vmem:[%s2161_s0 + $0x30] sm:$0xff]  ;;  %v1251_v23 = vld [vmem:[%s2161_s0 + $0x38] sm:$0xff] }
   0x9   :  { %v1438_v24 = vld [vmem:[%s2160_s4] ss:$0 sm:$0xff]  ;;  %v1269_v49 = vld [vmem:[%s2161_s0 + $0xc8] sm:$0xff] }
   0xa   :  { %1286 = vmatpush.bf16.msra.mxu2 %v1277_v4  ;;  %386 = vmatpush.bf16.msra.mxu0 %v1277_v4  ;;  %v1443_v25 = vld [vmem:[%s2162_s2] ss:$0 sm:$0xff]  ;;  %v1253_v50 = vld [vmem:[%s2161_s0 + $0x48] sm:$0xff] }
   0xb   :  { %656 = vmatpush.bf16.msra.mxu1 %v1281_v5  ;;  %1290 = vmatpush.bf16.msra.mxu3 %v1281_v5  ;;  %v1268_v26 = vld [vmem:[%s2161_s0 + $0xc0] sm:$0xff] }
   0xc   :  { %v1252_v27 = vld [vmem:[%s2161_s0 + $0x40] sm:$0xff] }
   0xe   :  { %1287 = vmatpush.bf16.msra.mxu2 %v1276_v6  ;;  %387 = vmatpush.bf16.msra.mxu0 %v1276_v6 }
   0xf   :  { %657 = vmatpush.bf16.msra.mxu1 %v1280_v7  ;;  %1291 = vmatpush.bf16.msra.mxu3 %v1280_v7 }
  0x11   :  { %1180 = vmatmul.msk.bf16.vlgmr.msra.gmra.mxu2 %vm283_vm0, %v1260_v8  ;;  %1164 = vmatmul.msk.bf16.vlgmr.msra.gmra.mxu0 %vm283_vm0, %v1244_v9 }
  0x12   :  { %1212 = vmatmul.msk.bf16.vlgmr.msra.gmra.mxu1 %vm283_vm0, %v1244_v9  ;;  %1228 = vmatmul.msk.bf16.vlgmr.msra.gmra.mxu3 %vm283_vm0, %v1260_v8 }
  0x21   :  { %1181 = vmatmul.msk.bf16.gmra.mxu2 %vm283_vm0, %v1261_v10  ;;  %1165 = vmatmul.msk.bf16.gmra.mxu0 %vm283_vm0, %v1245_v11 }
  0x22   :  { %1213 = vmatmul.msk.bf16.gmra.mxu1 %vm283_vm0, %v1245_v11  ;;  %1229 = vmatmul.msk.bf16.gmra.mxu3 %vm283_vm0, %v1261_v10  ;;  %v1270_v11 = vld [vmem:[%s2161_s0 + $0xd0] sm:$0xff] }
  0x31   :  { %1182 = vmatmul.msk.bf16.gmra.mxu2 %vm283_vm0, %v1262_v12  ;;  %1166 = vmatmul.msk.bf16.gmra.mxu0 %vm283_vm0, %v1246_v13 }
  0x32   :  { %1214 = vmatmul.msk.bf16.gmra.mxu1 %vm283_vm0, %v1246_v13  ;;  %1230 = vmatmul.msk.bf16.gmra.mxu3 %vm283_vm0, %v1262_v12  ;;  %v1254_v12 = vld [vmem:[%s2161_s0 + $0x50] sm:$0xff] }
  0x41   :  { %1183 = vmatmul.msk.bf16.gmra.mxu2 %vm283_vm0, %v1263_v14  ;;  %1167 = vmatmul.msk.bf16.gmra.mxu0 %vm283_vm0, %v1247_v15 }
  0x42   :  { %1215 = vmatmul.msk.bf16.gmra.mxu1 %vm283_vm0, %v1247_v15  ;;  %1231 = vmatmul.msk.bf16.gmra.mxu3 %vm283_vm0, %v1263_v14 }
  0x51   :  { %1184 = vmatmul.msk.bf16.gmra.mxu2 %vm283_vm0, %v1264_v16  ;;  %1168 = vmatmul.msk.bf16.gmra.mxu0 %vm283_vm0, %v1248_v17 }
  0x52   :  { %1216 = vmatmul.msk.bf16.gmra.mxu1 %vm283_vm0, %v1248_v17  ;;  %1232 = vmatmul.msk.bf16.gmra.mxu3 %vm283_vm0, %v1264_v16 }
  0x61   :  { %1185 = vmatmul.msk.bf16.gmra.mxu2 %vm283_vm0, %v1265_v18  ;;  %1169 = vmatmul.msk.bf16.gmra.mxu0 %vm283_vm0, %v1249_v19 }
  0x62   :  { %1217 = vmatmul.msk.bf16.gmra.mxu1 %vm283_vm0, %v1249_v19  ;;  %1233 = vmatmul.msk.bf16.gmra.mxu3 %vm283_vm0, %v1265_v18 }
  0x71   :  { %1186 = vmatmul.msk.bf16.gmra.mxu2 %vm283_vm0, %v1266_v20  ;;  %1170 = vmatmul.msk.bf16.gmra.mxu0 %vm283_vm0, %v1250_v21 }
  0x72   :  { %1218 = vmatmul.msk.bf16.gmra.mxu1 %vm283_vm0, %v1250_v21  ;;  %1234 = vmatmul.msk.bf16.gmra.mxu3 %vm283_vm0, %v1266_v20 }
  0x81   :  { %1187 = vmatmul.msk.bf16.gmra.mxu2 %vm283_vm0, %v1267_v22  ;;  %1171 = vmatmul.msk.bf16.gmra.mxu0 %vm283_vm0, %v1251_v23 }
  0x82   :  { %1219 = vmatmul.msk.bf16.gmra.mxu1 %vm283_vm0, %v1251_v23  ;;  %1235 = vmatmul.msk.bf16.gmra.mxu3 %vm283_vm0, %v1267_v22 }
  0x8e   :  { %v389_v30 = vpop.f32.mrf.mxu0 }
  0x8f   :  { %v659_v28 = vpop.f32.mrf.mxu1  ;;  %v390_v31 = vadd.f32 %v1443_v25, %v389_v30 }
  0x90   :  { %v660_v29 = vadd.f32 %v1438_v24, %v659_v28 }
  0x91   :  { %1188 = vmatmul.msk.bf16.gmra.mxu2 %vm283_vm0, %v1268_v26  ;;  %550 = vst.msk [vmem:[%s2163_s5] sm:$0xff] %vm549_vm1, %v390_v31  ;;  %1172 = vmatmul.msk.bf16.gmra.mxu0 %vm283_vm0, %v1252_v27 }
  0x92   :  { %v819_v32 = vmax.f32 %v660_v29, 0.0  ;;  %1220 = vmatmul.msk.bf16.gmra.mxu1 %vm283_vm0, %v1252_v27  ;;  %1236 = vmatmul.msk.bf16.gmra.mxu3 %vm283_vm0, %v1268_v26 }
  0x94   :  { %v883_v33 = vpack.c.bf16 %v819_v32, %v819_v32  ;;  %v469_v34 = vpop.f32.mrf.mxu2 }
  0x95   :  { %v470_v35 = vadd.f32 %v1443_v25, %v469_v34  ;;  %v739_v36 = vpop.f32.mrf.mxu3 }
  0x96   :  { %948 = vst.msk [vmem:[%s2164_s6] sm:$0xf] %vm947_vm2, %v883_v33  ;;  %v740_v37 = vadd.f32 %v1438_v24, %v739_v36  ;;  %v391_v40 = vpop.f32.mrf.mxu0 }
  0x97   :  { %v661_v38 = vpop.f32.mrf.mxu1  ;;  %582 = vst.msk [vmem:[%s2163_s5 + $0x100] sm:$0xff] %vm549_vm1, %v470_v35  ;;  %v392_v42 = vadd.f32 %v1443_v25, %v391_v40  ;;  %v1255_v40 = vld [vmem:[%s2161_s0 + $0x58] sm:$0xff] }
  0x98   :  { %v662_v39 = vadd.f32 %v1438_v24, %v661_v38  ;;  %v851_v41 = vmax.f32 %v740_v37, 0.0 }
  0x99   :  { %551 = vst.msk [vmem:[%s2163_s5 + $0x8] sm:$0xff] %vm549_vm1, %v392_v42 }
  0x9a   :  { %v820_v43 = vmax.f32 %v662_v39, 0.0  ;;  %v915_v44 = vpack.c.bf16 %v851_v41, %v851_v41  ;;  %v1271_v39 = vld [vmem:[%s2161_s0 + $0xd8] sm:$0xff] }
  0x9c   :  { %v884_v45 = vpack.c.bf16 %v820_v43, %v820_v43  ;;  %980 = vst.msk [vmem:[%s2164_s6 + $0x80] sm:$0xf] %vm947_vm2, %v915_v44  ;;  %v471_v46 = vpop.f32.mrf.mxu2 }
  0x9d   :  { %v472_v47 = vadd.f32 %v1443_v25, %v471_v46  ;;  %v741_v48 = vpop.f32.mrf.mxu3 }
  0x9e   :  { %949 = vst.msk [vmem:[%s2164_s6 + $0x4] sm:$0xf] %vm947_vm2, %v884_v45  ;;  %v742_v51 = vadd.f32 %v1438_v24, %v741_v48  ;;  %v394_v54 = vpop.f32.mrf.mxu0 }
  0x9f   :  { %v664_v52 = vpop.f32.mrf.mxu1  ;;  %583 = vst.msk [vmem:[%s2163_s5 + $0x108] sm:$0xff] %vm549_vm1, %v472_v47  ;;  %v395_v56 = vadd.f32 %v1443_v25, %v394_v54 }
  0xa0   :  { %v665_v53 = vadd.f32 %v1438_v24, %v664_v52  ;;  %v852_v55 = vmax.f32 %v742_v51, 0.0 }
  0xa1   :  { %1189 = vmatmul.msk.bf16.gmra.mxu2 %vm283_vm0, %v1269_v49  ;;  %552 = vst.msk [vmem:[%s2163_s5 + $0x10] sm:$0xff] %vm549_vm1, %v395_v56  ;;  %1173 = vmatmul.msk.bf16.gmra.mxu0 %vm283_vm0, %v1253_v50 }
  0xa2   :  { %v821_v57 = vmax.f32 %v665_v53, 0.0  ;;  %1221 = vmatmul.msk.bf16.gmra.mxu1 %vm283_vm0, %v1253_v50  ;;  %v916_v58 = vpack.c.bf16 %v852_v55, %v852_v55  ;;  %1237 = vmatmul.msk.bf16.gmra.mxu3 %vm283_vm0, %v1269_v49 }
  0xa4   :  { %v885_v59 = vpack.c.bf16 %v821_v57, %v821_v57  ;;  %981 = vst.msk [vmem:[%s2164_s6 + $0x84] sm:$0xf] %vm947_vm2, %v916_v58  ;;  %v474_v60 = vpop.f32.mrf.mxu2 }
  0xa5   :  { %v475_v61 = vadd.f32 %v1443_v25, %v474_v60  ;;  %v744_v62 = vpop.f32.mrf.mxu3 }
  0xa6   :  { %950 = vst.msk [vmem:[%s2164_s6 + $0x8] sm:$0xf] %vm947_vm2, %v885_v59  ;;  %v745_v63 = vadd.f32 %v1438_v24, %v744_v62  ;;  %v396_v2 = vpop.f32.mrf.mxu0 }
  0xa7   :  { %v666_v0 = vpop.f32.mrf.mxu1  ;;  %584 = vst.msk [vmem:[%s2163_s5 + $0x110] sm:$0xff] %vm549_vm1, %v475_v61  ;;  %v397_v4 = vadd.f32 %v1443_v25, %v396_v2  ;;  %v1256_v2 = vld [vmem:[%s2161_s0 + $0x60] sm:$0xff] }
  0xa8   :  { %v667_v1 = vadd.f32 %v1438_v24, %v666_v0  ;;  %v853_v3 = vmax.f32 %v745_v63, 0.0 }
  0xa9   :  { %553 = vst.msk [vmem:[%s2163_s5 + $0x18] sm:$0xff] %vm549_vm1, %v397_v4 }
  0xaa   :  { %v822_v5 = vmax.f32 %v667_v1, 0.0  ;;  %v917_v6 = vpack.c.bf16 %v853_v3, %v853_v3  ;;  %v1272_v1 = vld [vmem:[%s2161_s0 + $0xe0] sm:$0xff] }
  0xac   :  { %v886_v7 = vpack.c.bf16 %v822_v5, %v822_v5  ;;  %982 = vst.msk [vmem:[%s2164_s6 + $0x88] sm:$0xf] %vm947_vm2, %v917_v6  ;;  %v476_v8 = vpop.f32.mrf.mxu2 }
  0xad   :  { %v477_v9 = vadd.f32 %v1443_v25, %v476_v8  ;;  %v746_v10 = vpop.f32.mrf.mxu3 }
  0xae   :  { %951 = vst.msk [vmem:[%s2164_s6 + $0xc] sm:$0xf] %vm947_vm2, %v886_v7  ;;  %v747_v13 = vadd.f32 %v1438_v24, %v746_v10  ;;  %v399_v16 = vpop.f32.mrf.mxu0 }
  0xaf   :  { %v669_v14 = vpop.f32.mrf.mxu1  ;;  %585 = vst.msk [vmem:[%s2163_s5 + $0x118] sm:$0xff] %vm549_vm1, %v477_v9  ;;  %v400_v18 = vadd.f32 %v1443_v25, %v399_v16 }
  0xb0   :  { %v670_v15 = vadd.f32 %v1438_v24, %v669_v14  ;;  %v854_v17 = vmax.f32 %v747_v13, 0.0 }
  0xb1   :  { %1190 = vmatmul.msk.bf16.gmra.mxu2 %vm283_vm0, %v1270_v11  ;;  %554 = vst.msk [vmem:[%s2163_s5 + $0x20] sm:$0xff] %vm549_vm1, %v400_v18  ;;  %1174 = vmatmul.msk.bf16.gmra.mxu0 %vm283_vm0, %v1254_v12 }
  0xb2   :  { %v823_v19 = vmax.f32 %v670_v15, 0.0  ;;  %1222 = vmatmul.msk.bf16.gmra.mxu1 %vm283_vm0, %v1254_v12  ;;  %v918_v20 = vpack.c.bf16 %v854_v17, %v854_v17  ;;  %1238 = vmatmul.msk.bf16.gmra.mxu3 %vm283_vm0, %v1270_v11 }
  0xb4   :  { %v887_v21 = vpack.c.bf16 %v823_v19, %v823_v19  ;;  %983 = vst.msk [vmem:[%s2164_s6 + $0x8c] sm:$0xf] %vm947_vm2, %v918_v20  ;;  %v479_v22 = vpop.f32.mrf.mxu2 }
  0xb5   :  { %v480_v23 = vadd.f32 %v1443_v25, %v479_v22  ;;  %v749_v26 = vpop.f32.mrf.mxu3 }
  0xb6   :  { %952 = vst.msk [vmem:[%s2164_s6 + $0x10] sm:$0xf] %vm947_vm2, %v887_v21  ;;  %v750_v27 = vadd.f32 %v1438_v24, %v749_v26  ;;  %v401_v30 = vpop.f32.mrf.mxu0 }
  0xb7   :  { %v671_v28 = vpop.f32.mrf.mxu1  ;;  %586 = vst.msk [vmem:[%s2163_s5 + $0x120] sm:$0xff] %vm549_vm1, %v480_v23  ;;  %v402_v32 = vadd.f32 %v1443_v25, %v401_v30  ;;  %v1257_v30 = vld [vmem:[%s2161_s0 + $0x68] sm:$0xff] }
  0xb8   :  { %v672_v29 = vadd.f32 %v1438_v24, %v671_v28  ;;  %v855_v31 = vmax.f32 %v750_v27, 0.0 }
  0xb9   :  { %555 = vst.msk [vmem:[%s2163_s5 + $0x28] sm:$0xff] %vm549_vm1, %v402_v32 }
  0xba   :  { %v824_v33 = vmax.f32 %v672_v29, 0.0  ;;  %v919_v34 = vpack.c.bf16 %v855_v31, %v855_v31  ;;  %v1273_v29 = vld [vmem:[%s2161_s0 + $0xe8] sm:$0xff] }
  0xbc   :  { %v888_v35 = vpack.c.bf16 %v824_v33, %v824_v33  ;;  %984 = vst.msk [vmem:[%s2164_s6 + $0x90] sm:$0xf] %vm947_vm2, %v919_v34  ;;  %v481_v36 = vpop.f32.mrf.mxu2 }
  0xbd   :  { %v482_v37 = vadd.f32 %v1443_v25, %v481_v36  ;;  %v751_v38 = vpop.f32.mrf.mxu3 }
  0xbe   :  { %953 = vst.msk [vmem:[%s2164_s6 + $0x14] sm:$0xf] %vm947_vm2, %v888_v35  ;;  %v752_v41 = vadd.f32 %v1438_v24, %v751_v38  ;;  %v404_v44 = vpop.f32.mrf.mxu0 }
  0xbf   :  { %v674_v42 = vpop.f32.mrf.mxu1  ;;  %587 = vst.msk [vmem:[%s2163_s5 + $0x128] sm:$0xff] %vm549_vm1, %v482_v37  ;;  %v405_v46 = vadd.f32 %v1443_v25, %v404_v44 }
  0xc0   :  { %v675_v43 = vadd.f32 %v1438_v24, %v674_v42  ;;  %v856_v45 = vmax.f32 %v752_v41, 0.0 }
  0xc1   :  { %1191 = vmatmul.msk.bf16.gmra.mxu2 %vm283_vm0, %v1271_v39  ;;  %556 = vst.msk [vmem:[%s2163_s5 + $0x30] sm:$0xff] %vm549_vm1, %v405_v46  ;;  %1175 = vmatmul.msk.bf16.gmra.mxu0 %vm283_vm0, %v1255_v40 }
  0xc2   :  { %v825_v47 = vmax.f32 %v675_v43, 0.0  ;;  %1223 = vmatmul.msk.bf16.gmra.mxu1 %vm283_vm0, %v1255_v40  ;;  %v920_v48 = vpack.c.bf16 %v856_v45, %v856_v45  ;;  %1239 = vmatmul.msk.bf16.gmra.mxu3 %vm283_vm0, %v1271_v39 }
  0xc4   :  { %v889_v49 = vpack.c.bf16 %v825_v47, %v825_v47  ;;  %985 = vst.msk [vmem:[%s2164_s6 + $0x94] sm:$0xf] %vm947_vm2, %v920_v48  ;;  %v484_v50 = vpop.f32.mrf.mxu2 }
  0xc5   :  { %v485_v51 = vadd.f32 %v1443_v25, %v484_v50  ;;  %v754_v52 = vpop.f32.mrf.mxu3 }
  0xc6   :  { %954 = vst.msk [vmem:[%s2164_s6 + $0x18] sm:$0xf] %vm947_vm2, %v889_v49  ;;  %v755_v53 = vadd.f32 %v1438_v24, %v754_v52  ;;  %v406_v56 = vpop.f32.mrf.mxu0 }
  0xc7   :  { %v676_v54 = vpop.f32.mrf.mxu1  ;;  %588 = vst.msk [vmem:[%s2163_s5 + $0x130] sm:$0xff] %vm549_vm1, %v485_v51  ;;  %v407_v58 = vadd.f32 %v1443_v25, %v406_v56  ;;  %v1258_v56 = vld [vmem:[%s2161_s0 + $0x70] sm:$0xff] }
  0xc8   :  { %v677_v55 = vadd.f32 %v1438_v24, %v676_v54  ;;  %v857_v57 = vmax.f32 %v755_v53, 0.0 }
  0xc9   :  { %557 = vst.msk [vmem:[%s2163_s5 + $0x38] sm:$0xff] %vm549_vm1, %v407_v58 }
  0xca   :  { %v826_v59 = vmax.f32 %v677_v55, 0.0  ;;  %v921_v60 = vpack.c.bf16 %v857_v57, %v857_v57  ;;  %v1274_v55 = vld [vmem:[%s2161_s0 + $0xf0] sm:$0xff] }
  0xcc   :  { %v890_v61 = vpack.c.bf16 %v826_v59, %v826_v59  ;;  %986 = vst.msk [vmem:[%s2164_s6 + $0x98] sm:$0xf] %vm947_vm2, %v921_v60  ;;  %v486_v62 = vpop.f32.mrf.mxu2 }
  0xcd   :  { %v487_v63 = vadd.f32 %v1443_v25, %v486_v62  ;;  %v756_v0 = vpop.f32.mrf.mxu3 }
  0xce   :  { %955 = vst.msk [vmem:[%s2164_s6 + $0x1c] sm:$0xf] %vm947_vm2, %v890_v61  ;;  %v757_v3 = vadd.f32 %v1438_v24, %v756_v0  ;;  %v409_v6 = vpop.f32.mrf.mxu0 }
  0xcf   :  { %v679_v4 = vpop.f32.mrf.mxu1  ;;  %589 = vst.msk [vmem:[%s2163_s5 + $0x138] sm:$0xff] %vm549_vm1, %v487_v63  ;;  %v410_v8 = vadd.f32 %v1443_v25, %v409_v6 }
  0xd0   :  { %v680_v5 = vadd.f32 %v1438_v24, %v679_v4  ;;  %v858_v7 = vmax.f32 %v757_v3, 0.0 }
  0xd1   :  { %1192 = vmatmul.msk.bf16.gmra.mxu2 %vm283_vm0, %v1272_v1  ;;  %558 = vst.msk [vmem:[%s2163_s5 + $0x40] sm:$0xff] %vm549_vm1, %v410_v8  ;;  %1176 = vmatmul.msk.bf16.gmra.mxu0 %vm283_vm0, %v1256_v2 }
  0xd2   :  { %v827_v9 = vmax.f32 %v680_v5, 0.0  ;;  %1224 = vmatmul.msk.bf16.gmra.mxu1 %vm283_vm0, %v1256_v2  ;;  %v922_v10 = vpack.c.bf16 %v858_v7, %v858_v7  ;;  %1240 = vmatmul.msk.bf16.gmra.mxu3 %vm283_vm0, %v1272_v1 }
  0xd4   :  { %v891_v11 = vpack.c.bf16 %v827_v9, %v827_v9  ;;  %987 = vst.msk [vmem:[%s2164_s6 + $0x9c] sm:$0xf] %vm947_vm2, %v922_v10  ;;  %v489_v12 = vpop.f32.mrf.mxu2 }
  0xd5   :  { %v490_v13 = vadd.f32 %v1443_v25, %v489_v12  ;;  %v759_v14 = vpop.f32.mrf.mxu3 }
  0xd6   :  { %956 = vst.msk [vmem:[%s2164_s6 + $0x20] sm:$0xf] %vm947_vm2, %v891_v11  ;;  %v760_v15 = vadd.f32 %v1438_v24, %v759_v14  ;;  %v411_v18 = vpop.f32.mrf.mxu0 }
  0xd7   :  { %v681_v16 = vpop.f32.mrf.mxu1  ;;  %590 = vst.msk [vmem:[%s2163_s5 + $0x140] sm:$0xff] %vm549_vm1, %v490_v13  ;;  %v412_v20 = vadd.f32 %v1443_v25, %v411_v18  ;;  %v1259_v18 = vld [vmem:[%s2161_s0 + $0x78] sm:$0xff] }
  0xd8   :  { %v682_v17 = vadd.f32 %v1438_v24, %v681_v16  ;;  %v859_v19 = vmax.f32 %v760_v15, 0.0 }
  0xd9   :  { %559 = vst.msk [vmem:[%s2163_s5 + $0x48] sm:$0xff] %vm549_vm1, %v412_v20 }
  0xda   :  { %v828_v21 = vmax.f32 %v682_v17, 0.0  ;;  %v923_v22 = vpack.c.bf16 %v859_v19, %v859_v19  ;;  %v1275_v17 = vld [vmem:[%s2161_s0 + $0xf8] sm:$0xff] }
  0xdc   :  { %v892_v23 = vpack.c.bf16 %v828_v21, %v828_v21  ;;  %988 = vst.msk [vmem:[%s2164_s6 + $0xa0] sm:$0xf] %vm947_vm2, %v923_v22  ;;  %v491_v26 = vpop.f32.mrf.mxu2 }
  0xdd   :  { %v492_v27 = vadd.f32 %v1443_v25, %v491_v26  ;;  %v761_v28 = vpop.f32.mrf.mxu3 }
  0xde   :  { %957 = vst.msk [vmem:[%s2164_s6 + $0x24] sm:$0xf] %vm947_vm2, %v892_v23  ;;  %v762_v31 = vadd.f32 %v1438_v24, %v761_v28  ;;  %v414_v34 = vpop.f32.mrf.mxu0 }
  0xdf   :  { %v684_v32 = vpop.f32.mrf.mxu1  ;;  %591 = vst.msk [vmem:[%s2163_s5 + $0x148] sm:$0xff] %vm549_vm1, %v492_v27  ;;  %v415_v36 = vadd.f32 %v1443_v25, %v414_v34 }
  0xe0   :  { %v685_v33 = vadd.f32 %v1438_v24, %v684_v32  ;;  %v860_v35 = vmax.f32 %v762_v31, 0.0 }
  0xe1   :  { %1193 = vmatmul.msk.bf16.gmra.mxu2 %vm283_vm0, %v1273_v29  ;;  %560 = vst.msk [vmem:[%s2163_s5 + $0x50] sm:$0xff] %vm549_vm1, %v415_v36  ;;  %1177 = vmatmul.msk.bf16.gmra.mxu0 %vm283_vm0, %v1257_v30 }
  0xe2   :  { %v829_v37 = vmax.f32 %v685_v33, 0.0  ;;  %1225 = vmatmul.msk.bf16.gmra.mxu1 %vm283_vm0, %v1257_v30  ;;  %v924_v38 = vpack.c.bf16 %v860_v35, %v860_v35  ;;  %1241 = vmatmul.msk.bf16.gmra.mxu3 %vm283_vm0, %v1273_v29 }
  0xe4   :  { %v893_v39 = vpack.c.bf16 %v829_v37, %v829_v37  ;;  %989 = vst.msk [vmem:[%s2164_s6 + $0xa4] sm:$0xf] %vm947_vm2, %v924_v38  ;;  %v494_v40 = vpop.f32.mrf.mxu2 }
  0xe5   :  { %v495_v41 = vadd.f32 %v1443_v25, %v494_v40  ;;  %v764_v42 = vpop.f32.mrf.mxu3 }
  0xe6   :  { %958 = vst.msk [vmem:[%s2164_s6 + $0x28] sm:$0xf] %vm947_vm2, %v893_v39  ;;  %v765_v43 = vadd.f32 %v1438_v24, %v764_v42  ;;  %v416_v46 = vpop.f32.mrf.mxu0 }
  0xe7   :  { %v686_v44 = vpop.f32.mrf.mxu1  ;;  %592 = vst.msk [vmem:[%s2163_s5 + $0x150] sm:$0xff] %vm549_vm1, %v495_v41  ;;  %v417_v48 = vadd.f32 %v1443_v25, %v416_v46 }
  0xe8   :  { %v687_v45 = vadd.f32 %v1438_v24, %v686_v44  ;;  %v861_v47 = vmax.f32 %v765_v43, 0.0 }
  0xe9   :  { %561 = vst.msk [vmem:[%s2163_s5 + $0x58] sm:$0xff] %vm549_vm1, %v417_v48 }
  0xea   :  { %v830_v49 = vmax.f32 %v687_v45, 0.0  ;;  %v925_v50 = vpack.c.bf16 %v861_v47, %v861_v47 }
  0xec   :  { %v894_v51 = vpack.c.bf16 %v830_v49, %v830_v49  ;;  %990 = vst.msk [vmem:[%s2164_s6 + $0xa8] sm:$0xf] %vm947_vm2, %v925_v50  ;;  %v496_v52 = vpop.f32.mrf.mxu2 }
  0xed   :  { %v497_v53 = vadd.f32 %v1443_v25, %v496_v52  ;;  %v766_v54 = vpop.f32.mrf.mxu3 }
  0xee   :  { %959 = vst.msk [vmem:[%s2164_s6 + $0x2c] sm:$0xf] %vm947_vm2, %v894_v51  ;;  %v767_v57 = vadd.f32 %v1438_v24, %v766_v54  ;;  %v419_v60 = vpop.f32.mrf.mxu0 }
  0xef   :  { %v689_v58 = vpop.f32.mrf.mxu1  ;;  %593 = vst.msk [vmem:[%s2163_s5 + $0x158] sm:$0xff] %vm549_vm1, %v497_v53  ;;  %v420_v62 = vadd.f32 %v1443_v25, %v419_v60 }
  0xf0   :  { %v690_v59 = vadd.f32 %v1438_v24, %v689_v58  ;;  %v862_v61 = vmax.f32 %v767_v57, 0.0 }
  0xf1   :  { %1194 = vmatmul.msk.bf16.gmra.mxu2 %vm283_vm0, %v1274_v55  ;;  %562 = vst.msk [vmem:[%s2163_s5 + $0x60] sm:$0xff] %vm549_vm1, %v420_v62  ;;  %1178 = vmatmul.msk.bf16.gmra.mxu0 %vm283_vm0, %v1258_v56 }
  0xf2   :  { %v831_v63 = vmax.f32 %v690_v59, 0.0  ;;  %1226 = vmatmul.msk.bf16.gmra.mxu1 %vm283_vm0, %v1258_v56  ;;  %v926_v0 = vpack.c.bf16 %v862_v61, %v862_v61  ;;  %1242 = vmatmul.msk.bf16.gmra.mxu3 %vm283_vm0, %v1274_v55 }
  0xf4   :  { %v895_v1 = vpack.c.bf16 %v831_v63, %v831_v63  ;;  %991 = vst.msk [vmem:[%s2164_s6 + $0xac] sm:$0xf] %vm947_vm2, %v926_v0  ;;  %v499_v2 = vpop.f32.mrf.mxu2 }
  0xf5   :  { %v500_v3 = vadd.f32 %v1443_v25, %v499_v2  ;;  %v769_v4 = vpop.f32.mrf.mxu3 }
  0xf6   :  { %960 = vst.msk [vmem:[%s2164_s6 + $0x30] sm:$0xf] %vm947_vm2, %v895_v1  ;;  %v770_v5 = vadd.f32 %v1438_v24, %v769_v4  ;;  %v421_v8 = vpop.f32.mrf.mxu0 }
  0xf7   :  { %v691_v6 = vpop.f32.mrf.mxu1  ;;  %594 = vst.msk [vmem:[%s2163_s5 + $0x160] sm:$0xff] %vm549_vm1, %v500_v3  ;;  %v422_v10 = vadd.f32 %v1443_v25, %v421_v8 }
  0xf8   :  { %v692_v7 = vadd.f32 %v1438_v24, %v691_v6  ;;  %v863_v9 = vmax.f32 %v770_v5, 0.0 }
  0xf9   :  { %563 = vst.msk [vmem:[%s2163_s5 + $0x68] sm:$0xff] %vm549_vm1, %v422_v10 }
  0xfa   :  { %v832_v11 = vmax.f32 %v692_v7, 0.0  ;;  %v927_v12 = vpack.c.bf16 %v863_v9, %v863_v9 }
  0xfc   :  { %v896_v13 = vpack.c.bf16 %v832_v11, %v832_v11  ;;  %992 = vst.msk [vmem:[%s2164_s6 + $0xb0] sm:$0xf] %vm947_vm2, %v927_v12  ;;  %v501_v14 = vpop.f32.mrf.mxu2 }
  0xfd   :  { %v502_v15 = vadd.f32 %v1443_v25, %v501_v14  ;;  %v771_v16 = vpop.f32.mrf.mxu3 }
  0xfe   :  { %961 = vst.msk [vmem:[%s2164_s6 + $0x34] sm:$0xf] %vm947_vm2, %v896_v13  ;;  %v772_v19 = vadd.f32 %v1438_v24, %v771_v16  ;;  %v424_v22 = vpop.f32.mrf.mxu0 }
  0xff   :  { %v694_v20 = vpop.f32.mrf.mxu1  ;;  %595 = vst.msk [vmem:[%s2163_s5 + $0x168] sm:$0xff] %vm549_vm1, %v502_v15  ;;  %v425_v26 = vadd.f32 %v1443_v25, %v424_v22 }
 0x100   :  { %v695_v21 = vadd.f32 %v1438_v24, %v694_v20  ;;  %v864_v23 = vmax.f32 %v772_v19, 0.0 }
 0x101   :  { %1195 = vmatmul.msk.bf16.gmra.mxu2 %vm283_vm0, %v1275_v17  ;;  %564 = vst.msk [vmem:[%s2163_s5 + $0x70] sm:$0xff] %vm549_vm1, %v425_v26  ;;  %1179 = vmatmul.msk.bf16.gmra.mxu0 %vm283_vm0, %v1259_v18 }
 0x102   :  { %v833_v27 = vmax.f32 %v695_v21, 0.0  ;;  %1227 = vmatmul.msk.bf16.gmra.mxu1 %vm283_vm0, %v1259_v18  ;;  %v928_v28 = vpack.c.bf16 %v864_v23, %v864_v23  ;;  %1243 = vmatmul.msk.bf16.gmra.mxu3 %vm283_vm0, %v1275_v17 }
 0x104   :  { %v897_v29 = vpack.c.bf16 %v833_v27, %v833_v27  ;;  %993 = vst.msk [vmem:[%s2164_s6 + $0xb4] sm:$0xf] %vm947_vm2, %v928_v28  ;;  %v504_v30 = vpop.f32.mrf.mxu2 }
 0x105   :  { %v505_v31 = vadd.f32 %v1443_v25, %v504_v30  ;;  %v774_v32 = vpop.f32.mrf.mxu3 }
 0x106   :  { %962 = vst.msk [vmem:[%s2164_s6 + $0x38] sm:$0xf] %vm947_vm2, %v897_v29  ;;  %v775_v33 = vadd.f32 %v1438_v24, %v774_v32  ;;  %v426_v36 = vpop.f32.mrf.mxu0 }
 0x107   :  { %v696_v34 = vpop.f32.mrf.mxu1  ;;  %596 = vst.msk [vmem:[%s2163_s5 + $0x170] sm:$0xff] %vm549_vm1, %v505_v31  ;;  %v427_v38 = vadd.f32 %v1443_v25, %v426_v36 }
 0x108   :  { %v697_v35 = vadd.f32 %v1438_v24, %v696_v34  ;;  %v865_v37 = vmax.f32 %v775_v33, 0.0 }
 0x109   :  { %565 = vst.msk [vmem:[%s2163_s5 + $0x78] sm:$0xff] %vm549_vm1, %v427_v38 }
 0x10a   :  { %v834_v39 = vmax.f32 %v697_v35, 0.0  ;;  %v929_v40 = vpack.c.bf16 %v865_v37, %v865_v37 }
 0x10c   :  { %v898_v41 = vpack.c.bf16 %v834_v39, %v834_v39  ;;  %994 = vst.msk [vmem:[%s2164_s6 + $0xb8] sm:$0xf] %vm947_vm2, %v929_v40  ;;  %v506_v42 = vpop.f32.mrf.mxu2 }
 0x10d   :  { %v507_v43 = vadd.f32 %v1443_v25, %v506_v42  ;;  %v776_v44 = vpop.f32.mrf.mxu3 }
 0x10e   :  { %963 = vst.msk [vmem:[%s2164_s6 + $0x3c] sm:$0xf] %vm947_vm2, %v898_v41  ;;  %v777_v45 = vadd.f32 %v1438_v24, %v776_v44  ;;  %v429_v48 = vpop.f32.mrf.mxu0 }
 0x10f   :  { %v699_v46 = vpop.f32.mrf.mxu1  ;;  %597 = vst.msk [vmem:[%s2163_s5 + $0x178] sm:$0xff] %vm549_vm1, %v507_v43  ;;  %v430_v50 = vadd.f32 %v1443_v25, %v429_v48 }
 0x110   :  { %v700_v47 = vadd.f32 %v1438_v24, %v699_v46  ;;  %v866_v49 = vmax.f32 %v777_v45, 0.0 }
 0x111   :  { %566 = vst.msk [vmem:[%s2163_s5 + $0x80] sm:$0xff] %vm549_vm1, %v430_v50 }
 0x112   :  { %v835_v51 = vmax.f32 %v700_v47, 0.0  ;;  %v930_v52 = vpack.c.bf16 %v866_v49, %v866_v49 }
 0x114   :  { %v899_v53 = vpack.c.bf16 %v835_v51, %v835_v51  ;;  %995 = vst.msk [vmem:[%s2164_s6 + $0xbc] sm:$0xf] %vm947_vm2, %v930_v52  ;;  %v509_v54 = vpop.f32.mrf.mxu2 }
 0x115   :  { %v510_v55 = vadd.f32 %v1443_v25, %v509_v54  ;;  %v779_v56 = vpop.f32.mrf.mxu3 }
 0x116   :  { %964 = vst.msk [vmem:[%s2164_s6 + $0x40] sm:$0xf] %vm947_vm2, %v899_v53  ;;  %v780_v57 = vadd.f32 %v1438_v24, %v779_v56  ;;  %v431_v60 = vpop.f32.mrf.mxu0 }
 0x117   :  { %v701_v58 = vpop.f32.mrf.mxu1  ;;  %598 = vst.msk [vmem:[%s2163_s5 + $0x180] sm:$0xff] %vm549_vm1, %v510_v55  ;;  %v432_v62 = vadd.f32 %v1443_v25, %v431_v60 }
 0x118   :  { %v702_v59 = vadd.f32 %v1438_v24, %v701_v58  ;;  %v867_v61 = vmax.f32 %v780_v57, 0.0 }
 0x119   :  { %567 = vst.msk [vmem:[%s2163_s5 + $0x88] sm:$0xff] %vm549_vm1, %v432_v62 }
 0x11a   :  { %v836_v63 = vmax.f32 %v702_v59, 0.0  ;;  %v931_v0 = vpack.c.bf16 %v867_v61, %v867_v61 }
 0x11c   :  { %v900_v1 = vpack.c.bf16 %v836_v63, %v836_v63  ;;  %996 = vst.msk [vmem:[%s2164_s6 + $0xc0] sm:$0xf] %vm947_vm2, %v931_v0  ;;  %v511_v2 = vpop.f32.mrf.mxu2 }
 0x11d   :  { %v512_v3 = vadd.f32 %v1443_v25, %v511_v2  ;;  %v781_v4 = vpop.f32.mrf.mxu3 }
 0x11e   :  { %965 = vst.msk [vmem:[%s2164_s6 + $0x44] sm:$0xf] %vm947_vm2, %v900_v1  ;;  %v782_v5 = vadd.f32 %v1438_v24, %v781_v4  ;;  %v434_v8 = vpop.f32.mrf.mxu0 }
 0x11f   :  { %v704_v6 = vpop.f32.mrf.mxu1  ;;  %599 = vst.msk [vmem:[%s2163_s5 + $0x188] sm:$0xff] %vm549_vm1, %v512_v3  ;;  %v435_v10 = vadd.f32 %v1443_v25, %v434_v8 }
 0x120   :  { %v705_v7 = vadd.f32 %v1438_v24, %v704_v6  ;;  %v868_v9 = vmax.f32 %v782_v5, 0.0 }
 0x121   :  { %568 = vst.msk [vmem:[%s2163_s5 + $0x90] sm:$0xff] %vm549_vm1, %v435_v10 }
 0x122   :  { %v837_v11 = vmax.f32 %v705_v7, 0.0  ;;  %v932_v12 = vpack.c.bf16 %v868_v9, %v868_v9 }
 0x124   :  { %v901_v13 = vpack.c.bf16 %v837_v11, %v837_v11  ;;  %997 = vst.msk [vmem:[%s2164_s6 + $0xc4] sm:$0xf] %vm947_vm2, %v932_v12  ;;  %v514_v14 = vpop.f32.mrf.mxu2 }
 0x125   :  { %v515_v15 = vadd.f32 %v1443_v25, %v514_v14  ;;  %v784_v16 = vpop.f32.mrf.mxu3 }
 0x126   :  { %966 = vst.msk [vmem:[%s2164_s6 + $0x48] sm:$0xf] %vm947_vm2, %v901_v13  ;;  %v785_v17 = vadd.f32 %v1438_v24, %v784_v16  ;;  %v436_v20 = vpop.f32.mrf.mxu0 }
 0x127   :  { %v706_v18 = vpop.f32.mrf.mxu1  ;;  %600 = vst.msk [vmem:[%s2163_s5 + $0x190] sm:$0xff] %vm549_vm1, %v515_v15  ;;  %v437_v22 = vadd.f32 %v1443_v25, %v436_v20 }
 0x128   :  { %v707_v19 = vadd.f32 %v1438_v24, %v706_v18  ;;  %v869_v21 = vmax.f32 %v785_v17, 0.0 }
 0x129   :  { %569 = vst.msk [vmem:[%s2163_s5 + $0x98] sm:$0xff] %vm549_vm1, %v437_v22 }
 0x12a   :  { %v838_v23 = vmax.f32 %v707_v19, 0.0  ;;  %v933_v26 = vpack.c.bf16 %v869_v21, %v869_v21 }
 0x12c   :  { %v902_v27 = vpack.c.bf16 %v838_v23, %v838_v23  ;;  %998 = vst.msk [vmem:[%s2164_s6 + $0xc8] sm:$0xf] %vm947_vm2, %v933_v26  ;;  %v516_v28 = vpop.f32.mrf.mxu2 }
 0x12d   :  { %v517_v29 = vadd.f32 %v1443_v25, %v516_v28  ;;  %v786_v30 = vpop.f32.mrf.mxu3 }
 0x12e   :  { %967 = vst.msk [vmem:[%s2164_s6 + $0x4c] sm:$0xf] %vm947_vm2, %v902_v27  ;;  %v787_v31 = vadd.f32 %v1438_v24, %v786_v30  ;;  %v439_v34 = vpop.f32.mrf.mxu0 }
 0x12f   :  { %v709_v32 = vpop.f32.mrf.mxu1  ;;  %601 = vst.msk [vmem:[%s2163_s5 + $0x198] sm:$0xff] %vm549_vm1, %v517_v29  ;;  %v440_v36 = vadd.f32 %v1443_v25, %v439_v34 }
 0x130   :  { %v710_v33 = vadd.f32 %v1438_v24, %v709_v32  ;;  %v870_v35 = vmax.f32 %v787_v31, 0.0 }
 0x131   :  { %570 = vst.msk [vmem:[%s2163_s5 + $0xa0] sm:$0xff] %vm549_vm1, %v440_v36 }
 0x132   :  { %v839_v37 = vmax.f32 %v710_v33, 0.0  ;;  %v934_v38 = vpack.c.bf16 %v870_v35, %v870_v35 }
 0x134   :  { %v903_v39 = vpack.c.bf16 %v839_v37, %v839_v37  ;;  %999 = vst.msk [vmem:[%s2164_s6 + $0xcc] sm:$0xf] %vm947_vm2, %v934_v38  ;;  %v519_v40 = vpop.f32.mrf.mxu2 }
 0x135   :  { %v520_v41 = vadd.f32 %v1443_v25, %v519_v40  ;;  %v789_v42 = vpop.f32.mrf.mxu3 }
 0x136   :  { %968 = vst.msk [vmem:[%s2164_s6 + $0x50] sm:$0xf] %vm947_vm2, %v903_v39  ;;  %v790_v43 = vadd.f32 %v1438_v24, %v789_v42  ;;  %v441_v46 = vpop.f32.mrf.mxu0 }
 0x137   :  { %v711_v44 = vpop.f32.mrf.mxu1  ;;  %602 = vst.msk [vmem:[%s2163_s5 + $0x1a0] sm:$0xff] %vm549_vm1, %v520_v41  ;;  %v442_v48 = vadd.f32 %v1443_v25, %v441_v46 }
 0x138   :  { %v712_v45 = vadd.f32 %v1438_v24, %v711_v44  ;;  %v871_v47 = vmax.f32 %v790_v43, 0.0 }
 0x139   :  { %571 = vst.msk [vmem:[%s2163_s5 + $0xa8] sm:$0xff] %vm549_vm1, %v442_v48 }
 0x13a   :  { %v840_v49 = vmax.f32 %v712_v45, 0.0  ;;  %v935_v50 = vpack.c.bf16 %v871_v47, %v871_v47 }
 0x13c   :  { %v904_v51 = vpack.c.bf16 %v840_v49, %v840_v49  ;;  %1000 = vst.msk [vmem:[%s2164_s6 + $0xd0] sm:$0xf] %vm947_vm2, %v935_v50  ;;  %v521_v52 = vpop.f32.mrf.mxu2 }
 0x13d   :  { %v522_v53 = vadd.f32 %v1443_v25, %v521_v52  ;;  %v791_v54 = vpop.f32.mrf.mxu3 }
 0x13e   :  { %969 = vst.msk [vmem:[%s2164_s6 + $0x54] sm:$0xf] %vm947_vm2, %v904_v51  ;;  %v792_v55 = vadd.f32 %v1438_v24, %v791_v54  ;;  %v444_v58 = vpop.f32.mrf.mxu0 }
 0x13f   :  { %v714_v56 = vpop.f32.mrf.mxu1  ;;  %603 = vst.msk [vmem:[%s2163_s5 + $0x1a8] sm:$0xff] %vm549_vm1, %v522_v53  ;;  %v445_v60 = vadd.f32 %v1443_v25, %v444_v58 }
 0x140   :  { %v715_v57 = vadd.f32 %v1438_v24, %v714_v56  ;;  %v872_v59 = vmax.f32 %v792_v55, 0.0 }
 0x141   :  { %572 = vst.msk [vmem:[%s2163_s5 + $0xb0] sm:$0xff] %vm549_vm1, %v445_v60 }
 0x142   :  { %v841_v61 = vmax.f32 %v715_v57, 0.0  ;;  %v936_v62 = vpack.c.bf16 %v872_v59, %v872_v59 }
 0x144   :  { %v905_v63 = vpack.c.bf16 %v841_v61, %v841_v61  ;;  %1001 = vst.msk [vmem:[%s2164_s6 + $0xd4] sm:$0xf] %vm947_vm2, %v936_v62  ;;  %v524_v0 = vpop.f32.mrf.mxu2 }
 0x145   :  { %v525_v1 = vadd.f32 %v1443_v25, %v524_v0  ;;  %v794_v2 = vpop.f32.mrf.mxu3 }
 0x146   :  { %970 = vst.msk [vmem:[%s2164_s6 + $0x58] sm:$0xf] %vm947_vm2, %v905_v63  ;;  %v795_v3 = vadd.f32 %v1438_v24, %v794_v2  ;;  %v446_v6 = vpop.f32.mrf.mxu0 }
 0x147   :  { %v716_v4 = vpop.f32.mrf.mxu1  ;;  %604 = vst.msk [vmem:[%s2163_s5 + $0x1b0] sm:$0xff] %vm549_vm1, %v525_v1  ;;  %v447_v8 = vadd.f32 %v1443_v25, %v446_v6 }
 0x148   :  { %v717_v5 = vadd.f32 %v1438_v24, %v716_v4  ;;  %v873_v7 = vmax.f32 %v795_v3, 0.0 }
 0x149   :  { %573 = vst.msk [vmem:[%s2163_s5 + $0xb8] sm:$0xff] %vm549_vm1, %v447_v8 }
 0x14a   :  { %v842_v9 = vmax.f32 %v717_v5, 0.0  ;;  %v937_v10 = vpack.c.bf16 %v873_v7, %v873_v7 }
 0x14c   :  { %v906_v11 = vpack.c.bf16 %v842_v9, %v842_v9  ;;  %1002 = vst.msk [vmem:[%s2164_s6 + $0xd8] sm:$0xf] %vm947_vm2, %v937_v10  ;;  %v526_v12 = vpop.f32.mrf.mxu2 }
 0x14d   :  { %v527_v13 = vadd.f32 %v1443_v25, %v526_v12  ;;  %v796_v14 = vpop.f32.mrf.mxu3  ;;  %v1294_v12 = vld [vmem:[%s2160_s4] ss:$0 sm:$0xff] }
 0x14e   :  { %971 = vst.msk [vmem:[%s2164_s6 + $0x5c] sm:$0xf] %vm947_vm2, %v906_v11  ;;  %v797_v15 = vadd.f32 %v1438_v24, %v796_v14  ;;  %v449_v18 = vpop.f32.mrf.mxu0 }
 0x14f   :  { %v719_v16 = vpop.f32.mrf.mxu1  ;;  %605 = vst.msk [vmem:[%s2163_s5 + $0x1b8] sm:$0xff] %vm549_vm1, %v527_v13  ;;  %v450_v20 = vadd.f32 %v1443_v25, %v449_v18  ;;  %v1295_v18 = vld [vmem:[%s2162_s2] ss:$0 sm:$0xff] }
 0x150   :  { %v720_v17 = vadd.f32 %v1438_v24, %v719_v16  ;;  %v874_v19 = vmax.f32 %v797_v15, 0.0 }
 0x151   :  { %574 = vst.msk [vmem:[%s2163_s5 + $0xc0] sm:$0xff] %vm549_vm1, %v450_v20 }
 0x152   :  { %v843_v21 = vmax.f32 %v720_v17, 0.0  ;;  %v938_v22 = vpack.c.bf16 %v874_v19, %v874_v19 }
 0x154   :  { %v907_v23 = vpack.c.bf16 %v843_v21, %v843_v21  ;;  %1003 = vst.msk [vmem:[%s2164_s6 + $0xdc] sm:$0xf] %vm947_vm2, %v938_v22  ;;  %v529_v26 = vpop.f32.mrf.mxu2 }
 0x155   :  { %v530_v27 = vadd.f32 %v1443_v25, %v529_v26  ;;  %v799_v28 = vpop.f32.mrf.mxu3 }
 0x156   :  { %972 = vst.msk [vmem:[%s2164_s6 + $0x60] sm:$0xf] %vm947_vm2, %v907_v23  ;;  %v800_v29 = vadd.f32 %v1438_v24, %v799_v28  ;;  %v451_v32 = vpop.f32.mrf.mxu0 }
 0x157   :  { %v721_v30 = vpop.f32.mrf.mxu1  ;;  %606 = vst.msk [vmem:[%s2163_s5 + $0x1c0] sm:$0xff] %vm549_vm1, %v530_v27  ;;  %v452_v34 = vadd.f32 %v1443_v25, %v451_v32 }
 0x158   :  { %v722_v31 = vadd.f32 %v1438_v24, %v721_v30  ;;  %v875_v33 = vmax.f32 %v800_v29, 0.0 }
 0x159   :  { %575 = vst.msk [vmem:[%s2163_s5 + $0xc8] sm:$0xff] %vm549_vm1, %v452_v34 }
 0x15a   :  { %v844_v35 = vmax.f32 %v722_v31, 0.0  ;;  %v939_v36 = vpack.c.bf16 %v875_v33, %v875_v33 }
 0x15c   :  { %v908_v37 = vpack.c.bf16 %v844_v35, %v844_v35  ;;  %1004 = vst.msk [vmem:[%s2164_s6 + $0xe0] sm:$0xf] %vm947_vm2, %v939_v36  ;;  %v531_v38 = vpop.f32.mrf.mxu2 }
 0x15d   :  { %v532_v39 = vadd.f32 %v1443_v25, %v531_v38  ;;  %v801_v40 = vpop.f32.mrf.mxu3 }
 0x15e   :  { %973 = vst.msk [vmem:[%s2164_s6 + $0x64] sm:$0xf] %vm947_vm2, %v908_v37  ;;  %v802_v41 = vadd.f32 %v1438_v24, %v801_v40  ;;  %v454_v44 = vpop.f32.mrf.mxu0 }
 0x15f   :  { %v724_v42 = vpop.f32.mrf.mxu1  ;;  %607 = vst.msk [vmem:[%s2163_s5 + $0x1c8] sm:$0xff] %vm549_vm1, %v532_v39  ;;  %v455_v46 = vadd.f32 %v1443_v25, %v454_v44 }
 0x160   :  { %v725_v43 = vadd.f32 %v1438_v24, %v724_v42  ;;  %v876_v45 = vmax.f32 %v802_v41, 0.0 }
 0x161   :  { %576 = vst.msk [vmem:[%s2163_s5 + $0xd0] sm:$0xff] %vm549_vm1, %v455_v46 }
 0x162   :  { %v845_v47 = vmax.f32 %v725_v43, 0.0  ;;  %v940_v48 = vpack.c.bf16 %v876_v45, %v876_v45 }
 0x164   :  { %v909_v49 = vpack.c.bf16 %v845_v47, %v845_v47  ;;  %1005 = vst.msk [vmem:[%s2164_s6 + $0xe4] sm:$0xf] %vm947_vm2, %v940_v48  ;;  %v534_v50 = vpop.f32.mrf.mxu2 }
 0x165   :  { %v535_v51 = vadd.f32 %v1443_v25, %v534_v50  ;;  %v804_v52 = vpop.f32.mrf.mxu3 }
 0x166   :  { %974 = vst.msk [vmem:[%s2164_s6 + $0x68] sm:$0xf] %vm947_vm2, %v909_v49  ;;  %v805_v53 = vadd.f32 %v1438_v24, %v804_v52  ;;  %v456_v56 = vpop.f32.mrf.mxu0 }
 0x167   :  { %v726_v54 = vpop.f32.mrf.mxu1  ;;  %608 = vst.msk [vmem:[%s2163_s5 + $0x1d0] sm:$0xff] %vm549_vm1, %v535_v51  ;;  %v457_v58 = vadd.f32 %v1443_v25, %v456_v56 }
 0x168   :  { %v727_v55 = vadd.f32 %v1438_v24, %v726_v54  ;;  %v877_v57 = vmax.f32 %v805_v53, 0.0 }
 0x169   :  { %577 = vst.msk [vmem:[%s2163_s5 + $0xd8] sm:$0xff] %vm549_vm1, %v457_v58 }
 0x16a   :  { %v846_v59 = vmax.f32 %v727_v55, 0.0  ;;  %v941_v60 = vpack.c.bf16 %v877_v57, %v877_v57 }
 0x16c   :  { %v910_v61 = vpack.c.bf16 %v846_v59, %v846_v59  ;;  %1006 = vst.msk [vmem:[%s2164_s6 + $0xe8] sm:$0xf] %vm947_vm2, %v941_v60  ;;  %v536_v62 = vpop.f32.mrf.mxu2 }
 0x16d   :  { %v537_v63 = vadd.f32 %v1443_v25, %v536_v62  ;;  %v806_v0 = vpop.f32.mrf.mxu3 }
 0x16e   :  { %975 = vst.msk [vmem:[%s2164_s6 + $0x6c] sm:$0xf] %vm947_vm2, %v910_v61  ;;  %v807_v1 = vadd.f32 %v1438_v24, %v806_v0  ;;  %v459_v4 = vpop.f32.mrf.mxu0 }
 0x16f   :  { %v729_v2 = vpop.f32.mrf.mxu1  ;;  %609 = vst.msk [vmem:[%s2163_s5 + $0x1d8] sm:$0xff] %vm549_vm1, %v537_v63  ;;  %v460_v6 = vadd.f32 %v1443_v25, %v459_v4 }
 0x170   :  { %v730_v3 = vadd.f32 %v1438_v24, %v729_v2  ;;  %v878_v5 = vmax.f32 %v807_v1, 0.0 }
 0x171   :  { %578 = vst.msk [vmem:[%s2163_s5 + $0xe0] sm:$0xff] %vm549_vm1, %v460_v6 }
 0x172   :  { %v847_v7 = vmax.f32 %v730_v3, 0.0  ;;  %v942_v8 = vpack.c.bf16 %v878_v5, %v878_v5 }
 0x174   :  { %v911_v9 = vpack.c.bf16 %v847_v7, %v847_v7  ;;  %1007 = vst.msk [vmem:[%s2164_s6 + $0xec] sm:$0xf] %vm947_vm2, %v942_v8  ;;  %v539_v10 = vpop.f32.mrf.mxu2 }
 0x175   :  { %v540_v24 = vadd.f32 %v1443_v25, %v539_v10  ;;  %v809_v11 = vpop.f32.mrf.mxu3 }
 0x176   :  { %976 = vst.msk [vmem:[%s2164_s6 + $0x70] sm:$0xf] %vm947_vm2, %v911_v9  ;;  %v810_v13 = vadd.f32 %v1294_v12, %v809_v11  ;;  %v461_v16 = vpop.f32.mrf.mxu0 }
 0x177   :  { %v731_v14 = vpop.f32.mrf.mxu1  ;;  %610 = vst.msk [vmem:[%s2163_s5 + $0x1e0] sm:$0xff] %vm549_vm1, %v540_v24  ;;  %v462_v25 = vadd.f32 %v1295_v18, %v461_v16 }
 0x178   :  { %v732_v15 = vadd.f32 %v1294_v12, %v731_v14  ;;  %v879_v17 = vmax.f32 %v810_v13, 0.0 }
 0x179   :  { %579 = vst.msk [vmem:[%s2163_s5 + $0xe8] sm:$0xff] %vm549_vm1, %v462_v25 }
 0x17a   :  { %v848_v19 = vmax.f32 %v732_v15, 0.0  ;;  %v943_v20 = vpack.c.bf16 %v879_v17, %v879_v17 }
 0x17c   :  { %v912_v21 = vpack.c.bf16 %v848_v19, %v848_v19  ;;  %1008 = vst.msk [vmem:[%s2164_s6 + $0xf0] sm:$0xf] %vm947_vm2, %v943_v20  ;;  %v541_v22 = vpop.f32.mrf.mxu2 }
 0x17d   :  { %v542_v23 = vadd.f32 %v1295_v18, %v541_v22  ;;  %v811_v26 = vpop.f32.mrf.mxu3 }
 0x17e   :  { %977 = vst.msk [vmem:[%s2164_s6 + $0x74] sm:$0xf] %vm947_vm2, %v912_v21  ;;  %v812_v27 = vadd.f32 %v1294_v12, %v811_v26  ;;  %v464_v30 = vpop.f32.mrf.mxu0 }
 0x17f   :  { %v734_v28 = vpop.f32.mrf.mxu1  ;;  %611 = vst.msk [vmem:[%s2163_s5 + $0x1e8] sm:$0xff] %vm549_vm1, %v542_v23  ;;  %v465_v32 = vadd.f32 %v1295_v18, %v464_v30 }
 0x180   :  { %v735_v29 = vadd.f32 %v1294_v12, %v734_v28  ;;  %v880_v31 = vmax.f32 %v812_v27, 0.0 }
 0x181   :  { %580 = vst.msk [vmem:[%s2163_s5 + $0xf0] sm:$0xff] %vm549_vm1, %v465_v32 }
 0x182   :  { %v849_v33 = vmax.f32 %v735_v29, 0.0  ;;  %v944_v34 = vpack.c.bf16 %v880_v31, %v880_v31 }
 0x184   :  { %v913_v35 = vpack.c.bf16 %v849_v33, %v849_v33  ;;  %1009 = vst.msk [vmem:[%s2164_s6 + $0xf4] sm:$0xf] %vm947_vm2, %v944_v34  ;;  %v544_v36 = vpop.f32.mrf.mxu2 }
 0x185   :  { %v545_v37 = vadd.f32 %v1295_v18, %v544_v36  ;;  %v814_v38 = vpop.f32.mrf.mxu3 }
 0x186   :  { %978 = vst.msk [vmem:[%s2164_s6 + $0x78] sm:$0xf] %vm947_vm2, %v913_v35  ;;  %v815_v39 = vadd.f32 %v1294_v12, %v814_v38  ;;  %v466_v42 = vpop.f32.mrf.mxu0 }
 0x187   :  { %v736_v40 = vpop.f32.mrf.mxu1  ;;  %612 = vst.msk [vmem:[%s2163_s5 + $0x1f0] sm:$0xff] %vm549_vm1, %v545_v37  ;;  %v467_v44 = vadd.f32 %v1295_v18, %v466_v42 }
 0x188   :  { %v737_v41 = vadd.f32 %v1294_v12, %v736_v40  ;;  %v881_v43 = vmax.f32 %v815_v39, 0.0 }
 0x189   :  { %581 = vst.msk [vmem:[%s2163_s5 + $0xf8] sm:$0xff] %vm549_vm1, %v467_v44 }
 0x18a   :  { %v850_v45 = vmax.f32 %v737_v41, 0.0  ;;  %v945_v46 = vpack.c.bf16 %v881_v43, %v881_v43 }
 0x18c   :  { %v914_v47 = vpack.c.bf16 %v850_v45, %v850_v45  ;;  %1010 = vst.msk [vmem:[%s2164_s6 + $0xf8] sm:$0xf] %vm947_vm2, %v945_v46  ;;  %v546_v48 = vpop.f32.mrf.mxu2 }
 0x18d   :  { %v547_v49 = vadd.f32 %v1295_v18, %v546_v48  ;;  %v816_v50 = vpop.f32.mrf.mxu3 }
 0x18e   :  { %979 = vst.msk [vmem:[%s2164_s6 + $0x7c] sm:$0xf] %vm947_vm2, %v914_v47  ;;  %v817_v51 = vadd.f32 %v1294_v12, %v816_v50 }
 0x18f   :  { %613 = vst.msk [vmem:[%s2163_s5 + $0x1f8] sm:$0xff] %vm549_vm1, %v547_v49 }
 0x190   :  { %v882_v52 = vmax.f32 %v817_v51, 0.0 }
 0x192   :  { %v946_v53 = vpack.c.bf16 %v882_v52, %v882_v52 }
 0x194   :  { %1011 = vst.msk [vmem:[%s2164_s6 + $0xfc] sm:$0xf] %vm947_vm2, %v946_v53 }

// kernel: upsampling_bottleneck.3
= control target key start
LH: loop header
LB: loop body
LE: loop exit
PB: predicated region body
PF: predicated region fallthrough
CT: control target
= control target key end

     0   :  { %s3242_s15 = smov 32   ;;  %vm287_vm9 = vcmask 523264   ;;  %s3243_s12 = smov 64   ;;  %s6628_s5 = inlined_call_operand.vmem [shape: f32[512,32], index: 5, kind: input, shape index: {}]   ;;  %s6629_s6 = inlined_call_operand.vmem [shape: s32[512,32], index: 6, kind: input, shape index: {}]   ;;  %s6630_s1 = inlined_call_operand.vmem [shape: bf16[64,64], index: 1, kind: input, shape index: {}]   ;;  %s6631_s0 = inlined_call_operand.vmem [shape: bf16[512,64], index: 0, kind: input, shape index: {}]   ;;  %s6632_s2 = inlined_call_operand.vmem [shape: f32[1,64], index: 2, kind: input, shape index: {}]   ;;  %s6633_s3 = inlined_call_operand.vmem [shape: bf16[64,128], index: 3, kind: input, shape index: {}]   ;;  %s6634_s4 = inlined_call_operand.vmem [shape: f32[1,128], index: 4, kind: input, shape index: {}]   ;;  %s6635_s7 = inlined_call_operand.vmem [shape: f32[512,128], index: 7, kind: output, shape index: {}]  }
   0x1   :  { %v3288_v0 = vld [vmem:[%s6628_s5 + $0x20] sm:$0xff]  ;;  %v3298_v2 = vld [vmem:[%s6628_s5 + $0x10] sm:$0xff]  ;;  %v3071_v7 = vld [vmem:[%s6630_s1 + $0x18] sm:$0xff]  ;;  %s3244_s19 = smov 96  }
   0x2   :  { %v3293_v1 = vld [vmem:[%s6629_s6 + $0x20] sm:$0xff]  ;;  %v3304_v3 = vld [vmem:[%s6629_s6 + $0x10] sm:$0xff]  ;;  %v3328_v10 = vld [vmem:[%s6629_s6 + $0x28] sm:$0xff]  ;;  %388 = vmatpush.bf16.msra.mxu0 %v3071_v7  ;;  %3076 = vmatpush.bf16.msra.mxu2 %v3071_v7 }
   0x3   :  { %vm1274_vm0 = vcmp.eq.s32.totalorder %v3293_v1, 1  ;;  %v3309_v4 = vld [vmem:[%s6628_s5] sm:$0xff]  ;;  %vm1272_vm1 = vcmp.eq.s32.totalorder %v3304_v3, 1  ;;  %v3333_v11 = vld [vmem:[%s6629_s6 + $0x18] sm:$0xff]  ;;  %v3340_v12 = vld [vmem:[%s6629_s6 + $0x8] sm:$0xff]  ;;  %vm1275_vm3 = vcmp.eq.s32.totalorder %v3328_v10, 1 }
   0x4   :  { %v3314_v5 = vld [vmem:[%s6629_s6] sm:$0xff]  ;;  %v1338_v6 = vsel %vm1274_vm0, %v3288_v0, 0.0  ;;  %v1336_v8 = vsel %vm1272_vm1, %v3298_v2, 0.0  ;;  %v3070_v13 = vld [vmem:[%s6630_s1 + $0x10] sm:$0xff]  ;;  %v3348_v14 = vld [vmem:[%s6628_s5 + $0x28] sm:$0xff]  ;;  %vm1273_vm4 = vcmp.eq.s32.totalorder %v3333_v11, 1 }
   0x5   :  { %vm1270_vm2 = vcmp.eq.s32.totalorder %v3314_v5, 1  ;;  %1726 = vrot.lane.b32.xlu2 %v1338_v6, %s3242_s15  ;;  %1722 = vrot.lane.b32.xlu1 %v1336_v8, %s3242_s15  ;;  %v3354_v15 = vld [vmem:[%s6628_s5 + $0x18] sm:$0xff]  ;;  %v3360_v16 = vld [vmem:[%s6628_s5 + $0x8] sm:$0xff]  ;;  %vm1271_vm5 = vcmp.eq.s32.totalorder %v3340_v12, 1  ;;  %v1339_v17 = vsel %vm1275_vm3, %v3348_v14, 0.0 }
   0x6   :  { %v1334_v9 = vsel %vm1270_vm2, %v3309_v4, 0.0  ;;  %389 = vmatpush.bf16.msra.mxu0 %v3070_v13  ;;  %v1337_v18 = vsel %vm1273_vm4, %v3354_v15, 0.0  ;;  %v1335_v19 = vsel %vm1271_vm5, %v3360_v16, 0.0  ;;  %v3069_v20 = vld [vmem:[%s6630_s1 + $0x8] sm:$0xff]  ;;  %3077 = vmatpush.bf16.msra.mxu2 %v3070_v13  ;;  %v3372_v21 = vld [vmem:[%s6629_s6 + $0x40] sm:$0xff]  ;;  %v3378_v22 = vld [vmem:[%s6629_s6 + $0x38] sm:$0xff] }
   0x7   :  { %1718 = vrot.lane.b32.xlu0 %v1334_v9, %s3242_s15  ;;  %v3385_v23 = vld [vmem:[%s6629_s6 + $0x30] sm:$0xff]  ;;  %v3068_v24 = vld [vmem:[%s6630_s1] sm:$0xff]  ;;  %vm1278_vm6 = vcmp.eq.s32.totalorder %v3372_v21, 1  ;;  %v3399_v26 = vld [vmem:[%s6628_s5 + $0x38] sm:$0xff]  ;;  %vm1277_vm7 = vcmp.eq.s32.totalorder %v3378_v22, 1 }
   0x8   :  { %v3393_v25 = vld [vmem:[%s6628_s5 + $0x40] sm:$0xff]  ;;  %v3405_v27 = vld [vmem:[%s6628_s5 + $0x30] sm:$0xff]  ;;  %vm1276_vm8 = vcmp.eq.s32.totalorder %v3385_v23, 1  ;;  %v1341_v30 = vsel %vm1277_vm7, %v3399_v26, 0.0  ;;  %v3417_v32 = vld [vmem:[%s6629_s6 + $0x58] sm:$0xff] }
   0x9   :  { %v3036_v28 = vld [vmem:[%s6631_s0] sm:$0xff]  ;;  %v1342_v29 = vsel %vm1278_vm6, %v3393_v25, 0.0  ;;  %v1340_v31 = vsel %vm1276_vm8, %v3405_v27, 0.0  ;;  %v3423_v33 = vld [vmem:[%s6629_s6 + $0x50] sm:$0xff]  ;;  %v3430_v34 = vld [vmem:[%s6629_s6 + $0x48] sm:$0xff]  ;;  %vm1281_vm10 = vcmp.eq.s32.totalorder %v3417_v32, 1 }
   0xa   :  { %390 = vmatpush.bf16.msra.mxu0 %v3069_v20  ;;  %3078 = vmatpush.bf16.msra.mxu2 %v3069_v20  ;;  %v3436_v35 = vld [vmem:[%s6628_s5 + $0x58] sm:$0xff]  ;;  %v3442_v36 = vld [vmem:[%s6628_s5 + $0x50] sm:$0xff]  ;;  %vm1280_vm11 = vcmp.eq.s32.totalorder %v3423_v33, 1  ;;  %v3448_v37 = vld [vmem:[%s6628_s5 + $0x48] sm:$0xff]  ;;  %vm1279_vm12 = vcmp.eq.s32.totalorder %v3430_v34, 1 }
   0xb   :  { %v1345_v38 = vsel %vm1281_vm10, %v3436_v35, 0.0  ;;  %v1344_v39 = vsel %vm1280_vm11, %v3442_v36, 0.0  ;;  %v1343_v40 = vsel %vm1279_vm12, %v3448_v37, 0.0  ;;  %v3457_v41 = vld [vmem:[%s6629_s6 + $0x70] sm:$0xff]  ;;  %v3463_v42 = vld [vmem:[%s6629_s6 + $0x68] sm:$0xff]  ;;  %v3469_v43 = vld [vmem:[%s6629_s6 + $0x60] sm:$0xff] }
   0xc   :  { %v3475_v44 = vld [vmem:[%s6628_s5 + $0x70] sm:$0xff]  ;;  %vm1284_vm13 = vcmp.eq.s32.totalorder %v3457_v41, 1  ;;  %v3481_v45 = vld [vmem:[%s6628_s5 + $0x68] sm:$0xff]  ;;  %vm1283_vm14 = vcmp.eq.s32.totalorder %v3463_v42, 1  ;;  %v3487_v46 = vld [vmem:[%s6628_s5 + $0x60] sm:$0xff]  ;;  %vm1282_vm15 = vcmp.eq.s32.totalorder %v3469_v43, 1 }
   0xd   :  { %1728 = vrot.lane.b32.xlu2 %v1339_v17, %s3242_s15  ;;  %1724 = vrot.lane.b32.xlu1 %v1337_v18, %s3242_s15  ;;  %v3037_v47 = vld [vmem:[%s6631_s0 + $0x8] sm:$0xff]  ;;  %v1348_v48 = vsel %vm1284_vm13, %v3475_v44, 0.0  ;;  %v1347_v49 = vsel %vm1283_vm14, %v3481_v45, 0.0  ;;  %v1346_v50 = vsel %vm1282_vm15, %v3487_v46, 0.0  ;;  %v3505_v52 = vld [vmem:[%s6629_s6 + $0x80] sm:$0xff] }
   0xe   :  { %391 = vmatpush.bf16.msra.mxu0 %v3068_v24  ;;  %3079 = vmatpush.bf16.msra.mxu2 %v3068_v24  ;;  %v3499_v51 = vld [vmem:[%s6629_s6 + $0x88] sm:$0xff]  ;;  %v3512_v53 = vld [vmem:[%s6629_s6 + $0x78] sm:$0xff]  ;;  %v3052_v55 = vld [vmem:[%s6631_s0 + $0x80] sm:$0xff]  ;;  %vm1286_vm1 = vcmp.eq.s32.totalorder %v3505_v52, 1 }
   0xf   :  { %1720 = vrot.lane.b32.xlu0 %v1335_v19, %s3242_s15  ;;  %v3518_v54 = vld [vmem:[%s6628_s5 + $0x88] sm:$0xff]  ;;  %vm1287_vm0 = vcmp.eq.s32.totalorder %v3499_v51, 1  ;;  %v3527_v56 = vld [vmem:[%s6628_s5 + $0x80] sm:$0xff]  ;;  %v3533_v57 = vld [vmem:[%s6628_s5 + $0x78] sm:$0xff]  ;;  %vm1285_vm2 = vcmp.eq.s32.totalorder %v3512_v53, 1 }
  0x10   :  { %v1351_v58 = vsel %vm1287_vm0, %v3518_v54, 0.0  ;;  %v1350_v59 = vsel %vm1286_vm1, %v3527_v56, 0.0  ;;  %v1349_v60 = vsel %vm1285_vm2, %v3533_v57, 0.0  ;;  %v3543_v61 = vld [vmem:[%s6629_s6 + $0xa0] sm:$0xff]  ;;  %v3549_v62 = vld [vmem:[%s6629_s6 + $0x98] sm:$0xff]  ;;  %v3555_v63 = vld [vmem:[%s6629_s6 + $0x90] sm:$0xff] }
  0x11   :  { %2956 = vmatmul.msk.bf16.vlgmr.msra.gmra.mxu0 %vm287_vm9, %v3036_v28  ;;  %2972 = vmatmul.msk.bf16.vlgmr.msra.gmra.mxu2 %vm287_vm9, %v3052_v55  ;;  %v3561_v6 = vld [vmem:[%s6628_s5 + $0xa0] sm:$0xff]  ;;  %vm1290_vm3 = vcmp.eq.s32.totalorder %v3543_v61, 1  ;;  %v3567_v7 = vld [vmem:[%s6628_s5 + $0x98] sm:$0xff]  ;;  %vm1289_vm4 = vcmp.eq.s32.totalorder %v3549_v62, 1  ;;  %v3573_v8 = vld [vmem:[%s6628_s5 + $0x90] sm:$0xff]  ;;  %vm1288_vm5 = vcmp.eq.s32.totalorder %v3555_v63, 1 }
  0x12   :  { %v3038_v9 = vld [vmem:[%s6631_s0 + $0x10] sm:$0xff]  ;;  %v1354_v13 = vsel %vm1290_vm3, %v3561_v6, 0.0  ;;  %v1353_v17 = vsel %vm1289_vm4, %v3567_v7, 0.0  ;;  %v1352_v18 = vsel %vm1288_vm5, %v3573_v8, 0.0  ;;  %v3585_v19 = vld [vmem:[%s6629_s6 + $0xb8] sm:$0xff]  ;;  %v3598_v24 = vld [vmem:[%s6629_s6 + $0xa8] sm:$0xff] }
  0x13   :  { %v3591_v20 = vld [vmem:[%s6629_s6 + $0xb0] sm:$0xff]  ;;  %v3604_v28 = vld [vmem:[%s6628_s5 + $0xb8] sm:$0xff]  ;;  %vm1293_vm6 = vcmp.eq.s32.totalorder %v3585_v19, 1  ;;  %vm1291_vm8 = vcmp.eq.s32.totalorder %v3598_v24, 1  ;;  %v3653_v55 = vld [vmem:[%s6628_s5 + $0xc8] sm:$0xff] }
  0x14   :  { %6784 = vst [vmem:[#allocation2_spill] sm:$0xff] %v3604_v28  ;;  %vm1292_vm7 = vcmp.eq.s32.totalorder %v3591_v20, 1 }
  0x15   :  { %1734 = vrot.lane.b32.xlu2 %v1342_v29, %s3242_s15  ;;  %1732 = vrot.lane.b32.xlu1 %v1341_v30, %s3242_s15  ;;  %v3053_v29 = vld [vmem:[%s6631_s0 + $0x88] sm:$0xff]  ;;  %v3613_v30 = vld [vmem:[%s6628_s5 + $0xb0] sm:$0xff] }
  0x17   :  { %1730 = vrot.lane.b32.xlu0 %v1340_v31, %s3242_s15  ;;  %v3619_v31 = vld [vmem:[%s6628_s5 + $0xa8] sm:$0xff] }
  0x1d   :  { %1740 = vrot.lane.b32.xlu2 %v1345_v38, %s3242_s15  ;;  %1738 = vrot.lane.b32.xlu1 %v1344_v39, %s3242_s15  ;;  %v1357_v38 = vsel %vm1293_vm6, %v3604_v28, 0.0  ;;  %v1356_v39 = vsel %vm1292_vm7, %v3613_v30, 0.0 }
  0x1f   :  { %1736 = vrot.lane.b32.xlu0 %v1343_v40, %s3242_s15  ;;  %v1355_v40 = vsel %vm1291_vm8, %v3619_v31, 0.0 }
  0x21   :  { %2957 = vmatmul.msk.bf16.gmra.mxu0 %vm287_vm9, %v3037_v47  ;;  %2973 = vmatmul.msk.bf16.gmra.mxu2 %vm287_vm9, %v3053_v29  ;;  %v3629_v47 = vld [vmem:[%s6629_s6 + $0xd0] sm:$0xff]  ;;  %v3684_v29 = vld [vmem:[%s6629_s6 + $0xd8] sm:$0xff] }
  0x22   :  { %6785 = vst [vmem:[#allocation3_spill] sm:$0xff] %v3629_v47  ;;  %vm1296_vm10 = vcmp.eq.s32.totalorder %v3629_v47, 1  ;;  %vm1297_vm15 = vcmp.eq.s32.totalorder %v3684_v29, 1  ;;  %v3807_v47 = vld [vmem:[%s6629_s6 + $0x128] sm:$0xff] }
  0x23   :  { %6790 = vst [vmem:[#allocation8_spill] sm:$0xff] %v3684_v29  ;;  %vm1307_vm7 = vcmp.eq.s32.totalorder %v3807_v47, 1  ;;  %v3994_v29 = vld [vmem:[%s6629_s6 + $0x190] sm:$0xff] }
  0x24   :  { %6807 = vst [vmem:[#allocation25_spill] sm:$0xff] %v3807_v47  ;;  %v3845_v47 = vld [vmem:[%s6629_s6 + $0x148] sm:$0xff] }
  0x25   :  { %1746 = vrot.lane.b32.xlu2 %v1348_v48, %s3242_s15  ;;  %1744 = vrot.lane.b32.xlu1 %v1347_v49, %s3242_s15  ;;  %v3635_v48 = vld [vmem:[%s6629_s6 + $0xc8] sm:$0xff]  ;;  %v3641_v49 = vld [vmem:[%s6629_s6 + $0xc0] sm:$0xff]  ;;  %6813 = vst [vmem:[#allocation31_spill] sm:$0xff] %v3845_v47 }
  0x26   :  { %vm1295_vm11 = vcmp.eq.s32.totalorder %v3635_v48, 1  ;;  %vm1294_vm12 = vcmp.eq.s32.totalorder %v3641_v49, 1  ;;  %6836 = vst [vmem:[#allocation54_spill] sm:$0xff] %v3994_v29 }
  0x27   :  { %1742 = vrot.lane.b32.xlu0 %v1346_v50, %s3242_s15  ;;  %v3647_v50 = vld [vmem:[%s6628_s5 + $0xd0] sm:$0xff] }
  0x28   :  { %6786 = vst [vmem:[#allocation4_spill] sm:$0xff] %v3647_v50 }
  0x2d   :  { %1752 = vrot.lane.b32.xlu2 %v1351_v58, %s3242_s15  ;;  %1750 = vrot.lane.b32.xlu1 %v1350_v59, %s3242_s15  ;;  %v3659_v58 = vld [vmem:[%s6628_s5 + $0xc0] sm:$0xff]  ;;  %v3039_v59 = vld [vmem:[%s6631_s0 + $0x18] sm:$0xff] }
  0x2e   :  { %6787 = vst [vmem:[#allocation5_spill] sm:$0xff] %v3659_v58 }
  0x2f   :  { %1748 = vrot.lane.b32.xlu0 %v1349_v60, %s3242_s15  ;;  %v1360_v60 = vsel %vm1296_vm10, %v3647_v50, 0.0  ;;  %v3721_v50 = vld [vmem:[%s6629_s6 + $0xf8] sm:$0xff]  ;;  %vm1311_vm10 = vcmp.eq.s32.totalorder %v3845_v47, 1 }
  0x30   :  { %6795 = vst [vmem:[#allocation13_spill] sm:$0xff] %v3721_v50  ;;  %vm1301_vm1 = vcmp.eq.s32.totalorder %v3721_v50, 1  ;;  %v3757_v50 = vld [vmem:[%s6629_s6 + $0x118] sm:$0xff] }
  0x31   :  { %2958 = vmatmul.msk.bf16.gmra.mxu0 %vm287_vm9, %v3038_v9  ;;  %v1359_v9 = vsel %vm1295_vm11, %v3653_v55, 0.0  ;;  %6800 = vst [vmem:[#allocation18_spill] sm:$0xff] %v3757_v50  ;;  %vm1305_vm3 = vcmp.eq.s32.totalorder %v3757_v50, 1 }
  0x35   :  { %1758 = vrot.lane.b32.xlu2 %v1354_v13, %s3242_s15  ;;  %1756 = vrot.lane.b32.xlu1 %v1353_v17, %s3242_s15  ;;  %v1358_v13 = vsel %vm1294_vm12, %v3659_v58, 0.0  ;;  %v3671_v17 = vld [vmem:[%s6629_s6 + $0xe8] sm:$0xff] }
  0x36   :  { %6788 = vst [vmem:[#allocation6_spill] sm:$0xff] %v3671_v17  ;;  %vm1299_vm13 = vcmp.eq.s32.totalorder %v3671_v17, 1  ;;  %v3715_v17 = vld [vmem:[%s6629_s6 + $0x100] sm:$0xff] }
  0x37   :  { %1754 = vrot.lane.b32.xlu0 %v1352_v18, %s3242_s15  ;;  %v3677_v18 = vld [vmem:[%s6629_s6 + $0xe0] sm:$0xff]  ;;  %6794 = vst [vmem:[#allocation12_spill] sm:$0xff] %v3715_v17  ;;  %vm1302_vm0 = vcmp.eq.s32.totalorder %v3715_v17, 1 }
  0x38   :  { %6789 = vst [vmem:[#allocation7_spill] sm:$0xff] %v3677_v18  ;;  %vm1298_vm14 = vcmp.eq.s32.totalorder %v3677_v18, 1 }
  0x3d   :  { %1764 = vrot.lane.b32.xlu2 %v1357_v38, %s3242_s15  ;;  %1762 = vrot.lane.b32.xlu1 %v1356_v39, %s3242_s15  ;;  %v3690_v38 = vld [vmem:[%s6628_s5 + $0xe8] sm:$0xff]  ;;  %v3696_v39 = vld [vmem:[%s6628_s5 + $0xe0] sm:$0xff] }
  0x3e   :  { %6791 = vst [vmem:[#allocation9_spill] sm:$0xff] %v3690_v38 }
  0x3f   :  { %1760 = vrot.lane.b32.xlu0 %v1355_v40, %s3242_s15  ;;  %6792 = vst [vmem:[#allocation10_spill] sm:$0xff] %v3696_v39  ;;  %v3054_v40 = vld [vmem:[%s6631_s0 + $0x90] sm:$0xff] }
  0x40   :  { %2974 = vmatmul.msk.bf16.gmra.mxu2 %vm287_vm9, %v3054_v40  ;;  %v3727_v40 = vld [vmem:[%s6629_s6 + $0xf0] sm:$0xff] }
  0x41   :  { %2959 = vmatmul.msk.bf16.gmra.mxu0 %vm287_vm9, %v3039_v59  ;;  %v3705_v59 = vld [vmem:[%s6628_s5 + $0xd8] sm:$0xff]  ;;  %6796 = vst [vmem:[#allocation14_spill] sm:$0xff] %v3727_v40  ;;  %vm1300_vm2 = vcmp.eq.s32.totalorder %v3727_v40, 1  ;;  %v3763_v40 = vld [vmem:[%s6629_s6 + $0x110] sm:$0xff] }
  0x42   :  { %6793 = vst [vmem:[#allocation11_spill] sm:$0xff] %v3705_v59  ;;  %vm1304_vm4 = vcmp.eq.s32.totalorder %v3763_v40, 1 }
  0x43   :  { %6801 = vst [vmem:[#allocation19_spill] sm:$0xff] %v3763_v40  ;;  %v3801_v40 = vld [vmem:[%s6629_s6 + $0x130] sm:$0xff] }
  0x44   :  { %6806 = vst [vmem:[#allocation24_spill] sm:$0xff] %v3801_v40  ;;  %vm1308_vm6 = vcmp.eq.s32.totalorder %v3801_v40, 1 }
  0x45   :  { %1770 = vrot.lane.b32.xlu2 %v1360_v60, %s3242_s15  ;;  %1768 = vrot.lane.b32.xlu1 %v1359_v9, %s3242_s15  ;;  %v1363_v60 = vsel %vm1299_vm13, %v3690_v38, 0.0  ;;  %v1362_v9 = vsel %vm1298_vm14, %v3696_v39, 0.0  ;;  %v3733_v38 = vld [vmem:[%s6628_s5 + $0x100] sm:$0xff] }
  0x46   :  { %6797 = vst [vmem:[#allocation15_spill] sm:$0xff] %v3733_v38  ;;  %v1366_v17 = vsel %vm1302_vm0, %v3733_v38, 0.0  ;;  %v3770_v38 = vld [vmem:[%s6629_s6 + $0x108] sm:$0xff] }
  0x47   :  { %1766 = vrot.lane.b32.xlu0 %v1358_v13, %s3242_s15  ;;  %v1361_v13 = vsel %vm1297_vm15, %v3705_v59, 0.0  ;;  %6802 = vst [vmem:[#allocation20_spill] sm:$0xff] %v3770_v38  ;;  %vm1303_vm5 = vcmp.eq.s32.totalorder %v3770_v38, 1  ;;  %v3897_v38 = vld [vmem:[%s6629_s6 + $0x158] sm:$0xff] }
  0x48   :  { %6821 = vst [vmem:[#allocation39_spill] sm:$0xff] %v3897_v38  ;;  %vm1313_vm14 = vcmp.eq.s32.totalorder %v3897_v38, 1 }
  0x4d   :  { %1776 = vrot.lane.b32.xlu2 %v1363_v60, %s3242_s15  ;;  %1774 = vrot.lane.b32.xlu1 %v1362_v9, %s3242_s15  ;;  %v3739_v60 = vld [vmem:[%s6628_s5 + $0xf8] sm:$0xff]  ;;  %v3745_v9 = vld [vmem:[%s6628_s5 + $0xf0] sm:$0xff] }
  0x4e   :  { %6798 = vst [vmem:[#allocation16_spill] sm:$0xff] %v3739_v60  ;;  %v1365_v59 = vsel %vm1301_vm1, %v3739_v60, 0.0  ;;  %v1364_v39 = vsel %vm1300_vm2, %v3745_v9, 0.0 }
  0x4f   :  { %1772 = vrot.lane.b32.xlu0 %v1361_v13, %s3242_s15  ;;  %6799 = vst [vmem:[#allocation17_spill] sm:$0xff] %v3745_v9  ;;  %v3040_v13 = vld [vmem:[%s6631_s0 + $0x20] sm:$0xff] }
  0x51   :  { %2960 = vmatmul.msk.bf16.gmra.mxu0 %vm287_vm9, %v3040_v13  ;;  %v3782_v13 = vld [vmem:[%s6628_s5 + $0x110] sm:$0xff] }
  0x52   :  { %6804 = vst [vmem:[#allocation22_spill] sm:$0xff] %v3782_v13  ;;  %v1368_v9 = vsel %vm1304_vm4, %v3782_v13, 0.0 }
  0x55   :  { %1782 = vrot.lane.b32.xlu2 %v1366_v17, %s3242_s15  ;;  %1780 = vrot.lane.b32.xlu1 %v1365_v59, %s3242_s15  ;;  %v3776_v17 = vld [vmem:[%s6628_s5 + $0x118] sm:$0xff] }
  0x56   :  { %6803 = vst [vmem:[#allocation21_spill] sm:$0xff] %v3776_v17  ;;  %v3055_v59 = vld [vmem:[%s6631_s0 + $0x98] sm:$0xff]  ;;  %v1369_v50 = vsel %vm1305_vm3, %v3776_v17, 0.0  ;;  %vm1320_vm3 = vcmp.eq.s32.totalorder %v3994_v29, 1 }
  0x57   :  { %1778 = vrot.lane.b32.xlu0 %v1364_v39, %s3242_s15  ;;  %v3791_v39 = vld [vmem:[%s6628_s5 + $0x108] sm:$0xff]  ;;  %2975 = vmatmul.msk.bf16.gmra.mxu2 %vm287_vm9, %v3055_v59  ;;  %v3813_v59 = vld [vmem:[%s6629_s6 + $0x120] sm:$0xff] }
  0x58   :  { %6805 = vst [vmem:[#allocation23_spill] sm:$0xff] %v3791_v39  ;;  %v1367_v60 = vsel %vm1303_vm5, %v3791_v39, 0.0  ;;  %vm1306_vm8 = vcmp.eq.s32.totalorder %v3813_v59, 1 }
  0x59   :  { %6808 = vst [vmem:[#allocation26_spill] sm:$0xff] %v3813_v59  ;;  %v3851_v59 = vld [vmem:[%s6629_s6 + $0x140] sm:$0xff] }
  0x5a   :  { %6814 = vst [vmem:[#allocation32_spill] sm:$0xff] %v3851_v59  ;;  %vm1310_vm11 = vcmp.eq.s32.totalorder %v3851_v59, 1  ;;  %v3891_v59 = vld [vmem:[%s6629_s6 + $0x160] sm:$0xff] }
  0x5b   :  { %6820 = vst [vmem:[#allocation38_spill] sm:$0xff] %v3891_v59  ;;  %vm1314_vm13 = vcmp.eq.s32.totalorder %v3891_v59, 1  ;;  %v3042_v59 = vld [vmem:[%s6631_s0 + $0x30] sm:$0xff] }
  0x5d   :  { %1788 = vrot.lane.b32.xlu2 %v1369_v50, %s3242_s15  ;;  %1786 = vrot.lane.b32.xlu1 %v1368_v9, %s3242_s15  ;;  %v3821_v50 = vld [vmem:[%s6628_s5 + $0x130] sm:$0xff]  ;;  %v3827_v9 = vld [vmem:[%s6628_s5 + $0x128] sm:$0xff] }
  0x5e   :  { %6810 = vst [vmem:[#allocation28_spill] sm:$0xff] %v3821_v50  ;;  %v1372_v40 = vsel %vm1308_vm6, %v3821_v50, 0.0  ;;  %v1371_v39 = vsel %vm1307_vm7, %v3827_v9, 0.0  ;;  %v3858_v50 = vld [vmem:[%s6629_s6 + $0x138] sm:$0xff] }
  0x5f   :  { %1784 = vrot.lane.b32.xlu0 %v1367_v60, %s3242_s15  ;;  %v3816_v17 = vpop.permute.xlu2 %1726  ;;  %6811 = vst [vmem:[#allocation29_spill] sm:$0xff] %v3827_v9  ;;  %v3833_v60 = vld [vmem:[%s6628_s5 + $0x120] sm:$0xff]  ;;  %vm1309_vm12 = vcmp.eq.s32.totalorder %v3858_v50, 1 }
  0x60   :  { %6809 = vst [vmem:[#allocation27_spill] sm:$0xff] %v3816_v17  ;;  %v3041_v17 = vld [vmem:[%s6631_s0 + $0x28] sm:$0xff]  ;;  %v1370_v13 = vsel %vm1306_vm8, %v3833_v60, 0.0 }
  0x61   :  { %6812 = vst [vmem:[#allocation30_spill] sm:$0xff] %v3833_v60  ;;  %2961 = vmatmul.msk.bf16.gmra.mxu0 %vm287_vm9, %v3041_v17  ;;  %v3872_v17 = vld [vmem:[%s6628_s5 + $0x140] sm:$0xff] }
  0x62   :  { %6815 = vst [vmem:[#allocation33_spill] sm:$0xff] %v3858_v50  ;;  %v1374_v47 = vsel %vm1310_vm11, %v3872_v17, 0.0  ;;  %v3944_v50 = vld [vmem:[%s6629_s6 + $0x170] sm:$0xff] }
  0x63   :  { %6818 = vst [vmem:[#allocation36_spill] sm:$0xff] %v3872_v17  ;;  %vm1316_vm1 = vcmp.eq.s32.totalorder %v3944_v50, 1 }
  0x64   :  { %6828 = vst [vmem:[#allocation46_spill] sm:$0xff] %v3944_v50 }
  0x65   :  { %1794 = vrot.lane.b32.xlu2 %v1372_v40, %s3242_s15  ;;  %1792 = vrot.lane.b32.xlu1 %v1371_v39, %s3242_s15  ;;  %v3866_v40 = vld [vmem:[%s6628_s5 + $0x148] sm:$0xff]  ;;  %v3881_v39 = vld [vmem:[%s6628_s5 + $0x138] sm:$0xff] }
  0x66   :  { %6817 = vst [vmem:[#allocation35_spill] sm:$0xff] %v3866_v40  ;;  %v1373_v9 = vsel %vm1309_vm12, %v3881_v39, 0.0 }
  0x67   :  { %1790 = vrot.lane.b32.xlu0 %v1370_v13, %s3242_s15  ;;  %v3861_v60 = vpop.permute.xlu2 %1728  ;;  %v3056_v13 = vld [vmem:[%s6631_s0 + $0xa0] sm:$0xff]  ;;  %6819 = vst [vmem:[#allocation37_spill] sm:$0xff] %v3881_v39 }
  0x68   :  { %6816 = vst [vmem:[#allocation34_spill] sm:$0xff] %v3861_v60  ;;  %v1375_v60 = vsel %vm1311_vm10, %v3866_v40, 0.0  ;;  %2976 = vmatmul.msk.bf16.gmra.mxu2 %vm287_vm9, %v3056_v13  ;;  %v3903_v13 = vld [vmem:[%s6629_s6 + $0x150] sm:$0xff] }
  0x69   :  { %6822 = vst [vmem:[#allocation40_spill] sm:$0xff] %v3903_v13  ;;  %vm1312_vm15 = vcmp.eq.s32.totalorder %v3903_v13, 1  ;;  %v3938_v13 = vld [vmem:[%s6629_s6 + $0x178] sm:$0xff] }
  0x6a   :  { %6827 = vst [vmem:[#allocation45_spill] sm:$0xff] %v3938_v13  ;;  %vm1317_vm0 = vcmp.eq.s32.totalorder %v3938_v13, 1  ;;  %v3981_v13 = vld [vmem:[%s6628_s5 + $0x168] sm:$0xff] }
  0x6b   :  { %6835 = vst [vmem:[#allocation53_spill] sm:$0xff] %v3981_v13 }
  0x6d   :  { %1800 = vrot.lane.b32.xlu2 %v1375_v60, %s3242_s15  ;;  %1798 = vrot.lane.b32.xlu1 %v1374_v47, %s3242_s15  ;;  %v3911_v60 = vld [vmem:[%s6628_s5 + $0x160] sm:$0xff]  ;;  %v3917_v47 = vld [vmem:[%s6628_s5 + $0x158] sm:$0xff] }
  0x6e   :  { %6824 = vst [vmem:[#allocation42_spill] sm:$0xff] %v3911_v60  ;;  %v1378_v39 = vsel %vm1314_vm13, %v3911_v60, 0.0  ;;  %v1377_v17 = vsel %vm1313_vm14, %v3917_v47, 0.0 }
  0x6f   :  { %1796 = vrot.lane.b32.xlu0 %v1373_v9, %s3242_s15  ;;  %v3906_v40 = vpop.permute.xlu2 %1734  ;;  %6825 = vst [vmem:[#allocation43_spill] sm:$0xff] %v3917_v47  ;;  %v3923_v9 = vld [vmem:[%s6628_s5 + $0x150] sm:$0xff] }
  0x70   :  { %6823 = vst [vmem:[#allocation41_spill] sm:$0xff] %v3906_v40  ;;  %v3075_v40 = vld [vmem:[%s6633_s3 + $0x18] sm:$0xff]  ;;  %v1376_v38 = vsel %vm1312_vm15, %v3923_v9, 0.0 }
  0x71   :  { %6826 = vst [vmem:[#allocation44_spill] sm:$0xff] %v3923_v9  ;;  %785 = vmatpush.bf16.msra.mxu1 %v3075_v40  ;;  %3080 = vmatpush.bf16.msra.mxu3 %v3075_v40  ;;  %v3951_v40 = vld [vmem:[%s6629_s6 + $0x168] sm:$0xff] }
  0x72   :  { %2962 = vmatmul.msk.bf16.gmra.mxu0 %vm287_vm9, %v3042_v59  ;;  %6829 = vst [vmem:[#allocation47_spill] sm:$0xff] %v3951_v40  ;;  %v3074_v59 = vld [vmem:[%s6633_s3 + $0x10] sm:$0xff]  ;;  %vm1315_vm2 = vcmp.eq.s32.totalorder %v3951_v40, 1  ;;  %v4000_v40 = vld [vmem:[%s6629_s6 + $0x188] sm:$0xff] }
  0x73   :  { %v1379_v47 = vsel %vm1315_vm2, %v3981_v13, 0.0  ;;  %6837 = vst [vmem:[#allocation55_spill] sm:$0xff] %v4000_v40  ;;  %vm1319_vm4 = vcmp.eq.s32.totalorder %v4000_v40, 1  ;;  %v4045_v40 = vld [vmem:[%s6629_s6 + $0x1a8] sm:$0xff] }
  0x74   :  { %6845 = vst [vmem:[#allocation63_spill] sm:$0xff] %v4045_v40  ;;  %vm1323_vm6 = vcmp.eq.s32.totalorder %v4045_v40, 1 }
  0x75   :  { %1806 = vrot.lane.b32.xlu2 %v1378_v39, %s3242_s15  ;;  %1804 = vrot.lane.b32.xlu1 %v1377_v17, %s3242_s15  ;;  %v3959_v39 = vld [vmem:[%s6628_s5 + $0x178] sm:$0xff] }
  0x76   :  { %6831 = vst [vmem:[#allocation49_spill] sm:$0xff] %v3959_v39  ;;  %786 = vmatpush.bf16.msra.mxu1 %v3074_v59  ;;  %3081 = vmatpush.bf16.msra.mxu3 %v3074_v59 }
  0x77   :  { %1802 = vrot.lane.b32.xlu0 %v1376_v38, %s3242_s15  ;;  %v3954_v60 = vpop.permute.xlu2 %1740  ;;  %v3965_v17 = vpop.permute.xlu1 %1722  ;;  %v3972_v38 = vld [vmem:[%s6628_s5 + $0x170] sm:$0xff] }
  0x78   :  { %6830 = vst [vmem:[#allocation48_spill] sm:$0xff] %v3954_v60  ;;  %v3057_v60 = vld [vmem:[%s6631_s0 + $0xa8] sm:$0xff]  ;;  %v1380_v50 = vsel %vm1316_vm1, %v3972_v38, 0.0 }
  0x79   :  { %6832 = vst [vmem:[#allocation50_spill] sm:$0xff] %v3965_v17  ;;  %v3967_v9 = vpop.permute.xlu0 %1718  ;;  %v3073_v17 = vld [vmem:[%s6633_s3 + $0x8] sm:$0xff]  ;;  %2977 = vmatmul.msk.bf16.gmra.mxu2 %vm287_vm9, %v3057_v60  ;;  %v4006_v60 = vld [vmem:[%s6629_s6 + $0x180] sm:$0xff] }
  0x7a   :  { %6833 = vst [vmem:[#allocation51_spill] sm:$0xff] %v3967_v9  ;;  %v1381_v9 = vsel %vm1317_vm0, %v3959_v39, 0.0  ;;  %787 = vmatpush.bf16.msra.mxu1 %v3073_v17  ;;  %3082 = vmatpush.bf16.msra.mxu3 %v3073_v17  ;;  %v4033_v17 = vld [vmem:[%s6628_s5 + $0x180] sm:$0xff]  ;;  %vm1318_vm5 = vcmp.eq.s32.totalorder %v4006_v60, 1 }
  0x7b   :  { %6834 = vst [vmem:[#allocation52_spill] sm:$0xff] %v3972_v38  ;;  %v1382_v29 = vsel %vm1318_vm5, %v4033_v17, 0.0 }
  0x7c   :  { %6838 = vst [vmem:[#allocation56_spill] sm:$0xff] %v4006_v60  ;;  %v4051_v60 = vld [vmem:[%s6629_s6 + $0x1a0] sm:$0xff] }
  0x7d   :  { %1812 = vrot.lane.b32.xlu2 %v1381_v9, %s3242_s15  ;;  %1810 = vrot.lane.b32.xlu1 %v1380_v50, %s3242_s15  ;;  %v4014_v9 = vld [vmem:[%s6628_s5 + $0x190] sm:$0xff]  ;;  %v3072_v50 = vld [vmem:[%s6633_s3] sm:$0xff]  ;;  %6844 = vst [vmem:[#allocation62_spill] sm:$0xff] %v4033_v17  ;;  %vm1322_vm7 = vcmp.eq.s32.totalorder %v4051_v60, 1 }
  0x7e   :  { %6840 = vst [vmem:[#allocation58_spill] sm:$0xff] %v4014_v9  ;;  %788 = vmatpush.bf16.msra.mxu1 %v3072_v50  ;;  %3083 = vmatpush.bf16.msra.mxu3 %v3072_v50  ;;  %v4058_v50 = vld [vmem:[%s6629_s6 + $0x198] sm:$0xff] }
  0x7f   :  { %1808 = vrot.lane.b32.xlu0 %v1379_v47, %s3242_s15  ;;  %v4009_v59 = vpop.permute.xlu2 %1746  ;;  %v4020_v39 = vpop.permute.xlu1 %1724  ;;  %v4027_v47 = vld [vmem:[%s6628_s5 + $0x188] sm:$0xff]  ;;  %6846 = vst [vmem:[#allocation64_spill] sm:$0xff] %v4051_v60  ;;  %vm1321_vm8 = vcmp.eq.s32.totalorder %v4058_v50, 1 }
  0x80   :  { %6839 = vst [vmem:[#allocation57_spill] sm:$0xff] %v4009_v59  ;;  %v3043_v59 = vld [vmem:[%s6631_s0 + $0x38] sm:$0xff] }
  0x81   :  { %6841 = vst [vmem:[#allocation59_spill] sm:$0xff] %v4020_v39  ;;  %v4022_v13 = vpop.permute.xlu0 %1720  ;;  %v1383_v39 = vsel %vm1319_vm4, %v4027_v47, 0.0  ;;  %vm1398_vm4 = vcmp.eq.s32.totalorder %v3314_v5, 2 }
  0x82   :  { %6842 = vst [vmem:[#allocation60_spill] sm:$0xff] %v4022_v13  ;;  %v1384_v13 = vsel %vm1320_vm3, %v4014_v9, 0.0  ;;  %2963 = vmatmul.msk.bf16.gmra.mxu0 %vm287_vm9, %v3043_v59  ;;  %vm1399_vm3 = vcmp.eq.s32.totalorder %v3340_v12, 2  ;;  %v1462_v5 = vsel %vm1398_vm4, %v3309_v4, 0.0  ;;  %vm1413_vm4 = vcmp.eq.s32.totalorder %v3512_v53, 2 }
  0x83   :  { %6843 = vst [vmem:[#allocation61_spill] sm:$0xff] %v4027_v47  ;;  %v4095_v47 = vld [vmem:[%s6629_s6 + $0x1c0] sm:$0xff]  ;;  %v1463_v12 = vsel %vm1399_vm3, %v3360_v16, 0.0  ;;  %vm1414_vm3 = vcmp.eq.s32.totalorder %v3505_v52, 2 }
  0x84   :  { %6847 = vst [vmem:[#allocation65_spill] sm:$0xff] %v4058_v50  ;;  %vm1326_vm10 = vcmp.eq.s32.totalorder %v4095_v47, 1 }
  0x85   :  { %1818 = vrot.lane.b32.xlu2 %v1384_v13, %s3242_s15  ;;  %1816 = vrot.lane.b32.xlu1 %v1383_v39, %s3242_s15  ;;  %v4066_v13 = vld [vmem:[%s6628_s5 + $0x1a8] sm:$0xff]  ;;  %v4074_v39 = vld [vmem:[%s6628_s5 + $0x1a0] sm:$0xff]  ;;  %6854 = vst [vmem:[#allocation72_spill] sm:$0xff] %v4095_v47 }
  0x86   :  { %6849 = vst [vmem:[#allocation67_spill] sm:$0xff] %v4066_v13  ;;  %v1386_v40 = vsel %vm1322_vm7, %v4074_v39, 0.0  ;;  %vm1401_vm7 = vcmp.eq.s32.totalorder %v3333_v11, 2 }
  0x87   :  { %1814 = vrot.lane.b32.xlu0 %v1382_v29, %s3242_s15  ;;  %v4061_v9 = vpop.permute.xlu2 %1752  ;;  %v4069_v17 = vpop.permute.xlu1 %1732  ;;  %6851 = vst [vmem:[#allocation69_spill] sm:$0xff] %v4074_v39  ;;  %v3058_v29 = vld [vmem:[%s6631_s0 + $0xb0] sm:$0xff] }
  0x88   :  { %6848 = vst [vmem:[#allocation66_spill] sm:$0xff] %v4061_v9  ;;  %v4085_v9 = vld [vmem:[%s6628_s5 + $0x198] sm:$0xff] }
  0x89   :  { %6850 = vst [vmem:[#allocation68_spill] sm:$0xff] %v4069_v17  ;;  %v4080_v59 = vpop.permute.xlu0 %1730  ;;  %v1387_v17 = vsel %vm1323_vm6, %v4066_v13, 0.0  ;;  %2978 = vmatmul.msk.bf16.gmra.mxu2 %vm287_vm9, %v3058_v29  ;;  %v1385_v60 = vsel %vm1321_vm8, %v4085_v9, 0.0  ;;  %v4107_v29 = vld [vmem:[%s6629_s6 + $0x1b0] sm:$0xff]  ;;  %vm1402_vm6 = vcmp.eq.s32.totalorder %v3293_v1, 2  ;;  %vm1400_vm8 = vcmp.eq.s32.totalorder %v3304_v3, 2 }
  0x8a   :  { %6852 = vst [vmem:[#allocation70_spill] sm:$0xff] %v4080_v59  ;;  %v4101_v59 = vld [vmem:[%s6629_s6 + $0x1b8] sm:$0xff]  ;;  %vm1324_vm12 = vcmp.eq.s32.totalorder %v4107_v29, 1 }
  0x8b   :  { %6853 = vst [vmem:[#allocation71_spill] sm:$0xff] %v4085_v9  ;;  %vm1325_vm11 = vcmp.eq.s32.totalorder %v4101_v59, 1 }
  0x8c   :  { %6855 = vst [vmem:[#allocation73_spill] sm:$0xff] %v4101_v59 }
  0x8d   :  { %1824 = vrot.lane.b32.xlu2 %v1387_v17, %s3242_s15  ;;  %1822 = vrot.lane.b32.xlu1 %v1386_v40, %s3242_s15  ;;  %6856 = vst [vmem:[#allocation74_spill] sm:$0xff] %v4107_v29  ;;  %v4115_v17 = vld [vmem:[%s6628_s5 + $0x1c0] sm:$0xff]  ;;  %v4123_v40 = vld [vmem:[%s6628_s5 + $0x1b8] sm:$0xff] }
  0x8e   :  { %6858 = vst [vmem:[#allocation76_spill] sm:$0xff] %v4115_v17  ;;  %v393_v47 = vpop.f32.mrf.mxu0  ;;  %v1389_v50 = vsel %vm1325_vm11, %v4123_v40, 0.0  ;;  %v4148_v29 = vld [vmem:[%s6629_s6 + $0x1d8] sm:$0xff]  ;;  %vm1404_vm11 = vcmp.eq.s32.totalorder %v3385_v23, 2 }
  0x8f   :  { %1820 = vrot.lane.b32.xlu0 %v1385_v60, %s3242_s15  ;;  %v4110_v13 = vpop.permute.xlu2 %1758  ;;  %v4118_v9 = vpop.permute.xlu1 %1738  ;;  %6860 = vst [vmem:[#allocation78_spill] sm:$0xff] %v4123_v40  ;;  %v4131_v60 = vld [vmem:[%s6628_s5 + $0x1b0] sm:$0xff]  ;;  %vm1329_vm13 = vcmp.eq.s32.totalorder %v4148_v29, 1 }
  0x90   :  { %6857 = vst [vmem:[#allocation75_spill] sm:$0xff] %v4110_v13  ;;  %v3044_v13 = vld [vmem:[%s6631_s0 + $0x40] sm:$0xff]  ;;  %v1388_v59 = vsel %vm1324_vm12, %v4131_v60, 0.0  ;;  %vm1403_vm12 = vcmp.eq.s32.totalorder %v3328_v10, 2 }
  0x91   :  { %6859 = vst [vmem:[#allocation77_spill] sm:$0xff] %v4118_v9  ;;  %v4126_v39 = vpop.permute.xlu0 %1736  ;;  %v1390_v9 = vsel %vm1326_vm10, %v4115_v17, 0.0  ;;  %v4154_v17 = vld [vmem:[%s6629_s6 + $0x1d0] sm:$0xff]  ;;  %vm1405_vm10 = vcmp.eq.s32.totalorder %v3378_v22, 2 }
  0x92   :  { %6861 = vst [vmem:[#allocation79_spill] sm:$0xff] %v4126_v39  ;;  %v4142_v39 = vld [vmem:[%s6632_s2] ss:$0 sm:$0xff]  ;;  %2964 = vmatmul.msk.bf16.gmra.mxu0 %vm287_vm9, %v3044_v13  ;;  %vm1328_vm14 = vcmp.eq.s32.totalorder %v4154_v17, 1 }
  0x93   :  { %6862 = vst [vmem:[#allocation80_spill] sm:$0xff] %v4131_v60  ;;  %v4161_v60 = vld [vmem:[%s6629_s6 + $0x1c8] sm:$0xff]  ;;  %v394_v13 = vadd.f32 %v4142_v39, %v393_v47 }
  0x94   :  { %6863 = vst [vmem:[#allocation81_spill] sm:$0xff] %v4148_v29  ;;  %v4189_v29 = vld [vmem:[%s6628_s5 + $0x1c8] sm:$0xff]  ;;  %vm1327_vm15 = vcmp.eq.s32.totalorder %v4161_v60, 1 }
  0x95   :  { %1830 = vrot.lane.b32.xlu2 %v1390_v9, %s3242_s15  ;;  %6864 = vst [vmem:[#allocation82_spill] sm:$0xff] %v4154_v17  ;;  %1828 = vrot.lane.b32.xlu1 %v1389_v50, %s3242_s15  ;;  %v4169_v9 = vld [vmem:[%s6628_s5 + $0x1d8] sm:$0xff]  ;;  %v4178_v50 = vld [vmem:[%s6628_s5 + $0x1d0] sm:$0xff]  ;;  %v553_v18 = vmax.f32 %v394_v13, 0.0  ;;  %v1391_v58 = vsel %vm1327_vm15, %v4189_v29, 0.0  ;;  %vm1406_vm15 = vcmp.eq.s32.totalorder %v3372_v21, 2 }
  0x96   :  { %6866 = vst [vmem:[#allocation84_spill] sm:$0xff] %v4169_v9  ;;  %v1393_v47 = vsel %vm1329_vm13, %v4169_v9, 0.0  ;;  %v1392_v17 = vsel %vm1328_vm14, %v4178_v50, 0.0  ;;  %v4206_v9 = vld [vmem:[%s6629_s6 + $0x1e8] sm:$0xff]  ;;  %vm1408_vm13 = vcmp.eq.s32.totalorder %v3423_v33, 2  ;;  %vm1407_vm14 = vcmp.eq.s32.totalorder %v3430_v34, 2 }
  0x97   :  { %1826 = vrot.lane.b32.xlu0 %v1388_v59, %s3242_s15  ;;  %v4164_v40 = vpop.permute.xlu2 %1764  ;;  %v4173_v38 = vpop.permute.xlu1 %1744  ;;  %v3059_v59 = vld [vmem:[%s6631_s0 + $0xb8] sm:$0xff]  ;;  %6869 = vst [vmem:[#allocation87_spill] sm:$0xff] %v4189_v29  ;;  %vm1331_vm1 = vcmp.eq.s32.totalorder %v4206_v9, 1 }
  0x98   :  { %6865 = vst [vmem:[#allocation83_spill] sm:$0xff] %v4164_v40 }
  0x99   :  { %6867 = vst [vmem:[#allocation85_spill] sm:$0xff] %v4173_v38  ;;  %v4184_v40 = vpop.permute.xlu0 %1742  ;;  %2979 = vmatmul.msk.bf16.gmra.mxu2 %vm287_vm9, %v3059_v59  ;;  %v395_v38 = vpop.f32.mrf.mxu0 }
  0x9a   :  { %6868 = vst [vmem:[#allocation86_spill] sm:$0xff] %v4184_v40  ;;  %v396_v28 = vadd.f32 %v4142_v39, %v395_v38  ;;  %v4200_v40 = vld [vmem:[%s6629_s6 + $0x1f0] sm:$0xff]  ;;  %v4212_v38 = vld [vmem:[%s6629_s6 + $0x1e0] sm:$0xff] }
  0x9b   :  { %6870 = vst [vmem:[#allocation88_spill] sm:$0xff] %v4200_v40  ;;  %vm1332_vm0 = vcmp.eq.s32.totalorder %v4200_v40, 1  ;;  %vm1330_vm2 = vcmp.eq.s32.totalorder %v4212_v38, 1 }
  0x9c   :  { %v554_v59 = vmax.f32 %v396_v28, 0.0  ;;  %6871 = vst [vmem:[#allocation89_spill] sm:$0xff] %v4212_v38 }
  0x9d   :  { %1836 = vrot.lane.b32.xlu2 %v1393_v47, %s3242_s15  ;;  %1834 = vrot.lane.b32.xlu1 %v1392_v17, %s3242_s15  ;;  %v4220_v47 = vld [vmem:[%s6628_s5 + $0x1f0] sm:$0xff]  ;;  %v4228_v17 = vld [vmem:[%s6628_s5 + $0x1e8] sm:$0xff] }
  0x9e   :  { %6873 = vst [vmem:[#allocation91_spill] sm:$0xff] %v4220_v47  ;;  %v617_v28 = vpack.c.bf16 %v554_v59, %v553_v18  ;;  %v3045_v18 = vld [vmem:[%s6631_s0 + $0x48] sm:$0xff]  ;;  %v1396_v59 = vsel %vm1332_vm0, %v4220_v47, 0.0  ;;  %v1395_v40 = vsel %vm1331_vm1, %v4228_v17, 0.0  ;;  %vm1411_vm0 = vcmp.eq.s32.totalorder %v3463_v42, 2 }
  0x9f   :  { %1832 = vrot.lane.b32.xlu0 %v1391_v58, %s3242_s15  ;;  %v4215_v13 = vpop.permute.xlu2 %1770  ;;  %v4223_v29 = vpop.permute.xlu1 %1750  ;;  %6875 = vst [vmem:[#allocation93_spill] sm:$0xff] %v4228_v17  ;;  %vm1410_vm1 = vcmp.eq.s32.totalorder %v3469_v43, 2 }
  0xa0   :  { %6872 = vst [vmem:[#allocation90_spill] sm:$0xff] %v4215_v13  ;;  %v4236_v13 = vld [vmem:[%s6628_s5 + $0x1e0] sm:$0xff]  ;;  %3004 = vmatmul.msk.bf16.vlgmr.msra.gmra.mxu1 %vm287_vm9, %v617_v28  ;;  %v4252_v28 = vld [vmem:[%s6629_s6 + $0x1f8] sm:$0xff] }
  0xa1   :  { %6874 = vst [vmem:[#allocation92_spill] sm:$0xff] %v4223_v29  ;;  %v4231_v58 = vpop.permute.xlu0 %1748  ;;  %v398_v29 = vpop.f32.mrf.mxu0  ;;  %vm1333_vm5 = vcmp.eq.s32.totalorder %v4252_v28, 1 }
  0xa2   :  { %6876 = vst [vmem:[#allocation94_spill] sm:$0xff] %v4231_v58  ;;  %v1394_v58 = vsel %vm1330_vm2, %v4236_v13, 0.0  ;;  %2965 = vmatmul.msk.bf16.gmra.mxu0 %vm287_vm9, %v3045_v18  ;;  %v399_v47 = vadd.f32 %v4142_v39, %v398_v29  ;;  %vm1409_vm2 = vcmp.eq.s32.totalorder %v3417_v32, 2 }
  0xa3   :  { %6877 = vst [vmem:[#allocation95_spill] sm:$0xff] %v4236_v13 }
  0xa5   :  { %1842 = vrot.lane.b32.xlu2 %v1396_v59, %s3242_s15  ;;  %1840 = vrot.lane.b32.xlu1 %v1395_v40, %s3242_s15  ;;  %v3060_v40 = vld [vmem:[%s6631_s0 + $0xc0] sm:$0xff]  ;;  %v555_v59 = vmax.f32 %v399_v47, 0.0 }
  0xa7   :  { %1838 = vrot.lane.b32.xlu0 %v1394_v58, %s3242_s15  ;;  %v4255_v38 = vpop.permute.xlu2 %1776  ;;  %v4259_v13 = vpop.permute.xlu1 %1756  ;;  %v4270_v58 = vld [vmem:[%s6628_s5 + $0x1f8] sm:$0xff] }
  0xa8   :  { %6878 = vst [vmem:[#allocation96_spill] sm:$0xff] %v4255_v38 }
  0xa9   :  { %6879 = vst [vmem:[#allocation97_spill] sm:$0xff] %v4259_v13  ;;  %v4265_v18 = vpop.permute.xlu0 %1754  ;;  %2980 = vmatmul.msk.bf16.gmra.mxu2 %vm287_vm9, %v3060_v40  ;;  %v400_v29 = vpop.f32.mrf.mxu0  ;;  %v1397_v13 = vsel %vm1333_vm5, %v4270_v58, 0.0  ;;  %vm1412_vm5 = vcmp.eq.s32.totalorder %v3457_v41, 2 }
  0xaa   :  { %6880 = vst [vmem:[#allocation98_spill] sm:$0xff] %v4265_v18  ;;  %v401_v38 = vadd.f32 %v4142_v39, %v400_v29  ;;  %v473_v18 = vpop.f32.mrf.mxu2  ;;  %v1465_v29 = vsel %vm1401_vm7, %v3354_v15, 0.0  ;;  %vm1416_vm7 = vcmp.eq.s32.totalorder %v3555_v63, 2 }
  0xac   :  { %v556_v17 = vmax.f32 %v401_v38, 0.0  ;;  %v3046_v38 = vld [vmem:[%s6631_s0 + $0x50] sm:$0xff] }
  0xad   :  { %1976 = vrot.lane.b32.xlu2 %v1463_v12, %s3243_s12  ;;  %1974 = vrot.lane.b32.xlu1 %v1462_v5, %s3243_s12  ;;  %v474_v12 = vadd.f32 %v4142_v39, %v473_v18 }
  0xae   :  { %v618_v4 = vpack.c.bf16 %v556_v17, %v555_v59  ;;  %v1464_v17 = vsel %vm1400_vm8, %v3298_v2, 0.0  ;;  %v3061_v59 = vld [vmem:[%s6631_s0 + $0xc8] sm:$0xff]  ;;  %vm1415_vm8 = vcmp.eq.s32.totalorder %v3499_v51, 2 }
  0xaf   :  { %1844 = vrot.lane.b32.xlu0 %v1397_v13, %s3242_s15  ;;  %v4281_v16 = vpop.permute.xlu2 %1782  ;;  %v4284_v40 = vpop.permute.xlu1 %1762  ;;  %v1466_v13 = vsel %vm1402_vm6, %v3288_v0, 0.0  ;;  %v585_v3 = vmax.f32 %v474_v12, 0.0  ;;  %v1468_v12 = vsel %vm1404_vm11, %v3405_v27, 0.0  ;;  %vm1417_vm6 = vcmp.eq.s32.totalorder %v3549_v62, 2 }
  0xb0   :  { %6881 = vst [vmem:[#allocation99_spill] sm:$0xff] %v4281_v16  ;;  %3005 = vmatmul.msk.bf16.gmra.mxu1 %vm287_vm9, %v618_v4  ;;  %vm1419_vm11 = vcmp.eq.s32.totalorder %v3598_v24, 2  ;;  %v6965_v16 = vld [vmem:[#allocation58_spill] sm:$0xff] }
  0xb1   :  { %6882 = vst [vmem:[#allocation100_spill] sm:$0xff] %v4284_v40  ;;  %v4287_v47 = vpop.permute.xlu0 %1760  ;;  %v403_v1 = vpop.f32.mrf.mxu0 }
  0xb2   :  { %6883 = vst [vmem:[#allocation101_spill] sm:$0xff] %v4287_v47  ;;  %v475_v11 = vpop.f32.mrf.mxu2  ;;  %2966 = vmatmul.msk.bf16.gmra.mxu0 %vm287_vm9, %v3046_v38  ;;  %v404_v15 = vadd.f32 %v4142_v39, %v403_v1  ;;  %v1469_v38 = vsel %vm1405_vm10, %v3399_v26, 0.0  ;;  %vm1420_vm10 = vcmp.eq.s32.totalorder %v3591_v20, 2 }
  0xb3   :  { %v476_v5 = vadd.f32 %v4142_v39, %v475_v11 }
  0xb4   :  { %v557_v1 = vmax.f32 %v404_v15, 0.0 }
  0xb5   :  { %1982 = vrot.lane.b32.xlu2 %v1466_v13, %s3243_s12  ;;  %1980 = vrot.lane.b32.xlu1 %v1465_v29, %s3243_s12  ;;  %v586_v2 = vmax.f32 %v476_v5, 0.0  ;;  %v1467_v29 = vsel %vm1403_vm12, %v3348_v14, 0.0  ;;  %v1472_v5 = vsel %vm1408_vm13, %v3442_v36, 0.0  ;;  %vm1418_vm12 = vcmp.eq.s32.totalorder %v3543_v61, 2 }
  0xb6   :  { %vm1423_vm13 = vcmp.eq.s32.totalorder %v3635_v48, 2 }
  0xb7   :  { %1978 = vrot.lane.b32.xlu0 %v1464_v17, %s3243_s12  ;;  %v4303_v0 = vpop.permute.xlu2 %1788  ;;  %v4307_v18 = vpop.permute.xlu1 %1768  ;;  %v633_v22 = vpack.c.bf16 %v586_v2, %v585_v3  ;;  %v3047_v3 = vld [vmem:[%s6631_s0 + $0x58] sm:$0xff]  ;;  %v1471_v2 = vsel %vm1407_vm14, %v3448_v37, 0.0  ;;  %vm1422_vm14 = vcmp.eq.s32.totalorder %v3641_v49, 2 }
  0xb8   :  { %6884 = vst [vmem:[#allocation102_spill] sm:$0xff] %v4303_v0  ;;  %v6957_v0 = vld [vmem:[#allocation49_spill] sm:$0xff] }
  0xb9   :  { %6885 = vst [vmem:[#allocation103_spill] sm:$0xff] %v4307_v18  ;;  %v4313_v4 = vpop.permute.xlu0 %1766  ;;  %2981 = vmatmul.msk.bf16.gmra.mxu2 %vm287_vm9, %v3061_v59  ;;  %v405_v13 = vpop.f32.mrf.mxu0  ;;  %3020 = vmatmul.msk.bf16.vlgmr.msra.gmra.mxu3 %vm287_vm9, %v633_v22  ;;  %v1470_v59 = vsel %vm1406_vm15, %v3393_v25, 0.0  ;;  %vm1421_vm15 = vcmp.eq.s32.totalorder %v3585_v19, 2  ;;  %v6973_v18 = vld [vmem:[#allocation67_spill] sm:$0xff] }
  0xba   :  { %6886 = vst [vmem:[#allocation104_spill] sm:$0xff] %v4313_v4  ;;  %v406_v23 = vadd.f32 %v4142_v39, %v405_v13  ;;  %v478_v17 = vpop.f32.mrf.mxu2  ;;  %v3062_v13 = vld [vmem:[%s6631_s0 + $0xd0] sm:$0xff] }
  0xbb   :  { %v479_v15 = vadd.f32 %v4142_v39, %v478_v17  ;;  %v4805_v4 = vld [vmem:[%s6629_s6 + $0x30] sm:$0xff] }
  0xbc   :  { %v558_v11 = vmax.f32 %v406_v23, 0.0 }
  0xbd   :  { %1988 = vrot.lane.b32.xlu2 %v1469_v38, %s3243_s12  ;;  %1986 = vrot.lane.b32.xlu1 %v1468_v12, %s3243_s12  ;;  %v587_v21 = vmax.f32 %v479_v15, 0.0  ;;  %v1478_v15 = vsel %vm1414_vm3, %v3527_v56, 0.0 }
  0xbe   :  { %v619_v27 = vpack.c.bf16 %v558_v11, %v557_v1  ;;  %v1475_v1 = vsel %vm1411_vm0, %v3481_v45, 0.0  ;;  %v1473_v11 = vsel %vm1409_vm2, %v3436_v35, 0.0 }
  0xbf   :  { %1984 = vrot.lane.b32.xlu0 %v1467_v29, %s3243_s12  ;;  %v4325_v10 = vpop.permute.xlu2 %1794  ;;  %v4328_v26 = vpop.permute.xlu1 %1774  ;;  %v1474_v29 = vsel %vm1410_vm1, %v3487_v46, 0.0 }
  0xc0   :  { %6887 = vst [vmem:[#allocation105_spill] sm:$0xff] %v4325_v10  ;;  %3006 = vmatmul.msk.bf16.gmra.mxu1 %vm287_vm9, %v619_v27 }
  0xc1   :  { %6888 = vst [vmem:[#allocation106_spill] sm:$0xff] %v4328_v26  ;;  %v4331_v14 = vpop.permute.xlu0 %1772  ;;  %v408_v33 = vpop.f32.mrf.mxu0 }
  0xc2   :  { %6889 = vst [vmem:[#allocation107_spill] sm:$0xff] %v4331_v14  ;;  %v480_v34 = vpop.f32.mrf.mxu2  ;;  %2967 = vmatmul.msk.bf16.gmra.mxu0 %vm287_vm9, %v3047_v3  ;;  %v409_v37 = vadd.f32 %v4142_v39, %v408_v33 }
  0xc3   :  { %v481_v38 = vadd.f32 %v4142_v39, %v480_v34 }
  0xc4   :  { %v559_v17 = vmax.f32 %v409_v37, 0.0 }
  0xc5   :  { %1994 = vrot.lane.b32.xlu2 %v1472_v5, %s3243_s12  ;;  %1992 = vrot.lane.b32.xlu1 %v1471_v2, %s3243_s12  ;;  %v588_v25 = vmax.f32 %v481_v38, 0.0  ;;  %v3048_v5 = vld [vmem:[%s6631_s0 + $0x60] sm:$0xff]  ;;  %v1477_v2 = vsel %vm1413_vm4, %v3533_v57, 0.0  ;;  %v3063_v38 = vld [vmem:[%s6631_s0 + $0xd8] sm:$0xff] }
  0xc7   :  { %1990 = vrot.lane.b32.xlu0 %v1470_v59, %s3243_s12  ;;  %v4347_v36 = vpop.permute.xlu2 %1800  ;;  %v4351_v22 = vpop.permute.xlu1 %1780  ;;  %v634_v42 = vpack.c.bf16 %v588_v25, %v587_v21  ;;  %v1476_v59 = vsel %vm1412_vm5, %v3475_v44, 0.0  ;;  %v1481_v25 = vsel %vm1417_vm6, %v3567_v7, 0.0 }
  0xc8   :  { %6890 = vst [vmem:[#allocation108_spill] sm:$0xff] %v4347_v36 }
  0xc9   :  { %6891 = vst [vmem:[#allocation109_spill] sm:$0xff] %v4351_v22  ;;  %v4357_v12 = vpop.permute.xlu0 %1778  ;;  %2982 = vmatmul.msk.bf16.gmra.mxu2 %vm287_vm9, %v3062_v13  ;;  %v410_v23 = vpop.f32.mrf.mxu0  ;;  %3021 = vmatmul.msk.bf16.gmra.mxu3 %vm287_vm9, %v634_v42 }
  0xca   :  { %6892 = vst [vmem:[#allocation110_spill] sm:$0xff] %v4357_v12  ;;  %v411_v43 = vadd.f32 %v4142_v39, %v410_v23  ;;  %v483_v27 = vpop.f32.mrf.mxu2  ;;  %v1479_v23 = vsel %vm1415_vm8, %v3518_v54, 0.0 }
  0xcb   :  { %v484_v33 = vadd.f32 %v4142_v39, %v483_v27 }
  0xcc   :  { %v560_v3 = vmax.f32 %v411_v43, 0.0  ;;  %v3049_v43 = vld [vmem:[%s6631_s0 + $0x68] sm:$0xff] }
  0xcd   :  { %2000 = vrot.lane.b32.xlu2 %v1475_v1, %s3243_s12  ;;  %1998 = vrot.lane.b32.xlu1 %v1474_v29, %s3243_s12  ;;  %v589_v41 = vmax.f32 %v484_v33, 0.0  ;;  %v1480_v1 = vsel %vm1416_vm7, %v3573_v8, 0.0  ;;  %v3064_v33 = vld [vmem:[%s6631_s0 + $0xe0] sm:$0xff] }
  0xce   :  { %v620_v46 = vpack.c.bf16 %v560_v3, %v559_v17  ;;  %v1483_v3 = vsel %vm1419_vm11, %v3619_v31, 0.0 }
  0xcf   :  { %1996 = vrot.lane.b32.xlu0 %v1473_v11, %s3243_s12  ;;  %v4369_v32 = vpop.permute.xlu2 %1806  ;;  %v4372_v45 = vpop.permute.xlu1 %1786  ;;  %v1484_v11 = vsel %vm1420_vm10, %v3613_v30, 0.0 }
  0xd0   :  { %6893 = vst [vmem:[#allocation111_spill] sm:$0xff] %v4369_v32  ;;  %3007 = vmatmul.msk.bf16.gmra.mxu1 %vm287_vm9, %v620_v46  ;;  %v1482_v46 = vsel %vm1418_vm12, %v3561_v6, 0.0  ;;  %v6949_v32 = vld [vmem:[#allocation42_spill] sm:$0xff] }
  0xd1   :  { %6894 = vst [vmem:[#allocation112_spill] sm:$0xff] %v4372_v45  ;;  %v4375_v35 = vpop.permute.xlu0 %1784  ;;  %v413_v52 = vpop.f32.mrf.mxu0 }
  0xd2   :  { %6895 = vst [vmem:[#allocation113_spill] sm:$0xff] %v4375_v35  ;;  %v485_v53 = vpop.f32.mrf.mxu2  ;;  %2968 = vmatmul.msk.bf16.gmra.mxu0 %vm287_vm9, %v3048_v5  ;;  %v414_v57 = vadd.f32 %v4142_v39, %v413_v52 }
  0xd3   :  { %v486_v34 = vadd.f32 %v4142_v39, %v485_v53  ;;  %v6902_v53 = vld [vmem:[#allocation5_spill] sm:$0xff] }
  0xd4   :  { %v561_v42 = vmax.f32 %v414_v57, 0.0  ;;  %v6903_v57 = vld [vmem:[#allocation2_spill] sm:$0xff] }
  0xd5   :  { %2006 = vrot.lane.b32.xlu2 %v1478_v15, %s3243_s12  ;;  %2004 = vrot.lane.b32.xlu1 %v1477_v2, %s3243_s12  ;;  %v590_v44 = vmax.f32 %v486_v34, 0.0  ;;  %v1487_v2 = vsel %vm1423_vm13, %v3653_v55, 0.0  ;;  %v6904_v55 = vld [vmem:[#allocation7_spill] sm:$0xff] }
  0xd6   :  { %vm1426_vm0 = vcmp.eq.s32.totalorder %v6904_v55, 2 }
  0xd7   :  { %2002 = vrot.lane.b32.xlu0 %v1476_v59, %s3243_s12  ;;  %v4391_v56 = vpop.permute.xlu2 %1812  ;;  %v4395_v21 = vpop.permute.xlu1 %1792  ;;  %v635_v62 = vpack.c.bf16 %v590_v44, %v589_v41  ;;  %v1486_v41 = vsel %vm1422_vm14, %v6902_v53, 0.0  ;;  %v1485_v44 = vsel %vm1421_vm15, %v6903_v57, 0.0 }
  0xd8   :  { %6896 = vst [vmem:[#allocation114_spill] sm:$0xff] %v4395_v21  ;;  %v6956_v21 = vld [vmem:[#allocation62_spill] sm:$0xff] }
  0xd9   :  { %v4401_v37 = vpop.permute.xlu0 %1790  ;;  %2983 = vmatmul.msk.bf16.gmra.mxu2 %vm287_vm9, %v3063_v38  ;;  %v415_v13 = vpop.f32.mrf.mxu0  ;;  %3022 = vmatmul.msk.bf16.gmra.mxu3 %vm287_vm9, %v635_v62 }
  0xda   :  { %6897 = vst [vmem:[#allocation115_spill] sm:$0xff] %v4401_v37  ;;  %v416_v63 = vadd.f32 %v4142_v39, %v415_v13  ;;  %v488_v29 = vpop.f32.mrf.mxu2 }
  0xdb   :  { %v489_v27 = vadd.f32 %v4142_v39, %v488_v29  ;;  %v6907_v29 = vld [vmem:[#allocation10_spill] sm:$0xff] }
  0xdc   :  { %v562_v17 = vmax.f32 %v416_v63, 0.0  ;;  %v6906_v63 = vld [vmem:[#allocation3_spill] sm:$0xff] }
  0xdd   :  { %2012 = vrot.lane.b32.xlu2 %v1481_v25, %s3243_s12  ;;  %2010 = vrot.lane.b32.xlu1 %v1480_v1, %s3243_s12  ;;  %v591_v61 = vmax.f32 %v489_v27, 0.0  ;;  %v6905_v1 = vld [vmem:[#allocation8_spill] sm:$0xff]  ;;  %vm1424_vm2 = vcmp.eq.s32.totalorder %v6906_v63, 2 }
  0xde   :  { %v621_v7 = vpack.c.bf16 %v562_v17, %v561_v42  ;;  %vm1425_vm1 = vcmp.eq.s32.totalorder %v6905_v1, 2  ;;  %v1490_v17 = vsel %vm1426_vm0, %v6907_v29, 0.0  ;;  %v6915_v1 = vld [vmem:[#allocation9_spill] sm:$0xff] }
  0xdf   :  { %2008 = vrot.lane.b32.xlu0 %v1479_v23, %s3243_s12  ;;  %v4413_v51 = vpop.permute.xlu2 %1818  ;;  %v4416_v8 = vpop.permute.xlu1 %1798  ;;  %v3050_v23 = vld [vmem:[%s6631_s0 + $0x70] sm:$0xff] }
  0xe0   :  { %6898 = vst [vmem:[#allocation116_spill] sm:$0xff] %v4416_v8  ;;  %3008 = vmatmul.msk.bf16.gmra.mxu1 %vm287_vm9, %v621_v7 }
  0xe1   :  { %v4419_v54 = vpop.permute.xlu0 %1796  ;;  %v418_v20 = vpop.f32.mrf.mxu0 }
  0xe2   :  { %6899 = vst [vmem:[#allocation117_spill] sm:$0xff] %v4419_v54  ;;  %v490_v24 = vpop.f32.mrf.mxu2  ;;  %2969 = vmatmul.msk.bf16.gmra.mxu0 %vm287_vm9, %v3049_v43  ;;  %v419_v31 = vadd.f32 %v4142_v39, %v418_v20  ;;  %v6909_v20 = vld [vmem:[#allocation4_spill] sm:$0xff] }
  0xe3   :  { %v491_v5 = vadd.f32 %v4142_v39, %v490_v24  ;;  %v6972_v54 = vld [vmem:[#allocation80_spill] sm:$0xff] }
  0xe4   :  { %v563_v34 = vmax.f32 %v419_v31, 0.0  ;;  %v6910_v31 = vld [vmem:[#allocation13_spill] sm:$0xff] }
  0xe5   :  { %2018 = vrot.lane.b32.xlu2 %v1484_v11, %s3243_s12  ;;  %2016 = vrot.lane.b32.xlu1 %v1483_v3, %s3243_s12  ;;  %v592_v6 = vmax.f32 %v491_v5, 0.0  ;;  %v6908_v11 = vld [vmem:[#allocation11_spill] sm:$0xff]  ;;  %v1488_v3 = vsel %vm1424_vm2, %v6909_v20, 0.0  ;;  %vm1429_vm3 = vcmp.eq.s32.totalorder %v6910_v31, 2 }
  0xe6   :  { %v1489_v27 = vsel %vm1425_vm1, %v6908_v11, 0.0 }
  0xe7   :  { %2014 = vrot.lane.b32.xlu0 %v1482_v46, %s3243_s12  ;;  %v4435_v30 = vpop.permute.xlu2 %1824  ;;  %v4439_v15 = vpop.permute.xlu1 %1804  ;;  %v636_v48 = vpack.c.bf16 %v592_v6, %v591_v61 }
  0xe8   :  { %6900 = vst [vmem:[#allocation118_spill] sm:$0xff] %v4439_v15 }
  0xe9   :  { %v4445_v52 = vpop.permute.xlu0 %1802  ;;  %2984 = vmatmul.msk.bf16.gmra.mxu2 %vm287_vm9, %v3064_v33  ;;  %v420_v59 = vpop.f32.mrf.mxu0  ;;  %3023 = vmatmul.msk.bf16.gmra.mxu3 %vm287_vm9, %v636_v48 }
  0xea   :  { %6901 = vst [vmem:[#allocation119_spill] sm:$0xff] %v4445_v52  ;;  %v421_v49 = vadd.f32 %v4142_v39, %v420_v59  ;;  %v3065_v59 = vld [vmem:[%s6631_s0 + $0xe8] sm:$0xff] }
  0xeb   :  { %v493_v38 = vpop.f32.mrf.mxu2 }
  0xec   :  { %v564_v25 = vmax.f32 %v421_v49, 0.0  ;;  %v494_v7 = vadd.f32 %v4142_v39, %v493_v38  ;;  %v6914_v38 = vld [vmem:[#allocation17_spill] sm:$0xff] }
  0xed   :  { %2024 = vrot.lane.b32.xlu2 %v1487_v2, %s3243_s12  ;;  %2022 = vrot.lane.b32.xlu1 %v1486_v41, %s3243_s12  ;;  %v6911_v2 = vld [vmem:[#allocation14_spill] sm:$0xff] }
  0xee   :  { %v622_v62 = vpack.c.bf16 %v564_v25, %v563_v34  ;;  %v593_v24 = vmax.f32 %v494_v7, 0.0  ;;  %vm1428_vm4 = vcmp.eq.s32.totalorder %v6911_v2, 2  ;;  %v6912_v41 = vld [vmem:[#allocation6_spill] sm:$0xff]  ;;  %v6913_v34 = vld [vmem:[#allocation16_spill] sm:$0xff]  ;;  %v6916_v7 = vld [vmem:[#allocation19_spill] sm:$0xff] }
  0xef   :  { %2020 = vrot.lane.b32.xlu0 %v1485_v44, %s3243_s12  ;;  %v4457_v19 = vpop.permute.xlu2 %1830  ;;  %v4460_v13 = vpop.permute.xlu1 %1810  ;;  %vm1427_vm5 = vcmp.eq.s32.totalorder %v6912_v41, 2  ;;  %v1493_v49 = vsel %vm1429_vm3, %v6913_v34, 0.0  ;;  %v1492_v25 = vsel %vm1428_vm4, %v6914_v38, 0.0  ;;  %vm1432_vm6 = vcmp.eq.s32.totalorder %v6916_v7, 2  ;;  %v6920_v2 = vld [vmem:[#allocation23_spill] sm:$0xff]  ;;  %v6923_v38 = vld [vmem:[#allocation25_spill] sm:$0xff] }
  0xf0   :  { %3009 = vmatmul.msk.bf16.gmra.mxu1 %vm287_vm9, %v622_v62  ;;  %v1491_v63 = vsel %vm1427_vm5, %v6915_v1, 0.0  ;;  %vm1435_vm10 = vcmp.eq.s32.totalorder %v6923_v38, 2  ;;  %v6926_v7 = vld [vmem:[#allocation29_spill] sm:$0xff] }
  0xf1   :  { %v4463_v42 = vpop.permute.xlu0 %1808  ;;  %v423_v43 = vpop.f32.mrf.mxu0  ;;  %v6931_v38 = vld [vmem:[#allocation33_spill] sm:$0xff] }
  0xf2   :  { %2970 = vmatmul.msk.bf16.gmra.mxu0 %vm287_vm9, %v3050_v23  ;;  %v424_v6 = vadd.f32 %v4142_v39, %v423_v43  ;;  %vm1437_vm14 = vcmp.eq.s32.totalorder %v6931_v38, 2  ;;  %v3067_v38 = vld [vmem:[%s6631_s0 + $0xf8] sm:$0xff] }
  0xf3   :  { %v495_v46 = vpop.f32.mrf.mxu2 }
  0xf4   :  { %v496_v61 = vadd.f32 %v4142_v39, %v495_v46  ;;  %v565_v55 = vmax.f32 %v424_v6, 0.0  ;;  %v3051_v46 = vld [vmem:[%s6631_s0 + $0x78] sm:$0xff] }
  0xf5   :  { %2030 = vrot.lane.b32.xlu2 %v1490_v17, %s3243_s12  ;;  %2028 = vrot.lane.b32.xlu1 %v1489_v27, %s3243_s12  ;;  %v6917_v27 = vld [vmem:[#allocation20_spill] sm:$0xff] }
  0xf6   :  { %v594_v48 = vmax.f32 %v496_v61, 0.0  ;;  %vm1431_vm7 = vcmp.eq.s32.totalorder %v6917_v27, 2 }
  0xf7   :  { %2026 = vrot.lane.b32.xlu0 %v1488_v3, %s3243_s12  ;;  %v4479_v5 = vpop.permute.xlu2 %1836  ;;  %v4483_v33 = vpop.permute.xlu1 %1816  ;;  %v6918_v3 = vld [vmem:[#allocation12_spill] sm:$0xff] }
  0xf8   :  { %v637_v57 = vpack.c.bf16 %v594_v48, %v593_v24  ;;  %vm1430_vm8 = vcmp.eq.s32.totalorder %v6918_v3, 2  ;;  %v6919_v24 = vld [vmem:[#allocation22_spill] sm:$0xff]  ;;  %v1495_v48 = vsel %vm1431_vm7, %v6920_v2, 0.0 }
  0xf9   :  { %v4489_v53 = vpop.permute.xlu0 %1814  ;;  %2985 = vmatmul.msk.bf16.gmra.mxu2 %vm287_vm9, %v3065_v59  ;;  %v425_v44 = vpop.f32.mrf.mxu0  ;;  %v1496_v61 = vsel %vm1432_vm6, %v6919_v24, 0.0  ;;  %v6921_v59 = vld [vmem:[#allocation15_spill] sm:$0xff] }
  0xfa   :  { %v426_v62 = vadd.f32 %v4142_v39, %v425_v44  ;;  %3024 = vmatmul.msk.bf16.gmra.mxu3 %vm287_vm9, %v637_v57  ;;  %v1494_v41 = vsel %vm1430_vm8, %v6921_v59, 0.0 }
  0xfc   :  { %v498_v23 = vpop.f32.mrf.mxu2  ;;  %v566_v29 = vmax.f32 %v426_v62, 0.0  ;;  %v6924_v62 = vld [vmem:[#allocation26_spill] sm:$0xff] }
  0xfd   :  { %2036 = vrot.lane.b32.xlu2 %v1493_v49, %s3243_s12  ;;  %2034 = vrot.lane.b32.xlu1 %v1492_v25, %s3243_s12  ;;  %v499_v31 = vadd.f32 %v4142_v39, %v498_v23  ;;  %vm1434_vm11 = vcmp.eq.s32.totalorder %v6924_v62, 2  ;;  %v6932_v62 = vld [vmem:[#allocation24_spill] sm:$0xff] }
  0xfe   :  { %v623_v43 = vpack.c.bf16 %v566_v29, %v565_v55  ;;  %v6925_v29 = vld [vmem:[#allocation18_spill] sm:$0xff]  ;;  %vm1436_vm15 = vcmp.eq.s32.totalorder %v6932_v62, 2 }
  0xff   :  { %2032 = vrot.lane.b32.xlu0 %v1491_v63, %s3243_s12  ;;  %v4501_v17 = vpop.permute.xlu2 %1842  ;;  %v4504_v11 = vpop.permute.xlu1 %1822  ;;  %v595_v49 = vmax.f32 %v499_v31, 0.0  ;;  %v3066_v63 = vld [vmem:[%s6631_s0 + $0xf0] sm:$0xff]  ;;  %vm1433_vm12 = vcmp.eq.s32.totalorder %v6925_v29, 2 }
 0x100   :  { %3010 = vmatmul.msk.bf16.gmra.mxu1 %vm287_vm9, %v623_v43  ;;  %v1499_v43 = vsel %vm1435_vm10, %v6926_v7, 0.0 }
 0x101   :  { %v4507_v20 = vpop.permute.xlu0 %1820  ;;  %v428_v6 = vpop.f32.mrf.mxu0 }
 0x102   :  { %2971 = vmatmul.msk.bf16.gmra.mxu0 %vm287_vm9, %v3051_v46  ;;  %v429_v25 = vadd.f32 %v4142_v39, %v428_v6  ;;  %v6927_v46 = vld [vmem:[#allocation30_spill] sm:$0xff]  ;;  %v6928_v6 = vld [vmem:[#allocation21_spill] sm:$0xff] }
 0x103   :  { %v1498_v24 = vsel %vm1434_vm11, %v6927_v46, 0.0  ;;  %v1497_v2 = vsel %vm1433_vm12, %v6928_v6, 0.0 }
 0x104   :  { %v500_v34 = vpop.f32.mrf.mxu2 }
 0x105   :  { %2042 = vrot.lane.b32.xlu2 %v1496_v61, %s3243_s12  ;;  %2040 = vrot.lane.b32.xlu1 %v1495_v48, %s3243_s12  ;;  %v501_v57 = vadd.f32 %v4142_v39, %v500_v34  ;;  %v567_v61 = vmax.f32 %v429_v25, 0.0  ;;  %v6930_v34 = vld [vmem:[#allocation32_spill] sm:$0xff] }
 0x106   :  { %vm1438_vm13 = vcmp.eq.s32.totalorder %v6930_v34, 2  ;;  %v6938_v34 = vld [vmem:[#allocation40_spill] sm:$0xff] }
 0x107   :  { %2038 = vrot.lane.b32.xlu0 %v1494_v41, %s3243_s12  ;;  %v4523_v44 = vpop.permute.xlu2 %1976  ;;  %v4527_v55 = vpop.permute.xlu1 %1828  ;;  %v596_v1 = vmax.f32 %v501_v57, 0.0  ;;  %vm1440_vm1 = vcmp.eq.s32.totalorder %v6938_v34, 2 }
 0x108   :  { %6922 = vst [vmem:[#allocation5_spill] sm:$0xff] %v4523_v44 }
 0x109   :  { %v4533_v23 = vpop.permute.xlu0 %1826  ;;  %v638_v27 = vpack.c.bf16 %v596_v1, %v595_v49  ;;  %2986 = vmatmul.msk.bf16.gmra.mxu2 %vm287_vm9, %v3066_v63  ;;  %v430_v3 = vpop.f32.mrf.mxu0  ;;  %v6933_v1 = vld [vmem:[#allocation36_spill] sm:$0xff] }
 0x10a   :  { %v431_v31 = vadd.f32 %v4142_v39, %v430_v3  ;;  %v1502_v63 = vsel %vm1438_vm13, %v6933_v1, 0.0  ;;  %v6935_v3 = vld [vmem:[#allocation28_spill] sm:$0xff]  ;;  %v6939_v1 = vld [vmem:[#allocation31_spill] sm:$0xff] }
 0x10b   :  { %3025 = vmatmul.msk.bf16.gmra.mxu3 %vm287_vm9, %v638_v27  ;;  %v1500_v46 = vsel %vm1436_vm15, %v6935_v3, 0.0  ;;  %vm1439_vm2 = vcmp.eq.s32.totalorder %v6939_v1, 2 }
 0x10c   :  { %v503_v48 = vpop.f32.mrf.mxu2  ;;  %v568_v59 = vmax.f32 %v431_v31, 0.0 }
 0x10d   :  { %2048 = vrot.lane.b32.xlu2 %v1499_v43, %s3243_s12  ;;  %2046 = vrot.lane.b32.xlu1 %v1498_v24, %s3243_s12  ;;  %v504_v29 = vadd.f32 %v4142_v39, %v503_v48  ;;  %v6934_v43 = vld [vmem:[#allocation37_spill] sm:$0xff] }
 0x10e   :  { %v624_v49 = vpack.c.bf16 %v568_v59, %v567_v61  ;;  %v1501_v27 = vsel %vm1437_vm14, %v6934_v43, 0.0 }
 0x10f   :  { %2044 = vrot.lane.b32.xlu0 %v1497_v2, %s3243_s12  ;;  %v4545_v41 = vpop.permute.xlu2 %1982  ;;  %v4548_v57 = vpop.permute.xlu1 %1834  ;;  %v597_v61 = vmax.f32 %v504_v29, 0.0  ;;  %v6937_v2 = vld [vmem:[#allocation39_spill] sm:$0xff] }
 0x110   :  { %6929 = vst [vmem:[#allocation2_spill] sm:$0xff] %v4545_v41  ;;  %3011 = vmatmul.msk.bf16.gmra.mxu1 %vm287_vm9, %v624_v49  ;;  %vm1441_vm0 = vcmp.eq.s32.totalorder %v6937_v2, 2  ;;  %v4895_v41 = vld [vmem:[%s6628_s5 + $0x38] sm:$0xff] }
 0x111   :  { %v4551_v25 = vpop.permute.xlu0 %1832  ;;  %v433_v7 = vpop.f32.mrf.mxu0 }
 0x112   :  { %v434_v48 = vadd.f32 %v4142_v39, %v433_v7  ;;  %v6941_v7 = vld [vmem:[#allocation44_spill] sm:$0xff] }
 0x113   :  { %v1504_v3 = vsel %vm1440_vm1, %v6941_v7, 0.0  ;;  %vm1455_vm1 = vcmp.eq.s32.totalorder %v4161_v60, 2 }
 0x114   :  { %v505_v24 = vpop.f32.mrf.mxu2 }
 0x115   :  { %2054 = vrot.lane.b32.xlu2 %v1502_v63, %s3243_s12  ;;  %2052 = vrot.lane.b32.xlu1 %v1501_v27, %s3243_s12  ;;  %v506_v31 = vadd.f32 %v4142_v39, %v505_v24  ;;  %v6940_v63 = vld [vmem:[#allocation43_spill] sm:$0xff] }
 0x116   :  { %v1505_v29 = vsel %vm1441_vm0, %v6940_v63, 0.0  ;;  %v6945_v63 = vld [vmem:[#allocation47_spill] sm:$0xff] }
 0x117   :  { %2050 = vrot.lane.b32.xlu0 %v1500_v46, %s3243_s12  ;;  %v4563_v6 = vpop.permute.xlu2 %1988  ;;  %v4567_v59 = vpop.permute.xlu1 %1840  ;;  %v598_v49 = vmax.f32 %v506_v31, 0.0  ;;  %v569_v46 = vmax.f32 %v434_v48, 0.0  ;;  %v6942_v31 = vld [vmem:[#allocation35_spill] sm:$0xff]  ;;  %vm1443_vm4 = vcmp.eq.s32.totalorder %v6945_v63, 2  ;;  %7014 = vst [vmem:[#allocation47_spill] sm:$0xff] %v4895_v41 }
 0x118   :  { %6936 = vst [vmem:[#allocation7_spill] sm:$0xff] %v4563_v6  ;;  %v1503_v2 = vsel %vm1439_vm2, %v6942_v31, 0.0  ;;  %v6948_v31 = vld [vmem:[#allocation53_spill] sm:$0xff]  ;;  %v4857_v6 = vld [vmem:[%s6629_s6 + $0x48] sm:$0xff] }
 0x119   :  { %v4573_v62 = vpop.permute.xlu0 %1838  ;;  %v639_v43 = vpack.c.bf16 %v598_v49, %v597_v61  ;;  %2987 = vmatmul.msk.bf16.gmra.mxu2 %vm287_vm9, %v3067_v38  ;;  %v435_v27 = vpop.f32.mrf.mxu0  ;;  %v6944_v38 = vld [vmem:[#allocation46_spill] sm:$0xff] }
 0x11a   :  { %v436_v24 = vadd.f32 %v4142_v39, %v435_v27  ;;  %vm1444_vm3 = vcmp.eq.s32.totalorder %v6944_v38, 2  ;;  %v6947_v27 = vld [vmem:[#allocation52_spill] sm:$0xff] }
 0x11b   :  { %3026 = vmatmul.msk.bf16.gmra.mxu3 %vm287_vm9, %v639_v43  ;;  %v1508_v7 = vsel %vm1444_vm3, %v6947_v27, 0.0  ;;  %vm1459_vm3 = vcmp.eq.s32.totalorder %v4206_v9, 2 }
 0x11c   :  { %v508_v34 = vpop.f32.mrf.mxu2  ;;  %v570_v15 = vmax.f32 %v436_v24, 0.0 }
 0x11d   :  { %2060 = vrot.lane.b32.xlu2 %v1505_v29, %s3243_s12  ;;  %2058 = vrot.lane.b32.xlu1 %v1504_v3, %s3243_s12  ;;  %v4585_v61 = vpop.f32.mrf.mxu1  ;;  %v6946_v29 = vld [vmem:[#allocation38_spill] sm:$0xff]  ;;  %v509_v3 = vadd.f32 %v4142_v39, %v508_v34  ;;  %v6951_v34 = vld [vmem:[#allocation55_spill] sm:$0xff] }
 0x11e   :  { %v625_v48 = vpack.c.bf16 %v570_v15, %v569_v46  ;;  %vm1442_vm5 = vcmp.eq.s32.totalorder %v6946_v29, 2  ;;  %vm1447_vm6 = vcmp.eq.s32.totalorder %v6951_v34, 2 }
 0x11f   :  { %2056 = vrot.lane.b32.xlu0 %v1503_v2, %s3243_s12  ;;  %v4587_v49 = vpop.permute.xlu2 %1994  ;;  %v4590_v1 = vpop.permute.xlu1 %1974  ;;  %v1507_v2 = vsel %vm1443_vm4, %v6948_v31, 0.0  ;;  %v1506_v38 = vsel %vm1442_vm5, %v6949_v32, 0.0  ;;  %v599_v46 = vmax.f32 %v509_v3, 0.0  ;;  %v6952_v32 = vld [vmem:[#allocation56_spill] sm:$0xff]  ;;  %v6954_v3 = vld [vmem:[#allocation45_spill] sm:$0xff] }
 0x120   :  { %6943 = vst [vmem:[#allocation8_spill] sm:$0xff] %v4587_v49  ;;  %3012 = vmatmul.msk.bf16.gmra.mxu1 %vm287_vm9, %v625_v48  ;;  %vm1446_vm7 = vcmp.eq.s32.totalorder %v6952_v32, 2  ;;  %vm1445_vm8 = vcmp.eq.s32.totalorder %v6954_v3, 2 }
 0x121   :  { %v4593_v43 = vpop.permute.xlu0 %1844  ;;  %v438_v24 = vpop.f32.mrf.mxu0  ;;  %v1510_v10 = vsel %vm1446_vm7, %v6956_v21, 0.0  ;;  %v6959_v21 = vld [vmem:[#allocation64_spill] sm:$0xff]  ;;  %vm1461_vm7 = vcmp.eq.s32.totalorder %v4252_v28, 2 }
 0x122   :  { %v439_v27 = vadd.f32 %v4142_v39, %v438_v24  ;;  %v1509_v24 = vsel %vm1445_vm8, %v6957_v0, 0.0  ;;  %vm1450_vm10 = vcmp.eq.s32.totalorder %v6959_v21, 2  ;;  %v6960_v0 = vld [vmem:[#allocation65_spill] sm:$0xff] }
 0x123   :  { %vm1449_vm11 = vcmp.eq.s32.totalorder %v6960_v0, 2 }
 0x124   :  { %v510_v15 = vpop.f32.mrf.mxu2  ;;  %v571_v45 = vmax.f32 %v439_v27, 0.0 }
 0x125   :  { %2066 = vrot.lane.b32.xlu2 %v1508_v7, %s3243_s12  ;;  %2064 = vrot.lane.b32.xlu1 %v1507_v2, %s3243_s12  ;;  %v511_v63 = vadd.f32 %v4142_v39, %v510_v15  ;;  %v4605_v48 = vpop.f32.mrf.mxu1  ;;  %v6955_v2 = vld [vmem:[#allocation61_spill] sm:$0xff] }
 0x126   :  { %v1511_v15 = vsel %vm1447_vm6, %v6955_v2, 0.0  ;;  %v6962_v2 = vld [vmem:[#allocation54_spill] sm:$0xff] }
 0x127   :  { %2062 = vrot.lane.b32.xlu0 %v1506_v38, %s3243_s12  ;;  %v4607_v29 = vpop.permute.xlu2 %2000  ;;  %v4611_v31 = vpop.permute.xlu1 %1980  ;;  %v600_v7 = vmax.f32 %v511_v63, 0.0  ;;  %vm1448_vm12 = vcmp.eq.s32.totalorder %v6962_v2, 2 }
 0x128   :  { %6950 = vst [vmem:[#allocation3_spill] sm:$0xff] %v4607_v29  ;;  %v1512_v21 = vsel %vm1448_vm12, %v6965_v16, 0.0  ;;  %v6968_v16 = vld [vmem:[#allocation74_spill] sm:$0xff] }
 0x129   :  { %v4614_v8 = vpop.permute.xlu0 %1978  ;;  %v640_v38 = vpack.c.bf16 %v600_v7, %v599_v46  ;;  %v440_v36 = vpop.f32.mrf.mxu0  ;;  %vm1452_vm14 = vcmp.eq.s32.totalorder %v6968_v16, 2 }
 0x12a   :  { %6953 = vst [vmem:[#allocation10_spill] sm:$0xff] %v4614_v8  ;;  %v441_v34 = vadd.f32 %v4142_v39, %v440_v36  ;;  %v1516_v12 = vsel %vm1452_vm14, %v6972_v54, 0.0  ;;  %v6976_v54 = vld [vmem:[#allocation82_spill] sm:$0xff] }
 0x12b   :  { %3027 = vmatmul.msk.bf16.gmra.mxu3 %vm287_vm9, %v640_v38  ;;  %vm1456_vm0 = vcmp.eq.s32.totalorder %v6976_v54, 2 }
 0x12c   :  { %v513_v63 = vpop.f32.mrf.mxu2  ;;  %v572_v32 = vmax.f32 %v441_v34, 0.0 }
 0x12d   :  { %2072 = vrot.lane.b32.xlu2 %v1511_v15, %s3243_s12  ;;  %2070 = vrot.lane.b32.xlu1 %v1510_v10, %s3243_s12  ;;  %v4625_v3 = vpop.f32.mrf.mxu1  ;;  %v6963_v10 = vld [vmem:[#allocation69_spill] sm:$0xff]  ;;  %v514_v38 = vadd.f32 %v4142_v39, %v513_v63 }
 0x12e   :  { %v626_v27 = vpack.c.bf16 %v572_v32, %v571_v45  ;;  %v1514_v15 = vsel %vm1450_vm10, %v6963_v10, 0.0  ;;  %v6967_v63 = vld [vmem:[#allocation73_spill] sm:$0xff] }
 0x12f   :  { %2068 = vrot.lane.b32.xlu0 %v1509_v24, %s3243_s12  ;;  %v4627_v46 = vpop.permute.xlu2 %2006  ;;  %v4630_v36 = vpop.permute.xlu1 %1986  ;;  %v6964_v24 = vld [vmem:[#allocation71_spill] sm:$0xff]  ;;  %v601_v32 = vmax.f32 %v514_v38, 0.0  ;;  %vm1453_vm13 = vcmp.eq.s32.totalorder %v6967_v63, 2  ;;  %v6971_v38 = vld [vmem:[#allocation78_spill] sm:$0xff] }
 0x130   :  { %6958 = vst [vmem:[#allocation11_spill] sm:$0xff] %v4627_v46  ;;  %3013 = vmatmul.msk.bf16.gmra.mxu1 %vm287_vm9, %v626_v27  ;;  %v1513_v22 = vsel %vm1449_vm11, %v6964_v24, 0.0 }
 0x131   :  { %v4633_v7 = vpop.permute.xlu0 %1984  ;;  %v443_v34 = vpop.f32.mrf.mxu0 }
 0x132   :  { %6961 = vst [vmem:[#allocation4_spill] sm:$0xff] %v4633_v7  ;;  %v444_v10 = vadd.f32 %v4142_v39, %v443_v34 }
 0x134   :  { %v515_v45 = vpop.f32.mrf.mxu2  ;;  %v573_v37 = vmax.f32 %v444_v10, 0.0 }
 0x135   :  { %2078 = vrot.lane.b32.xlu2 %v1514_v15, %s3243_s12  ;;  %2076 = vrot.lane.b32.xlu1 %v1513_v22, %s3243_s12  ;;  %v516_v0 = vadd.f32 %v4142_v39, %v515_v45  ;;  %v4645_v27 = vpop.f32.mrf.mxu1  ;;  %v6970_v22 = vld [vmem:[#allocation63_spill] sm:$0xff]  ;;  %v1517_v45 = vsel %vm1453_vm13, %v6971_v38, 0.0  ;;  %v6980_v38 = vld [vmem:[#allocation72_spill] sm:$0xff]  ;;  %vm1532_vm13 = vcmp.eq.s32.totalorder %v4805_v4, 3 }
 0x136   :  { %vm1451_vm15 = vcmp.eq.s32.totalorder %v6970_v22, 2  ;;  %vm1454_vm2 = vcmp.eq.s32.totalorder %v6980_v38, 2 }
 0x137   :  { %2074 = vrot.lane.b32.xlu0 %v1512_v21, %s3243_s12  ;;  %v4647_v2 = vpop.permute.xlu2 %2012  ;;  %v4651_v24 = vpop.permute.xlu1 %1992  ;;  %v602_v15 = vmax.f32 %v516_v0, 0.0  ;;  %v1515_v34 = vsel %vm1451_vm15, %v6973_v18, 0.0 }
 0x138   :  { %6966 = vst [vmem:[#allocation13_spill] sm:$0xff] %v4647_v2  ;;  %v6992_v2 = vld [vmem:[#allocation84_spill] sm:$0xff] }
 0x139   :  { %v4654_v52 = vpop.permute.xlu0 %1990  ;;  %v641_v21 = vpack.c.bf16 %v602_v15, %v601_v32  ;;  %v445_v26 = vpop.f32.mrf.mxu0 }
 0x13a   :  { %6969 = vst [vmem:[#allocation14_spill] sm:$0xff] %v4654_v52  ;;  %v446_v63 = vadd.f32 %v4142_v39, %v445_v26 }
 0x13b   :  { %3028 = vmatmul.msk.bf16.gmra.mxu3 %vm287_vm9, %v641_v21 }
 0x13c   :  { %v518_v0 = vpop.f32.mrf.mxu2  ;;  %v574_v16 = vmax.f32 %v446_v63, 0.0  ;;  %v4673_v18 = vpop.f32.mrf.mxu3  ;;  %v6981_v63 = vld [vmem:[#allocation87_spill] sm:$0xff] }
 0x13d   :  { %2084 = vrot.lane.b32.xlu2 %v1517_v45, %s3243_s12  ;;  %2082 = vrot.lane.b32.xlu1 %v1516_v12, %s3243_s12  ;;  %v4665_v22 = vpop.f32.mrf.mxu1  ;;  %6978 = vst [vmem:[#allocation9_spill] sm:$0xff] %v4673_v18  ;;  %v1520_v12 = vsel %vm1456_vm0, %v4178_v50, 0.0  ;;  %v519_v45 = vadd.f32 %v4142_v39, %v518_v0  ;;  %vm1535_vm0 = vcmp.eq.s32.totalorder %v4857_v6, 3 }
 0x13e   :  { %6974 = vst [vmem:[#allocation6_spill] sm:$0xff] %v4665_v22  ;;  %v627_v10 = vpack.c.bf16 %v574_v16, %v573_v37  ;;  %v6982_v37 = vld [vmem:[#allocation76_spill] sm:$0xff] }
 0x13f   :  { %2080 = vrot.lane.b32.xlu0 %v1515_v34, %s3243_s12  ;;  %v4667_v32 = vpop.permute.xlu2 %2018  ;;  %v4670_v26 = vpop.permute.xlu1 %1998  ;;  %v1519_v34 = vsel %vm1455_vm1, %v6981_v63, 0.0  ;;  %v1518_v16 = vsel %vm1454_vm2, %v6982_v37, 0.0  ;;  %v603_v54 = vmax.f32 %v519_v45, 0.0  ;;  %v6986_v63 = vld [vmem:[#allocation89_spill] sm:$0xff] }
 0x140   :  { %6975 = vst [vmem:[#allocation16_spill] sm:$0xff] %v4667_v32  ;;  %3014 = vmatmul.msk.bf16.gmra.mxu1 %vm287_vm9, %v627_v10  ;;  %vm1458_vm4 = vcmp.eq.s32.totalorder %v6986_v63, 2 }
 0x141   :  { %6977 = vst [vmem:[#allocation17_spill] sm:$0xff] %v4670_v26  ;;  %v4675_v15 = vpop.permute.xlu0 %1996  ;;  %v448_v21 = vpop.f32.mrf.mxu0  ;;  %v4961_v26 = vld [vmem:[%s6629_s6 + $0x78] sm:$0xff] }
 0x142   :  { %6979 = vst [vmem:[#allocation19_spill] sm:$0xff] %v4675_v15  ;;  %v449_v0 = vadd.f32 %v4142_v39, %v448_v21 }
 0x143   :  { %7025 = vst [vmem:[#allocation64_spill] sm:$0xff] %v4961_v26 }
 0x144   :  { %v520_v60 = vpop.f32.mrf.mxu2  ;;  %v4696_v37 = vpop.f32.mrf.mxu3  ;;  %v575_v9 = vmax.f32 %v449_v0, 0.0 }
 0x145   :  { %2090 = vrot.lane.b32.xlu2 %v1520_v12, %s3243_s12  ;;  %2088 = vrot.lane.b32.xlu1 %v1519_v34, %s3243_s12  ;;  %v521_v18 = vadd.f32 %v4142_v39, %v520_v60  ;;  %v4687_v10 = vpop.f32.mrf.mxu1  ;;  %6987 = vst [vmem:[#allocation23_spill] sm:$0xff] %v4696_v37  ;;  %v6989_v34 = vld [vmem:[#allocation81_spill] sm:$0xff] }
 0x146   :  { %6983 = vst [vmem:[#allocation20_spill] sm:$0xff] %v4687_v10  ;;  %vm1457_vm5 = vcmp.eq.s32.totalorder %v6989_v34, 2  ;;  %v4909_v10 = vld [vmem:[%s6629_s6 + $0x60] sm:$0xff] }
 0x147   :  { %2086 = vrot.lane.b32.xlu0 %v1518_v16, %s3243_s12  ;;  %v4689_v50 = vpop.permute.xlu2 %2024  ;;  %v4693_v38 = vpop.permute.xlu1 %2004  ;;  %v604_v12 = vmax.f32 %v521_v18, 0.0  ;;  %v6990_v16 = vld [vmem:[#allocation93_spill] sm:$0xff]  ;;  %v1521_v46 = vsel %vm1457_vm5, %v6992_v2, 0.0 }
 0x148   :  { %6984 = vst [vmem:[#allocation12_spill] sm:$0xff] %v4689_v50  ;;  %v1523_v60 = vsel %vm1459_vm3, %v6990_v16, 0.0  ;;  %v6991_v50 = vld [vmem:[#allocation95_spill] sm:$0xff]  ;;  %vm1538_vm3 = vcmp.eq.s32.totalorder %v4909_v10, 3 }
 0x149   :  { %6985 = vst [vmem:[#allocation22_spill] sm:$0xff] %v4693_v38  ;;  %v4698_v45 = vpop.permute.xlu0 %2002  ;;  %v642_v32 = vpack.c.bf16 %v604_v12, %v603_v54  ;;  %v450_v40 = vpop.f32.mrf.mxu0  ;;  %v1522_v35 = vsel %vm1458_vm4, %v6991_v50, 0.0  ;;  %v4731_v50 = vld [vmem:[%s6628_s5] sm:$0xff] }
 0x14a   :  { %6988 = vst [vmem:[#allocation15_spill] sm:$0xff] %v4698_v45  ;;  %v451_v21 = vadd.f32 %v4142_v39, %v450_v40  ;;  %v4716_v39 = vld [vmem:[%s6629_s6] sm:$0xff]  ;;  %v4791_v45 = vld [vmem:[%s6628_s5 + $0x8] sm:$0xff] }
 0x14b   :  { %3029 = vmatmul.msk.bf16.gmra.mxu3 %vm287_vm9, %v642_v32  ;;  %vm1526_vm6 = vcmp.eq.s32.totalorder %v4716_v39, 3  ;;  %v4737_v12 = vld [vmem:[%s6632_s2] ss:$0 sm:$0xff] }
 0x14c   :  { %v523_v18 = vpop.f32.mrf.mxu2  ;;  %v576_v63 = vmax.f32 %v451_v21, 0.0  ;;  %v4722_v32 = vpop.f32.mrf.mxu3  ;;  %v1590_v0 = vsel %vm1526_vm6, %v4731_v50, 0.0  ;;  %vm1541_vm6 = vcmp.eq.s32.totalorder %v4961_v26, 3 }
 0x14d   :  { %2096 = vrot.lane.b32.xlu2 %v1523_v60, %s3243_s12  ;;  %2094 = vrot.lane.b32.xlu1 %v1522_v35, %s3243_s12  ;;  %v4709_v34 = vpop.f32.mrf.mxu1  ;;  %6995 = vst [vmem:[#allocation18_spill] sm:$0xff] %v4722_v32  ;;  %v524_v28 = vadd.f32 %v4737_v12, %v523_v18  ;;  %v1525_v60 = vsel %vm1461_vm7, %v4270_v58, 0.0  ;;  %v4753_v58 = vld [vmem:[%s6629_s6 + $0x18] sm:$0xff] }
 0x14e   :  { %v628_v40 = vpack.c.bf16 %v576_v63, %v575_v9  ;;  %v6998_v9 = vld [vmem:[#allocation91_spill] sm:$0xff]  ;;  %vm1529_vm10 = vcmp.eq.s32.totalorder %v4753_v58, 3 }
 0x14f   :  { %2092 = vrot.lane.b32.xlu0 %v1521_v46, %s3243_s12  ;;  %v4711_v54 = vpop.permute.xlu2 %2030  ;;  %v4719_v2 = vpop.permute.xlu1 %2010  ;;  %v6997_v46 = vld [vmem:[#allocation88_spill] sm:$0xff] }
 0x150   :  { %6993 = vst [vmem:[#allocation25_spill] sm:$0xff] %v4711_v54  ;;  %vm1460_vm8 = vcmp.eq.s32.totalorder %v6997_v46, 2  ;;  %3015 = vmatmul.msk.bf16.gmra.mxu1 %vm287_vm9, %v628_v40  ;;  %v605_v40 = vmax.f32 %v524_v28, 0.0  ;;  %v4762_v28 = vld [vmem:[%s6629_s6 + $0x10] sm:$0xff] }
 0x151   :  { %6994 = vst [vmem:[#allocation26_spill] sm:$0xff] %v4719_v2  ;;  %v4724_v35 = vpop.permute.xlu0 %2008  ;;  %v453_v16 = vpop.f32.mrf.mxu0  ;;  %v1524_v21 = vsel %vm1460_vm8, %v6998_v9, 0.0  ;;  %vm1528_vm11 = vcmp.eq.s32.totalorder %v4762_v28, 3 }
 0x152   :  { %6996 = vst [vmem:[#allocation29_spill] sm:$0xff] %v4724_v35  ;;  %v454_v18 = vadd.f32 %v4737_v12, %v453_v16  ;;  %v4778_v16 = vld [vmem:[%s6628_s5 + $0x18] sm:$0xff] }
 0x154   :  { %v525_v63 = vpop.f32.mrf.mxu2  ;;  %v4765_v9 = vpop.f32.mrf.mxu3  ;;  %v577_v35 = vmax.f32 %v454_v18, 0.0 }
 0x155   :  { %2230 = vrot.lane.b32.xlu2 %v1590_v0, %s3244_s19  ;;  %2100 = vrot.lane.b32.xlu1 %v1525_v60, %s3243_s12  ;;  %v526_v46 = vadd.f32 %v4737_v12, %v525_v63  ;;  %v4746_v32 = vpop.f32.mrf.mxu1  ;;  %7002 = vst [vmem:[#allocation33_spill] sm:$0xff] %v4765_v9  ;;  %v4772_v63 = vld [vmem:[%s6629_s6 + $0x8] sm:$0xff]  ;;  %v4784_v9 = vld [vmem:[%s6628_s5 + $0x10] sm:$0xff] }
 0x156   :  { %6999 = vst [vmem:[#allocation30_spill] sm:$0xff] %v4746_v32  ;;  %vm1527_vm12 = vcmp.eq.s32.totalorder %v4772_v63, 3 }
 0x157   :  { %2098 = vrot.lane.b32.xlu0 %v1524_v21, %s3243_s12  ;;  %v4748_v54 = vpop.permute.xlu2 %2036  ;;  %v4757_v0 = vpop.permute.xlu1 %2016  ;;  %v606_v60 = vmax.f32 %v526_v46, 0.0  ;;  %v1591_v29 = vsel %vm1527_vm12, %v4791_v45, 0.0 }
 0x158   :  { %7000 = vst [vmem:[#allocation21_spill] sm:$0xff] %v4748_v54  ;;  %v1593_v54 = vsel %vm1529_vm10, %v4778_v16, 0.0 }
 0x159   :  { %7001 = vst [vmem:[#allocation32_spill] sm:$0xff] %v4757_v0  ;;  %v4767_v21 = vpop.permute.xlu0 %2014  ;;  %v643_v37 = vpack.c.bf16 %v606_v60, %v605_v40  ;;  %v455_v46 = vpop.f32.mrf.mxu0 }
 0x15a   :  { %7003 = vst [vmem:[#allocation24_spill] sm:$0xff] %v4767_v21  ;;  %v1592_v21 = vsel %vm1528_vm11, %v4784_v9, 0.0  ;;  %v456_v14 = vadd.f32 %v4737_v12, %v455_v46  ;;  %vm2422_vm11 = vcmask 261120  }
 0x15b   :  { %3030 = vmatmul.msk.bf16.gmra.mxu3 %vm287_vm9, %v643_v37 }
 0x15c   :  { %v528_v40 = vpop.f32.mrf.mxu2  ;;  %v578_v60 = vmax.f32 %v456_v14, 0.0  ;;  %v4813_v14 = vld [vmem:[%s6629_s6 + $0x28] sm:$0xff] }
 0x15d   :  { %2236 = vrot.lane.b32.xlu2 %v1593_v54, %s3244_s19  ;;  %2234 = vrot.lane.b32.xlu1 %v1592_v21, %s3244_s19  ;;  %v4798_v18 = vpop.f32.mrf.mxu1  ;;  %vm1531_vm14 = vcmp.eq.s32.totalorder %v4813_v14, 3  ;;  %v4823_v21 = vld [vmem:[%s6629_s6 + $0x20] sm:$0xff] }
 0x15e   :  { %7004 = vst [vmem:[#allocation36_spill] sm:$0xff] %v4798_v18  ;;  %v629_v37 = vpack.c.bf16 %v578_v60, %v577_v35  ;;  %vm1530_vm15 = vcmp.eq.s32.totalorder %v4823_v21, 3  ;;  %v4830_v35 = vld [vmem:[%s6628_s5 + $0x30] sm:$0xff] }
 0x15f   :  { %2232 = vrot.lane.b32.xlu0 %v1591_v29, %s3244_s19  ;;  %v4800_v46 = vpop.permute.xlu2 %2042  ;;  %v4808_v0 = vpop.permute.xlu1 %2022  ;;  %v1596_v60 = vsel %vm1532_vm13, %v4830_v35, 0.0 }
 0x160   :  { %7005 = vst [vmem:[#allocation37_spill] sm:$0xff] %v4800_v46  ;;  %v4816_v29 = vpop.f32.mrf.mxu3  ;;  %3016 = vmatmul.msk.bf16.gmra.mxu1 %vm287_vm9, %v629_v37  ;;  %v529_v46 = vadd.f32 %v4737_v12, %v528_v40  ;;  %v4843_v37 = vld [vmem:[%s6628_s5 + $0x20] sm:$0xff] }
 0x161   :  { %7006 = vst [vmem:[#allocation28_spill] sm:$0xff] %v4808_v0  ;;  %v4818_v54 = vpop.permute.xlu0 %2020  ;;  %v1594_v15 = vsel %vm1530_vm15, %v4843_v37, 0.0 }
 0x162   :  { %7007 = vst [vmem:[#allocation39_spill] sm:$0xff] %v4816_v29  ;;  %v458_v29 = vpop.f32.mrf.mxu0  ;;  %v607_v40 = vmax.f32 %v529_v46, 0.0 }
 0x163   :  { %7008 = vst [vmem:[#allocation40_spill] sm:$0xff] %v4818_v54  ;;  %v4837_v54 = vld [vmem:[%s6628_s5 + $0x28] sm:$0xff] }
 0x164   :  { %v1595_v0 = vsel %vm1531_vm14, %v4837_v54, 0.0  ;;  %v530_v49 = vpop.f32.mrf.mxu2 }
 0x165   :  { %2242 = vrot.lane.b32.xlu2 %v1596_v60, %s3244_s19  ;;  %2240 = vrot.lane.b32.xlu1 %v1595_v0, %s3244_s19  ;;  %v531_v47 = vadd.f32 %v4737_v12, %v530_v49  ;;  %v4850_v2 = vpop.f32.mrf.mxu1  ;;  %v459_v60 = vadd.f32 %v4737_v12, %v458_v29  ;;  %v4866_v49 = vld [vmem:[%s6629_s6 + $0x40] sm:$0xff]  ;;  %v4882_v29 = vld [vmem:[%s6628_s5 + $0x48] sm:$0xff] }
 0x166   :  { %vm1534_vm1 = vcmp.eq.s32.totalorder %v4866_v49, 3 }
 0x167   :  { %2238 = vrot.lane.b32.xlu0 %v1594_v15, %s3244_s19  ;;  %v4852_v52 = vpop.permute.xlu2 %2048  ;;  %v4861_v18 = vpop.permute.xlu1 %2028  ;;  %v608_v15 = vmax.f32 %v531_v47, 0.0  ;;  %v579_v38 = vmax.f32 %v459_v60, 0.0 }
 0x168   :  { %7009 = vst [vmem:[#allocation31_spill] sm:$0xff] %v4852_v52  ;;  %v4869_v0 = vpop.f32.mrf.mxu3  ;;  %v4876_v52 = vld [vmem:[%s6629_s6 + $0x38] sm:$0xff] }
 0x169   :  { %7010 = vst [vmem:[#allocation43_spill] sm:$0xff] %v4861_v18  ;;  %v4871_v46 = vpop.permute.xlu0 %2026  ;;  %vm1533_vm2 = vcmp.eq.s32.totalorder %v4876_v52, 3  ;;  %v1599_v18 = vsel %vm1535_vm0, %v4882_v29, 0.0  ;;  %v644_v32 = vpack.c.bf16 %v608_v15, %v607_v40 }
 0x16a   :  { %7011 = vst [vmem:[#allocation44_spill] sm:$0xff] %v4869_v0  ;;  %v460_v47 = vpop.f32.mrf.mxu0  ;;  %v4888_v0 = vld [vmem:[%s6628_s5 + $0x40] sm:$0xff] }
 0x16b   :  { %7012 = vst [vmem:[#allocation35_spill] sm:$0xff] %v4871_v46  ;;  %v1598_v46 = vsel %vm1534_vm1, %v4888_v0, 0.0  ;;  %v461_v7 = vadd.f32 %v4737_v12, %v460_v47  ;;  %3031 = vmatmul.msk.bf16.gmra.mxu3 %vm287_vm9, %v644_v32 }
 0x16c   :  { %7013 = vst [vmem:[#allocation46_spill] sm:$0xff] %v4876_v52  ;;  %v1597_v52 = vsel %vm1533_vm2, %v4895_v41, 0.0  ;;  %v533_v40 = vpop.f32.mrf.mxu2 }
 0x16d   :  { %2248 = vrot.lane.b32.xlu2 %v1599_v18, %s3244_s19  ;;  %v580_v15 = vmax.f32 %v461_v7, 0.0  ;;  %2246 = vrot.lane.b32.xlu1 %v1598_v46, %s3244_s19  ;;  %v4902_v60 = vpop.f32.mrf.mxu1  ;;  %v4917_v7 = vld [vmem:[%s6629_s6 + $0x58] sm:$0xff]  ;;  %v4927_v46 = vld [vmem:[%s6629_s6 + $0x50] sm:$0xff] }
 0x16e   :  { %7015 = vst [vmem:[#allocation38_spill] sm:$0xff] %v4902_v60  ;;  %vm1537_vm4 = vcmp.eq.s32.totalorder %v4917_v7, 3  ;;  %vm1536_vm5 = vcmp.eq.s32.totalorder %v4927_v46, 3 }
 0x16f   :  { %2244 = vrot.lane.b32.xlu0 %v1597_v52, %s3244_s19  ;;  %v4904_v47 = vpop.permute.xlu2 %2054  ;;  %v630_v32 = vpack.c.bf16 %v580_v15, %v579_v38  ;;  %v4912_v41 = vpop.permute.xlu1 %2034  ;;  %7020 = vst [vmem:[#allocation56_spill] sm:$0xff] %v4927_v46  ;;  %v4934_v38 = vld [vmem:[%s6628_s5 + $0x60] sm:$0xff] }
 0x170   :  { %7016 = vst [vmem:[#allocation52_spill] sm:$0xff] %v4904_v47  ;;  %v4920_v52 = vpop.f32.mrf.mxu3  ;;  %v1602_v15 = vsel %vm1538_vm3, %v4934_v38, 0.0  ;;  %v534_v47 = vadd.f32 %v4737_v12, %v533_v40 }
 0x171   :  { %7017 = vst [vmem:[#allocation53_spill] sm:$0xff] %v4912_v41  ;;  %v4922_v18 = vpop.permute.xlu0 %2032  ;;  %3017 = vmatmul.msk.bf16.gmra.mxu1 %vm287_vm9, %v630_v32  ;;  %v4947_v32 = vld [vmem:[%s6628_s5 + $0x50] sm:$0xff] }
 0x172   :  { %7018 = vst [vmem:[#allocation42_spill] sm:$0xff] %v4920_v52  ;;  %v463_v52 = vpop.f32.mrf.mxu0  ;;  %v1600_v60 = vsel %vm1536_vm5, %v4947_v32, 0.0  ;;  %v609_v40 = vmax.f32 %v534_v47, 0.0 }
 0x173   :  { %7019 = vst [vmem:[#allocation55_spill] sm:$0xff] %v4922_v18  ;;  %v4941_v18 = vld [vmem:[%s6628_s5 + $0x58] sm:$0xff] }
 0x174   :  { %7021 = vst [vmem:[#allocation45_spill] sm:$0xff] %v4941_v18  ;;  %v1601_v41 = vsel %vm1537_vm4, %v4941_v18, 0.0  ;;  %v535_v46 = vpop.f32.mrf.mxu2 }
 0x175   :  { %7022 = vst [vmem:[#allocation61_spill] sm:$0xff] %v4947_v32  ;;  %2254 = vrot.lane.b32.xlu2 %v1602_v15, %s3244_s19  ;;  %2252 = vrot.lane.b32.xlu1 %v1601_v41, %s3244_s19  ;;  %v536_v22 = vadd.f32 %v4737_v12, %v535_v46  ;;  %v4954_v8 = vpop.f32.mrf.mxu1  ;;  %v464_v15 = vadd.f32 %v4737_v12, %v463_v52  ;;  %v4970_v41 = vld [vmem:[%s6629_s6 + $0x70] sm:$0xff] }
 0x176   :  { %7023 = vst [vmem:[#allocation62_spill] sm:$0xff] %v4954_v8  ;;  %vm1540_vm7 = vcmp.eq.s32.totalorder %v4970_v41, 3  ;;  %v4978_v46 = vld [vmem:[%s6629_s6 + $0x170] sm:$0xff] }
 0x177   :  { %2250 = vrot.lane.b32.xlu0 %v1600_v60, %s3244_s19  ;;  %v4956_v18 = vpop.permute.xlu2 %2060  ;;  %v4965_v32 = vpop.permute.xlu1 %2040  ;;  %7027 = vst [vmem:[#allocation54_spill] sm:$0xff] %v4970_v41  ;;  %v610_v60 = vmax.f32 %v536_v22, 0.0  ;;  %vm1188_vm8 = vcmp.eq.s32.totalorder %v4978_v46, 0  ;;  %v4992_v22 = vld [vmem:[%s6628_s5 + $0x78] sm:$0xff]  ;;  %v581_v44 = vmax.f32 %v464_v15, 0.0 }
 0x178   :  { %7024 = vst [vmem:[#allocation49_spill] sm:$0xff] %v4956_v18  ;;  %v4973_v47 = vpop.f32.mrf.mxu3  ;;  %v4986_v18 = vld [vmem:[%s6629_s6 + $0x68] sm:$0xff] }
 0x179   :  { %7026 = vst [vmem:[#allocation65_spill] sm:$0xff] %v4965_v32  ;;  %v4981_v52 = vpop.permute.xlu0 %2038  ;;  %vm1539_vm10 = vcmp.eq.s32.totalorder %v4986_v18, 3  ;;  %v645_v32 = vpack.c.bf16 %v610_v60, %v609_v40  ;;  %v5011_v40 = vld [vmem:[%s6628_s5 + $0x68] sm:$0xff] }
 0x17a   :  { %7028 = vst [vmem:[#allocation69_spill] sm:$0xff] %v4973_v47  ;;  %v1605_v47 = vsel %vm1541_vm6, %v4992_v22, 0.0  ;;  %v465_v8 = vpop.f32.mrf.mxu0  ;;  %v1603_v60 = vsel %vm1539_vm10, %v5011_v40, 0.0 }
 0x17b   :  { %7029 = vst [vmem:[#allocation71_spill] sm:$0xff] %v4978_v46  ;;  %v466_v26 = vadd.f32 %v4737_v12, %v465_v8  ;;  %3032 = vmatmul.msk.bf16.gmra.mxu3 %vm287_vm9, %v645_v32 }
 0x17c   :  { %7030 = vst [vmem:[#allocation58_spill] sm:$0xff] %v4981_v52  ;;  %v4998_v52 = vld [vmem:[%s6628_s5 + $0x70] sm:$0xff] }
 0x17d   :  { %7031 = vst [vmem:[#allocation73_spill] sm:$0xff] %v4986_v18  ;;  %v1604_v41 = vsel %vm1540_vm7, %v4998_v52, 0.0  ;;  %v5004_v18 = vld [vmem:[%s6628_s5 + $0x170] sm:$0xff]  ;;  %2260 = vrot.lane.b32.xlu2 %v1605_v47, %s3244_s19  ;;  %v5020_v8 = vpop.f32.mrf.mxu1 }
 0x17e   :  { %7032 = vst [vmem:[#allocation74_spill] sm:$0xff] %v4992_v22  ;;  %v1252_v46 = vsel %vm1188_vm8, %v5004_v18, 0.0  ;;  %v582_v22 = vmax.f32 %v466_v26, 0.0  ;;  %2258 = vrot.lane.b32.xlu1 %v1604_v41, %s3244_s19 }
 0x17f   :  { %7033 = vst [vmem:[#allocation63_spill] sm:$0xff] %v4998_v52  ;;  %v538_v52 = vpop.f32.mrf.mxu2  ;;  %v2469_v15 = vsel %vm2422_vm11, %v1252_v46, %v4460_v13  ;;  %2256 = vrot.lane.b32.xlu0 %v1603_v60, %s3244_s19  ;;  %v5031_v41 = vpop.permute.xlu1 %2046  ;;  %v5036_v13 = vld [vmem:[%s6629_s6 + $0x88] sm:$0xff] }
 0x180   :  { %7034 = vst [vmem:[#allocation78_spill] sm:$0xff] %v5004_v18  ;;  %v2067_v18 = vpop.permute.xlu2 %2066  ;;  %v631_v32 = vpack.c.bf16 %v582_v22, %v581_v44  ;;  %vm1543_vm13 = vcmp.eq.s32.totalorder %v5036_v13, 3  ;;  %v5039_v47 = vpop.f32.mrf.mxu3  ;;  %v5044_v46 = vld [vmem:[%s6629_s6 + $0x188] sm:$0xff]  ;;  %v5059_v22 = vld [vmem:[%s6628_s5 + $0x90] sm:$0xff] }
 0x181   :  { %7035 = vst [vmem:[#allocation80_spill] sm:$0xff] %v5011_v40  ;;  %v5025_v40 = vld [vmem:[%s6629_s6 + $0x90] sm:$0xff]  ;;  %v5029_v26 = vsel %vm287_vm9, %v2469_v15, %v2067_v18  ;;  %vm1191_vm14 = vcmp.eq.s32.totalorder %v5044_v46, 0  ;;  %v5047_v44 = vpop.permute.xlu0 %2044  ;;  %v5052_v18 = vld [vmem:[%s6629_s6 + $0x80] sm:$0xff]  ;;  %v539_v15 = vadd.f32 %v4737_v12, %v538_v52 }
 0x182   :  { %7036 = vst [vmem:[#allocation67_spill] sm:$0xff] %v5025_v40  ;;  %vm1544_vm12 = vcmp.eq.s32.totalorder %v5025_v40, 3  ;;  %vm1542_vm15 = vcmp.eq.s32.totalorder %v5052_v18, 3  ;;  %3018 = vmatmul.msk.bf16.gmra.mxu1 %vm287_vm9, %v631_v32  ;;  %v5072_v32 = vld [vmem:[%s6628_s5 + $0x188] sm:$0xff] }
 0x183   :  { %7037 = vst [vmem:[#allocation82_spill] sm:$0xff] %v5029_v26  ;;  %v1608_v60 = vsel %vm1544_vm12, %v5059_v22, 0.0  ;;  %v468_v26 = vpop.f32.mrf.mxu0 }
 0x184   :  { %7038 = vst [vmem:[#allocation72_spill] sm:$0xff] %v5031_v41  ;;  %v1255_v41 = vsel %vm1191_vm14, %v5072_v32, 0.0 }
 0x185   :  { %7039 = vst [vmem:[#allocation87_spill] sm:$0xff] %v5036_v13  ;;  %2266 = vrot.lane.b32.xlu2 %v1608_v60, %s3244_s19 }
 0x186   :  { %7040 = vst [vmem:[#allocation76_spill] sm:$0xff] %v5039_v47  ;;  %v5066_v47 = vld [vmem:[%s6628_s5 + $0x88] sm:$0xff] }
 0x187   :  { %7041 = vst [vmem:[#allocation89_spill] sm:$0xff] %v5044_v46  ;;  %v540_v13 = vpop.f32.mrf.mxu2  ;;  %v2472_v46 = vsel %vm2422_vm11, %v1255_v41, %v4483_v33  ;;  %v5104_v33 = vld [vmem:[%s6629_s6 + $0xa0] sm:$0xff] }
 0x188   :  { %7042 = vst [vmem:[#allocation81_spill] sm:$0xff] %v5047_v44  ;;  %v1607_v44 = vsel %vm1543_vm13, %v5066_v47, 0.0  ;;  %v2073_v40 = vpop.permute.xlu2 %2072  ;;  %vm1546_vm1 = vcmp.eq.s32.totalorder %v5104_v33, 3 }
 0x189   :  { %7043 = vst [vmem:[#allocation93_spill] sm:$0xff] %v5052_v18  ;;  %v5078_v18 = vld [vmem:[%s6628_s5 + $0x80] sm:$0xff]  ;;  %2264 = vrot.lane.b32.xlu1 %v1607_v44, %s3244_s19  ;;  %v469_v44 = vadd.f32 %v4737_v12, %v468_v26  ;;  %v5097_v60 = vsel %vm287_vm9, %v2472_v46, %v2073_v40  ;;  %v5115_v40 = vpop.permute.xlu0 %2050  ;;  %v5120_v26 = vld [vmem:[%s6629_s6 + $0x98] sm:$0xff]  ;;  %v5126_v46 = vld [vmem:[%s6628_s5 + $0xa8] sm:$0xff] }
 0x18a   :  { %7044 = vst [vmem:[#allocation95_spill] sm:$0xff] %v5059_v22  ;;  %v1606_v52 = vsel %vm1542_vm15, %v5078_v18, 0.0  ;;  %v541_v22 = vadd.f32 %v4737_v12, %v540_v13  ;;  %v5099_v13 = vpop.permute.xlu1 %2052  ;;  %vm1545_vm3 = vcmp.eq.s32.totalorder %v5120_v26, 3 }
 0x18b   :  { %7045 = vst [vmem:[#allocation84_spill] sm:$0xff] %v5066_v47  ;;  %v611_v47 = vmax.f32 %v539_v15, 0.0  ;;  %2262 = vrot.lane.b32.xlu0 %v1606_v52, %s3244_s19  ;;  %v5107_v15 = vpop.f32.mrf.mxu3  ;;  %v5112_v52 = vld [vmem:[%s6629_s6 + $0x1a0] sm:$0xff] }
 0x18c   :  { %7046 = vst [vmem:[#allocation88_spill] sm:$0xff] %v5072_v32  ;;  %v5087_v32 = vpop.f32.mrf.mxu1  ;;  %v612_v41 = vmax.f32 %v541_v22, 0.0  ;;  %vm1194_vm2 = vcmp.eq.s32.totalorder %v5112_v52, 0 }
 0x18d   :  { %7047 = vst [vmem:[#allocation91_spill] sm:$0xff] %v5078_v18  ;;  %v5092_v18 = vld [vmem:[%s6629_s6 + $0xa8] sm:$0xff] }
 0x18e   :  { %7048 = vst [vmem:[#allocation120_spill] sm:$0xff] %v5087_v32  ;;  %vm1547_vm0 = vcmp.eq.s32.totalorder %v5092_v18, 3  ;;  %v583_v32 = vmax.f32 %v469_v44, 0.0 }
 0x18f   :  { %7049 = vst [vmem:[#allocation121_spill] sm:$0xff] %v5092_v18  ;;  %v1611_v22 = vsel %vm1547_vm0, %v5126_v46, 0.0  ;;  %v5234_v18 = vld [vmem:[%s6629_s6 + $0xd8] sm:$0xff] }
 0x190   :  { %7050 = vst [vmem:[#allocation122_spill] sm:$0xff] %v5097_v60  ;;  %v646_v60 = vpack.c.bf16 %v612_v41, %v611_v47  ;;  %v5145_v47 = vld [vmem:[%s6628_s5 + $0x98] sm:$0xff]  ;;  %2272 = vrot.lane.b32.xlu2 %v1611_v22, %s3244_s19  ;;  %vm1553_vm10 = vcmp.eq.s32.totalorder %v5234_v18, 3 }
 0x191   :  { %7051 = vst [vmem:[#allocation123_spill] sm:$0xff] %v5099_v13  ;;  %v1609_v41 = vsel %vm1545_vm3, %v5145_v47, 0.0  ;;  %v5178_v22 = vld [vmem:[%s6629_s6 + $0x1b8] sm:$0xff] }
 0x192   :  { %7052 = vst [vmem:[#allocation124_spill] sm:$0xff] %v5104_v33  ;;  %3033 = vmatmul.msk.bf16.gmra.mxu3 %vm287_vm9, %v646_v60  ;;  %vm1197_vm6 = vcmp.eq.s32.totalorder %v5178_v22, 0 }
 0x193   :  { %7053 = vst [vmem:[#allocation125_spill] sm:$0xff] %v5107_v15  ;;  %v470_v15 = vpop.f32.mrf.mxu0  ;;  %2268 = vrot.lane.b32.xlu0 %v1609_v41, %s3244_s19  ;;  %v5196_v41 = vld [vmem:[%s6628_s5 + $0xc0] sm:$0xff] }
 0x194   :  { %7054 = vst [vmem:[#allocation126_spill] sm:$0xff] %v5112_v52  ;;  %v471_v52 = vadd.f32 %v4737_v12, %v470_v15  ;;  %v5154_v15 = vpop.f32.mrf.mxu1 }
 0x195   :  { %7055 = vst [vmem:[#allocation127_spill] sm:$0xff] %v5115_v40  ;;  %v5132_v40 = vld [vmem:[%s6628_s5 + $0xa0] sm:$0xff] }
 0x196   :  { %7056 = vst [vmem:[#allocation128_spill] sm:$0xff] %v5120_v26  ;;  %v1610_v13 = vsel %vm1546_vm1, %v5132_v40, 0.0  ;;  %v5138_v26 = vld [vmem:[%s6628_s5 + $0x1a0] sm:$0xff] }
 0x197   :  { %7057 = vst [vmem:[#allocation129_spill] sm:$0xff] %v5126_v46  ;;  %v1258_v33 = vsel %vm1194_vm2, %v5138_v26, 0.0  ;;  %v584_v46 = vmax.f32 %v471_v52, 0.0  ;;  %2270 = vrot.lane.b32.xlu1 %v1610_v13, %s3244_s19  ;;  %v5165_v13 = vpop.permute.xlu1 %2058 }
 0x198   :  { %7058 = vst [vmem:[#allocation130_spill] sm:$0xff] %v5132_v40  ;;  %v543_v40 = vpop.f32.mrf.mxu2  ;;  %v2475_v44 = vsel %vm2422_vm11, %v1258_v33, %v4504_v11  ;;  %v5170_v11 = vld [vmem:[%s6629_s6 + $0xb8] sm:$0xff]  ;;  %v5173_v33 = vpop.f32.mrf.mxu3 }
 0x199   :  { %7059 = vst [vmem:[#allocation131_spill] sm:$0xff] %v5138_v26  ;;  %v2079_v26 = vpop.permute.xlu2 %2078  ;;  %v632_v60 = vpack.c.bf16 %v584_v46, %v583_v32  ;;  %vm1549_vm5 = vcmp.eq.s32.totalorder %v5170_v11, 3  ;;  %v5181_v32 = vpop.permute.xlu0 %2056  ;;  %v5189_v46 = vld [vmem:[%s6629_s6 + $0x168] sm:$0xff] }
 0x19a   :  { %7060 = vst [vmem:[#allocation132_spill] sm:$0xff] %v5145_v47  ;;  %v5159_v47 = vld [vmem:[%s6629_s6 + $0xc0] sm:$0xff]  ;;  %v5163_v52 = vsel %vm287_vm9, %v2475_v44, %v2079_v26  ;;  %v3143_v26 = vld [vmem:[%s6629_s6 + $0xb0] sm:$0xff]  ;;  %vm1187_vm8 = vcmp.eq.s32.totalorder %v5189_v46, 0 }
 0x19b   :  { %7061 = vst [vmem:[#allocation133_spill] sm:$0xff] %v5154_v15  ;;  %vm1550_vm4 = vcmp.eq.s32.totalorder %v5159_v47, 3  ;;  %vm1548_vm7 = vcmp.eq.s32.totalorder %v3143_v26, 3  ;;  %3019 = vmatmul.msk.bf16.gmra.mxu1 %vm287_vm9, %v632_v60  ;;  %v544_v26 = vadd.f32 %v4737_v12, %v543_v40  ;;  %v5211_v60 = vld [vmem:[%s6628_s5 + $0x1b8] sm:$0xff]  ;;  %v5220_v40 = vld [vmem:[%s6628_s5 + $0x168] sm:$0xff] }
 0x19c   :  { %7062 = vst [vmem:[#allocation134_spill] sm:$0xff] %v5159_v47  ;;  %v1614_v44 = vsel %vm1550_vm4, %v5196_v41, 0.0  ;;  %v1251_v15 = vsel %vm1187_vm8, %v5220_v40, 0.0 }
 0x19d   :  { %7063 = vst [vmem:[#allocation135_spill] sm:$0xff] %v5163_v52  ;;  %v5205_v52 = vld [vmem:[%s6628_s5 + $0xb8] sm:$0xff]  ;;  %2278 = vrot.lane.b32.xlu2 %v1614_v44, %s3244_s19 }
 0x19e   :  { %7064 = vst [vmem:[#allocation136_spill] sm:$0xff] %v5165_v13  ;;  %v1261_v13 = vsel %vm1197_vm6, %v5211_v60, 0.0 }
 0x19f   :  { %7065 = vst [vmem:[#allocation137_spill] sm:$0xff] %v5170_v11  ;;  %v2065_v44 = vpop.permute.xlu1 %2064 }
 0x1a0   :  { %7066 = vst [vmem:[#allocation138_spill] sm:$0xff] %v5173_v33  ;;  %v3148_v33 = vld [vmem:[%s6628_s5 + $0xb0] sm:$0xff] }
 0x1a1   :  { %7067 = vst [vmem:[#allocation139_spill] sm:$0xff] %v5178_v22  ;;  %v1612_v11 = vsel %vm1548_vm7, %v3148_v33, 0.0  ;;  %v2478_v22 = vsel %vm2422_vm11, %v1261_v13, %v4527_v55  ;;  %v5229_v33 = vpop.f32.mrf.mxu1  ;;  %v2085_v47 = vpop.permute.xlu2 %2084  ;;  %v5245_v55 = vld [vmem:[%s6629_s6 + $0xd0] sm:$0xff]  ;;  %vm1142_vm7 = vcmp.eq.s32.totalorder %v4716_v39, 0  ;;  %v3181_v39 = vld [vmem:[%s6628_s5 + $0xf8] sm:$0xff] }
 0x1a2   :  { %7068 = vst [vmem:[#allocation140_spill] sm:$0xff] %v5181_v32  ;;  %v1613_v32 = vsel %vm1549_vm5, %v5205_v52, 0.0  ;;  %2274 = vrot.lane.b32.xlu0 %v1612_v11, %s3244_s19  ;;  %vm1552_vm12 = vcmp.eq.s32.totalorder %v5245_v55, 3  ;;  %v5248_v11 = vpop.f32.mrf.mxu3 }
 0x1a3   :  { %7069 = vst [vmem:[#allocation141_spill] sm:$0xff] %v5196_v41  ;;  %2276 = vrot.lane.b32.xlu1 %v1613_v32, %s3244_s19  ;;  %v613_v41 = vmax.f32 %v544_v26, 0.0  ;;  %v2468_v32 = vsel %vm2422_vm11, %v1251_v15, %v4463_v42  ;;  %v5253_v26 = vld [vmem:[%s6629_s6 + $0x1d0] sm:$0xff]  ;;  %v5264_v15 = vld [vmem:[%s6629_s6 + $0xc8] sm:$0xff] }
 0x1a4   :  { %7070 = vst [vmem:[#allocation142_spill] sm:$0xff] %v5205_v52  ;;  %v545_v52 = vpop.f32.mrf.mxu2  ;;  %vm1200_vm13 = vcmp.eq.s32.totalorder %v5253_v26, 0  ;;  %v5257_v42 = vsel %vm287_vm9, %v2468_v32, %v2065_v44  ;;  %vm1551_vm14 = vcmp.eq.s32.totalorder %v5264_v15, 3 }
 0x1a5   :  { %7071 = vst [vmem:[#allocation143_spill] sm:$0xff] %v5211_v60  ;;  %v546_v60 = vadd.f32 %v4737_v12, %v545_v52  ;;  %v5240_v52 = vsel %vm287_vm9, %v2478_v22, %v2085_v47  ;;  %v5259_v47 = vpop.permute.xlu0 %2062  ;;  %v5270_v22 = vld [vmem:[%s6629_s6 + $0x180] sm:$0xff] }
 0x1a6   :  { %7072 = vst [vmem:[#allocation144_spill] sm:$0xff] %v5234_v18  ;;  %vm1190_vm15 = vcmp.eq.s32.totalorder %v5270_v22, 0 }
 0x1a7   :  { %7073 = vst [vmem:[#allocation145_spill] sm:$0xff] %v5240_v52  ;;  %v614_v13 = vmax.f32 %v546_v60, 0.0  ;;  %v5276_v60 = vld [vmem:[%s6628_s5 + $0xd8] sm:$0xff] }
 0x1a8   :  { %7074 = vst [vmem:[#allocation146_spill] sm:$0xff] %v5245_v55  ;;  %v1617_v32 = vsel %vm1553_vm10, %v5276_v60, 0.0  ;;  %v5284_v52 = vld [vmem:[%s6629_s6 + $0x178] sm:$0xff] }
 0x1a9   :  { %7075 = vst [vmem:[#allocation147_spill] sm:$0xff] %v5248_v11  ;;  %v647_v44 = vpack.c.bf16 %v614_v13, %v613_v41  ;;  %vm1189_vm0 = vcmp.eq.s32.totalorder %v5284_v52, 0  ;;  %v5298_v41 = vld [vmem:[%s6628_s5 + $0x1d0] sm:$0xff]  ;;  %2284 = vrot.lane.b32.xlu2 %v1617_v32, %s3244_s19  ;;  %v2091_v18 = vpop.permute.xlu2 %2090 }
 0x1aa   :  { %7076 = vst [vmem:[#allocation148_spill] sm:$0xff] %v5253_v26  ;;  %v1264_v13 = vsel %vm1200_vm13, %v5298_v41, 0.0  ;;  %v5330_v32 = vld [vmem:[%s6629_s6 + $0xf0] sm:$0xff] }
 0x1ab   :  { %7077 = vst [vmem:[#allocation149_spill] sm:$0xff] %v5257_v42  ;;  %v5304_v42 = vld [vmem:[%s6628_s5 + $0xc8] sm:$0xff]  ;;  %3034 = vmatmul.msk.bf16.gmra.mxu3 %vm287_vm9, %v647_v44  ;;  %v2481_v44 = vsel %vm2422_vm11, %v1264_v13, %v4548_v57  ;;  %vm1556_vm1 = vcmp.eq.s32.totalorder %v5330_v32, 3 }
 0x1ac   :  { %7078 = vst [vmem:[#allocation150_spill] sm:$0xff] %v5259_v47  ;;  %v5290_v47 = vld [vmem:[%s6628_s5 + $0xd0] sm:$0xff]  ;;  %v5341_v57 = vld [vmem:[%s6629_s6 + $0xe8] sm:$0xff] }
 0x1ad   :  { %7079 = vst [vmem:[#allocation151_spill] sm:$0xff] %v5264_v15  ;;  %v1616_v11 = vsel %vm1552_vm12, %v5290_v47, 0.0  ;;  %v1615_v15 = vsel %vm1551_vm14, %v5304_v42, 0.0  ;;  %vm1555_vm2 = vcmp.eq.s32.totalorder %v5341_v57, 3 }
 0x1ae   :  { %7080 = vst [vmem:[#allocation152_spill] sm:$0xff] %v5276_v60  ;;  %v548_v60 = vpop.f32.mrf.mxu2  ;;  %2282 = vrot.lane.b32.xlu1 %v1616_v11, %s3244_s19  ;;  %2280 = vrot.lane.b32.xlu0 %v1615_v15, %s3244_s19  ;;  %v5336_v11 = vsel %vm287_vm9, %v2481_v44, %v2091_v18  ;;  %v5344_v15 = vpop.f32.mrf.mxu3  ;;  %v5360_v44 = vld [vmem:[%s6629_s6 + $0xe0] sm:$0xff] }
 0x1af   :  { %7081 = vst [vmem:[#allocation153_spill] sm:$0xff] %v5290_v47  ;;  %v5311_v47 = vld [vmem:[%s6628_s5 + $0x180] sm:$0xff]  ;;  %vm1554_vm4 = vcmp.eq.s32.totalorder %v5360_v44, 3 }
 0x1b0   :  { %7082 = vst [vmem:[#allocation154_spill] sm:$0xff] %v5298_v41  ;;  %v1254_v55 = vsel %vm1190_vm15, %v5311_v47, 0.0  ;;  %v5318_v41 = vld [vmem:[%s6628_s5 + $0x178] sm:$0xff]  ;;  %vm2551_vm15 = vcmask 785408  }
 0x1b1   :  { %7083 = vst [vmem:[#allocation155_spill] sm:$0xff] %v5304_v42  ;;  %v1253_v26 = vsel %vm1189_vm0, %v5318_v41, 0.0  ;;  %v5325_v42 = vpop.f32.mrf.mxu1  ;;  %vm1145_vm0 = vcmp.eq.s32.totalorder %v4753_v58, 0 }
 0x1b2   :  { %7084 = vst [vmem:[#allocation156_spill] sm:$0xff] %v5311_v47  ;;  %v2071_v47 = vpop.permute.xlu1 %2070  ;;  %v2470_v13 = vsel %vm2422_vm11, %v1253_v26, %v4391_v56  ;;  %v5366_v56 = vld [vmem:[%s6629_s6 + $0x198] sm:$0xff] }
 0x1b3   :  { %7085 = vst [vmem:[#allocation157_spill] sm:$0xff] %v5318_v41  ;;  %v2471_v41 = vsel %vm2422_vm11, %v1254_v55, %v4489_v53  ;;  %v5351_v53 = vld [vmem:[%s6629_s6 + $0x1e8] sm:$0xff]  ;;  %v2069_v55 = vpop.permute.xlu0 %2068  ;;  %vm1193_vm5 = vcmp.eq.s32.totalorder %v5366_v56, 0 }
 0x1b4   :  { %7086 = vst [vmem:[#allocation158_spill] sm:$0xff] %v5325_v42  ;;  %vm1203_vm3 = vcmp.eq.s32.totalorder %v5351_v53, 0  ;;  %v5355_v18 = vsel %vm287_vm9, %v2471_v41, %v2071_v47  ;;  %v5370_v26 = vsel %vm287_vm9, %v2470_v13, %v2069_v55  ;;  %v5375_v47 = vld [vmem:[%s6628_s5 + $0xf0] sm:$0xff]  ;;  %v5390_v13 = vld [vmem:[%s6628_s5 + $0xe8] sm:$0xff] }
 0x1b5   :  { %7087 = vst [vmem:[#allocation159_spill] sm:$0xff] %v5330_v32  ;;  %v1620_v41 = vsel %vm1556_vm1, %v5375_v47, 0.0  ;;  %v1619_v55 = vsel %vm1555_vm2, %v5390_v13, 0.0 }
 0x1b6   :  { %7088 = vst [vmem:[#allocation160_spill] sm:$0xff] %v5336_v11  ;;  %v549_v11 = vadd.f32 %v4737_v12, %v548_v60  ;;  %v5398_v60 = vld [vmem:[%s6628_s5 + $0x1e8] sm:$0xff]  ;;  %2290 = vrot.lane.b32.xlu2 %v1620_v41, %s3244_s19  ;;  %v550_v32 = vpop.f32.mrf.mxu2  ;;  %2288 = vrot.lane.b32.xlu1 %v1619_v55, %s3244_s19  ;;  %v5427_v41 = vld [vmem:[%s6634_s4] ss:$0 sm:$0xff]  ;;  %v5446_v55 = vpop.f32.mrf.mxu3 }
 0x1b7   :  { %7089 = vst [vmem:[#allocation161_spill] sm:$0xff] %v5341_v57  ;;  %v5416_v57 = vld [vmem:[%s6628_s5 + $0x190] sm:$0xff] }
 0x1b8   :  { %7090 = vst [vmem:[#allocation162_spill] sm:$0xff] %v5344_v15  ;;  %v5384_v15 = vld [vmem:[%s6629_s6 + $0x190] sm:$0xff] }
 0x1b9   :  { %7091 = vst [vmem:[#allocation163_spill] sm:$0xff] %v5351_v53  ;;  %vm1192_vm6 = vcmp.eq.s32.totalorder %v5384_v15, 0  ;;  %v551_v53 = vadd.f32 %v4737_v12, %v550_v32 }
 0x1ba   :  { %7092 = vst [vmem:[#allocation164_spill] sm:$0xff] %v5355_v18  ;;  %v3171_v18 = vld [vmem:[%s6628_s5 + $0xe0] sm:$0xff]  ;;  %v2077_v32 = vpop.permute.xlu1 %2076 }
 0x1bb   :  { %7093 = vst [vmem:[#allocation165_spill] sm:$0xff] %v5360_v44  ;;  %v1618_v44 = vsel %vm1554_vm4, %v3171_v18, 0.0  ;;  %v615_v18 = vmax.f32 %v549_v11, 0.0  ;;  %v5435_v11 = vld [vmem:[%s6629_s6 + $0x108] sm:$0xff] }
 0x1bc   :  { %7094 = vst [vmem:[#allocation166_spill] sm:$0xff] %v5366_v56  ;;  %2286 = vrot.lane.b32.xlu0 %v1618_v44, %s3244_s19  ;;  %vm1559_vm8 = vcmp.eq.s32.totalorder %v5435_v11, 3  ;;  %v3175_v44 = vld [vmem:[%s6629_s6 + $0x100] sm:$0xff]  ;;  %v2075_v56 = vpop.permute.xlu0 %2074 }
 0x1bd   :  { %7095 = vst [vmem:[#allocation167_spill] sm:$0xff] %v5370_v26  ;;  %v1267_v26 = vsel %vm1203_vm3, %v5398_v60, 0.0  ;;  %vm1558_vm10 = vcmp.eq.s32.totalorder %v3175_v44, 3 }
 0x1be   :  { %7096 = vst [vmem:[#allocation168_spill] sm:$0xff] %v5375_v47  ;;  %v5409_v47 = vld [vmem:[%s6628_s5 + $0x198] sm:$0xff]  ;;  %v2484_v42 = vsel %vm2422_vm11, %v1267_v26, %v4567_v59  ;;  %v616_v26 = vmax.f32 %v551_v53, 0.0 }
 0x1bf   :  { %7097 = vst [vmem:[#allocation169_spill] sm:$0xff] %v5384_v15 }
 0x1c0   :  { %7098 = vst [vmem:[#allocation170_spill] sm:$0xff] %v5390_v13  ;;  %v1257_v13 = vsel %vm1193_vm5, %v5409_v47, 0.0 }
 0x1c1   :  { %7099 = vst [vmem:[#allocation171_spill] sm:$0xff] %v5398_v60  ;;  %v1256_v60 = vsel %vm1192_vm6, %v5416_v57, 0.0  ;;  %v2474_v59 = vsel %vm2422_vm11, %v1257_v13, %v4507_v20  ;;  %v3176_v20 = vld [vmem:[%s6629_s6 + $0xf8] sm:$0xff]  ;;  %v648_v13 = vpack.c.bf16 %v616_v26, %v615_v18  ;;  %v7107_v26 = vld [vmem:[#allocation51_spill] sm:$0xff]  ;;  %vm1148_vm6 = vcmp.eq.s32.totalorder %v4805_v4, 0 }
 0x1c2   :  { %7100 = vst [vmem:[#allocation172_spill] sm:$0xff] %v5409_v47  ;;  %v5430_v47 = vpop.f32.mrf.mxu1  ;;  %v5451_v15 = vsel %vm287_vm9, %v2474_v59, %v2077_v32  ;;  %vm1557_vm12 = vcmp.eq.s32.totalorder %v3176_v20, 3  ;;  %v5479_v59 = vld [vmem:[%s6629_s6 + $0x1a8] sm:$0xff]  ;;  %v5495_v32 = vld [vmem:[%s6628_s5 + $0x1b0] sm:$0xff] }
 0x1c3   :  { %7101 = vst [vmem:[#allocation173_spill] sm:$0xff] %v5416_v57  ;;  %v2097_v57 = vpop.permute.xlu2 %2096  ;;  %vm1195_vm14 = vcmp.eq.s32.totalorder %v5479_v59, 0  ;;  %3035 = vmatmul.msk.bf16.gmra.mxu3 %vm287_vm9, %v648_v13  ;;  %v5504_v20 = vld [vmem:[%s6628_s5 + $0x1a8] sm:$0xff] }
 0x1c4   :  { %7102 = vst [vmem:[#allocation174_spill] sm:$0xff] %v5430_v47  ;;  %v5441_v12 = vsel %vm287_vm9, %v2484_v42, %v2097_v57  ;;  %v2473_v47 = vsel %vm2422_vm11, %v1256_v60, %v4413_v51  ;;  %v5459_v42 = vld [vmem:[%s6629_s6 + $0x1b0] sm:$0xff]  ;;  %v5468_v51 = vld [vmem:[%s6628_s5 + $0x108] sm:$0xff]  ;;  %v1206_v60 = vsel %vm1142_vm7, %v4731_v50, 0.0  ;;  %v1621_v50 = vsel %vm1557_vm12, %v3181_v39, 0.0 }
 0x1c5   :  { %7103 = vst [vmem:[#allocation175_spill] sm:$0xff] %v5441_v12  ;;  %vm1196_vm13 = vcmp.eq.s32.totalorder %v5459_v42, 0  ;;  %v5463_v57 = vsel %vm287_vm9, %v2473_v47, %v2075_v56  ;;  %v1623_v53 = vsel %vm1559_vm8, %v5468_v51, 0.0  ;;  %v791_v56 = vadd.f32 %v5427_v41, %v4585_v61  ;;  %v3180_v47 = vld [vmem:[%s6628_s5 + $0x100] sm:$0xff]  ;;  %2292 = vrot.lane.b32.xlu0 %v1621_v50, %s3244_s19  ;;  %v2083_v12 = vpop.permute.xlu1 %2082  ;;  %v5526_v50 = vpop.f32.mrf.mxu3 }
 0x1c6   :  { %7104 = vst [vmem:[#allocation176_spill] sm:$0xff] %v5446_v55  ;;  %v1622_v18 = vsel %vm1558_vm10, %v3180_v47, 0.0  ;;  %v1260_v61 = vsel %vm1196_vm13, %v5495_v32, 0.0  ;;  %2296 = vrot.lane.b32.xlu2 %v1623_v53, %s3244_s19  ;;  %v2423_v44 = vsel %vm2422_vm11, %v1206_v60, %v7107_v26  ;;  %v1259_v13 = vsel %vm1195_vm14, %v5504_v20, 0.0  ;;  %v5517_v26 = vld [vmem:[%s6629_s6 + $0x120] sm:$0xff]  ;;  %v2081_v55 = vpop.permute.xlu0 %2080 }
 0x1c7   :  { %7105 = vst [vmem:[#allocation177_spill] sm:$0xff] %v5451_v15  ;;  %2294 = vrot.lane.b32.xlu1 %v1622_v18, %s3244_s19  ;;  %v950_v47 = vmax.f32 %v791_v56, 0.0  ;;  %v2487_v39 = vsel %vm287_vm9, %v2423_v44, %v4590_v1  ;;  %vm1562_vm1 = vcmp.eq.s32.totalorder %v5517_v26, 3  ;;  %v2477_v18 = vsel %vm2422_vm11, %v1260_v61, %v4533_v23  ;;  %v3185_v1 = vld [vmem:[%s6629_s6 + $0x118] sm:$0xff]  ;;  %v3186_v23 = vld [vmem:[%s6629_s6 + $0x110] sm:$0xff] }
 0x1c8   :  { %7106 = vst [vmem:[#allocation178_spill] sm:$0xff] %v5463_v57  ;;  %vm1561_vm2 = vcmp.eq.s32.totalorder %v3185_v1, 3  ;;  %v2476_v44 = vsel %vm2422_vm11, %v1259_v13, %v4435_v30  ;;  %v5531_v15 = vsel %vm287_vm9, %v2477_v18, %v2083_v12  ;;  %vm1560_vm3 = vcmp.eq.s32.totalorder %v3186_v23, 3  ;;  %v5551_v12 = vld [vmem:[%s6628_s5 + $0x120] sm:$0xff]  ;;  %v3191_v18 = vld [vmem:[%s6628_s5 + $0x110] sm:$0xff] }
 0x1c9   :  { %7108 = vst [vmem:[#allocation51_spill] sm:$0xff] %v5526_v50  ;;  %v1209_v61 = vsel %vm1145_vm0, %v4778_v16, 0.0  ;;  %v5546_v30 = vsel %vm287_vm9, %v2476_v44, %v2081_v55  ;;  %v1626_v58 = vsel %vm1562_vm1, %v5551_v12, 0.0  ;;  %v5559_v16 = vld [vmem:[%s6629_s6 + $0x1c0] sm:$0xff]  ;;  %v798_v55 = vadd.f32 %v5427_v41, %v4645_v27  ;;  %v5574_v44 = vld [vmem:[%s6628_s5 + $0x1c8] sm:$0xff] }
 0x1ca   :  { %v5512_v53 = vpop.f32.mrf.mxu1  ;;  %7109 = vst [vmem:[#allocation179_spill] sm:$0xff] %v5531_v15  ;;  %vm1198_vm5 = vcmp.eq.s32.totalorder %v5559_v16, 0  ;;  %v7112_v27 = vld [vmem:[#allocation59_spill] sm:$0xff]  ;;  %v5586_v1 = vld [vmem:[%s6628_s5 + $0x1c0] sm:$0xff]  ;;  %vm1151_vm0 = vcmp.eq.s32.totalorder %v4857_v6, 0  ;;  %v5740_v6 = vld [vmem:[%s6628_s5 + $0x1f0] sm:$0xff] }
 0x1cb   :  { %v2231_v60 = vpop.permute.xlu2 %2230  ;;  %7110 = vst [vmem:[#allocation180_spill] sm:$0xff] %v5546_v30 }
 0x1cc   :  { %v2552_v56 = vsel %vm2551_vm15, %v2487_v39, %v2231_v60  ;;  %v5542_v39 = vld [vmem:[%s6629_s6 + $0x1c8] sm:$0xff]  ;;  %7111 = vst [vmem:[#allocation181_spill] sm:$0xff] %v5551_v12 }
 0x1cd   :  { %v2616_v57 = vadd.f32 %v2552_v56, %v950_v47  ;;  %vm1199_vm4 = vcmp.eq.s32.totalorder %v5542_v39, 0  ;;  %v3190_v47 = vld [vmem:[%s6628_s5 + $0x118] sm:$0xff]  ;;  %v1624_v56 = vsel %vm1560_vm3, %v3191_v18, 0.0  ;;  %v2089_v50 = vpop.permute.xlu1 %2088 }
 0x1ce   :  { %v1625_v60 = vsel %vm1561_vm2, %v3190_v47, 0.0  ;;  %v1263_v23 = vsel %vm1199_vm4, %v5574_v44, 0.0  ;;  %2302 = vrot.lane.b32.xlu2 %v1626_v58, %s3244_s19  ;;  %v1262_v47 = vsel %vm1198_vm5, %v5586_v1, 0.0  ;;  %2298 = vrot.lane.b32.xlu0 %v1624_v56, %s3244_s19  ;;  %v2087_v12 = vpop.permute.xlu0 %2086  ;;  %vm1146_vm5 = vcmp.eq.s32.totalorder %v4823_v21, 0 }
 0x1cf   :  { %v2680_v13 = vmax.f32 %v2616_v57, 0.0  ;;  %v2426_v57 = vsel %vm2422_vm11, %v1209_v61, %v7112_v27  ;;  %2300 = vrot.lane.b32.xlu1 %v1625_v60, %s3244_s19  ;;  %v5599_v27 = vld [vmem:[%s6629_s6 + $0x138] sm:$0xff]  ;;  %v2480_v60 = vsel %vm2422_vm11, %v1263_v23, %v4551_v25  ;;  %v2479_v56 = vsel %vm2422_vm11, %v1262_v47, %v4457_v19  ;;  %v3196_v25 = vld [vmem:[%s6629_s6 + $0x128] sm:$0xff]  ;;  %v3200_v47 = vld [vmem:[%s6628_s5 + $0x130] sm:$0xff] }
 0x1d0   :  { %v2490_v18 = vsel %vm287_vm9, %v2426_v57, %v4611_v31  ;;  %vm1565_vm7 = vcmp.eq.s32.totalorder %v5599_v27, 3  ;;  %v3195_v31 = vld [vmem:[%s6629_s6 + $0x130] sm:$0xff]  ;;  %v5613_v15 = vsel %vm287_vm9, %v2480_v60, %v2089_v50  ;;  %vm1563_vm10 = vcmp.eq.s32.totalorder %v3196_v25, 3  ;;  %v5633_v50 = vld [vmem:[%s6628_s5 + $0x138] sm:$0xff] }
 0x1d1   :  { %2744 = vst [vmem:[%s6635_s7] sm:$0xff] %v2680_v13  ;;  %v953_v13 = vmax.f32 %v798_v55, 0.0  ;;  %vm1564_vm8 = vcmp.eq.s32.totalorder %v3195_v31, 3  ;;  %v5608_v55 = vpop.f32.mrf.mxu3  ;;  %v1212_v23 = vsel %vm1148_vm6, %v4830_v35, 0.0  ;;  %v5628_v19 = vsel %vm287_vm9, %v2479_v56, %v2087_v12  ;;  %v5641_v35 = vld [vmem:[%s6629_s6 + $0x1d8] sm:$0xff]  ;;  %v5656_v56 = vld [vmem:[%s6628_s5 + $0x1e0] sm:$0xff] }
 0x1d2   :  { %v5594_v58 = vpop.f32.mrf.mxu1  ;;  %7113 = vst [vmem:[#allocation59_spill] sm:$0xff] %v5608_v55  ;;  %v1629_v4 = vsel %vm1565_vm7, %v5633_v50, 0.0  ;;  %vm1201_vm13 = vcmp.eq.s32.totalorder %v5641_v35, 0  ;;  %vm1147_vm6 = vcmp.eq.s32.totalorder %v4813_v14, 0  ;;  %vm1150_vm7 = vcmp.eq.s32.totalorder %v4866_v49, 0 }
 0x1d3   :  { %v2237_v61 = vpop.permute.xlu2 %2236  ;;  %7114 = vst [vmem:[#allocation182_spill] sm:$0xff] %v5613_v15 }
 0x1d4   :  { %v2555_v30 = vsel %vm2551_vm15, %v2490_v18, %v2237_v61  ;;  %v5624_v18 = vld [vmem:[%s6629_s6 + $0x1e0] sm:$0xff]  ;;  %7115 = vst [vmem:[#allocation183_spill] sm:$0xff] %v5628_v19  ;;  %v3201_v61 = vld [vmem:[%s6628_s5 + $0x128] sm:$0xff] }
 0x1d5   :  { %v2619_v57 = vadd.f32 %v2555_v30, %v953_v13  ;;  %vm1202_vm12 = vcmp.eq.s32.totalorder %v5624_v18, 0  ;;  %7116 = vst [vmem:[#allocation184_spill] sm:$0xff] %v5633_v50  ;;  %v806_v30 = vadd.f32 %v5427_v41, %v4709_v34  ;;  %v1628_v13 = vsel %vm1564_vm8, %v3200_v47, 0.0  ;;  %v7117_v34 = vld [vmem:[#allocation70_spill] sm:$0xff] }
 0x1d6   :  { %v1627_v60 = vsel %vm1563_vm10, %v3201_v61, 0.0  ;;  %v1266_v25 = vsel %vm1202_vm12, %v5656_v56, 0.0  ;;  %2308 = vrot.lane.b32.xlu2 %v1629_v4, %s3244_s19  ;;  %v2429_v31 = vsel %vm2422_vm11, %v1212_v23, %v7117_v34  ;;  %v5680_v23 = vld [vmem:[%s6629_s6 + $0x150] sm:$0xff]  ;;  %v2093_v50 = vpop.permute.xlu0 %2092  ;;  %vm1144_vm8 = vcmp.eq.s32.totalorder %v4762_v28, 0 }
 0x1d7   :  { %v2683_v12 = vmax.f32 %v2619_v57, 0.0  ;;  %v5668_v57 = vld [vmem:[%s6628_s5 + $0x1d8] sm:$0xff]  ;;  %2306 = vrot.lane.b32.xlu1 %v1628_v13, %s3244_s19  ;;  %v2493_v61 = vsel %vm287_vm9, %v2429_v31, %v4630_v36  ;;  %v956_v19 = vmax.f32 %v806_v30, 0.0  ;;  %2304 = vrot.lane.b32.xlu0 %v1627_v60, %s3244_s19  ;;  %vm1568_vm14 = vcmp.eq.s32.totalorder %v5680_v23, 3  ;;  %v2095_v30 = vpop.permute.xlu1 %2094  ;;  %v3205_v60 = vld [vmem:[%s6629_s6 + $0x148] sm:$0xff] }
 0x1d8   :  { %v1265_v47 = vsel %vm1201_vm13, %v5668_v57, 0.0  ;;  %v2483_v13 = vsel %vm2422_vm11, %v1266_v25, %v4573_v62  ;;  %vm1567_vm1 = vcmp.eq.s32.totalorder %v3205_v60, 3  ;;  %v3206_v62 = vld [vmem:[%s6629_s6 + $0x140] sm:$0xff]  ;;  %v5703_v25 = vld [vmem:[%s6629_s6 + $0x1f0] sm:$0xff]  ;;  %vm1143_vm10 = vcmp.eq.s32.totalorder %v4772_v63, 0  ;;  %v7121_v60 = vld [vmem:[#allocation79_spill] sm:$0xff] }
 0x1d9   :  { %2747 = vst [vmem:[%s6635_s7 + $0x18] sm:$0xff] %v2683_v12  ;;  %v5690_v34 = vpop.f32.mrf.mxu3  ;;  %v2482_v31 = vsel %vm2422_vm11, %v1265_v47, %v4479_v5  ;;  %v5695_v55 = vsel %vm287_vm9, %v2483_v13, %v2095_v30  ;;  %vm1566_vm2 = vcmp.eq.s32.totalorder %v3206_v62, 3  ;;  %vm1204_vm3 = vcmp.eq.s32.totalorder %v5703_v25, 0  ;;  %v5709_v5 = vld [vmem:[%s6629_s6 + $0x1f8] sm:$0xff]  ;;  %v5718_v47 = vld [vmem:[%s6628_s5 + $0x150] sm:$0xff] }
 0x1da   :  { %v5675_v12 = vpop.f32.mrf.mxu1  ;;  %7118 = vst [vmem:[#allocation70_spill] sm:$0xff] %v5690_v34  ;;  %vm1205_vm4 = vcmp.eq.s32.totalorder %v5709_v5, 0  ;;  %v813_v13 = vadd.f32 %v5427_v41, %v4850_v2  ;;  %v1268_v2 = vsel %vm1204_vm3, %v5740_v6, 0.0  ;;  %vm1154_vm12 = vcmp.eq.s32.totalorder %v4909_v10, 0  ;;  %v3217_v10 = vld [vmem:[%s6628_s5 + $0x158] sm:$0xff] }
 0x1db   :  { %v2243_v4 = vpop.permute.xlu2 %2242  ;;  %7119 = vst [vmem:[#allocation185_spill] sm:$0xff] %v5695_v55  ;;  %vm1571_vm13 = vcmp.eq.s32.totalorder %v5189_v46, 3  ;;  %v2485_v55 = vsel %vm2422_vm11, %v1268_v2, %v4501_v17  ;;  %v1208_v2 = vsel %vm1144_vm8, %v4784_v9, 0.0  ;;  %v3216_v9 = vld [vmem:[%s6628_s5 + $0x160] sm:$0xff]  ;;  %v1210_v63 = vsel %vm1146_vm5, %v4843_v37, 0.0 }
 0x1dc   :  { %v2558_v36 = vsel %vm2551_vm15, %v2493_v61, %v2243_v4  ;;  %v1632_v61 = vsel %vm1568_vm14, %v5718_v47, 0.0  ;;  %v1215_v4 = vsel %vm1151_vm0, %v4882_v29, 0.0  ;;  %v5748_v29 = vld [vmem:[%s6628_s5 + $0x1f8] sm:$0xff]  ;;  %v796_v46 = vadd.f32 %v5427_v41, %v4625_v3  ;;  %v7122_v3 = vld [vmem:[#allocation50_spill] sm:$0xff] }
 0x1dd   :  { %v2622_v15 = vadd.f32 %v2558_v36, %v956_v19  ;;  %v5713_v19 = vsel %vm287_vm9, %v2482_v31, %v2093_v50  ;;  %v3210_v50 = vld [vmem:[%s6628_s5 + $0x148] sm:$0xff]  ;;  %v3211_v31 = vld [vmem:[%s6628_s5 + $0x140] sm:$0xff]  ;;  %v2425_v37 = vsel %vm2422_vm11, %v1208_v2, %v7122_v3  ;;  %vm1574_vm3 = vcmp.eq.s32.totalorder %v5270_v22, 3  ;;  %v7130_v22 = vld [vmem:[#allocation45_spill] sm:$0xff] }
 0x1de   :  { %7120 = vst [vmem:[#allocation186_spill] sm:$0xff] %v5713_v19  ;;  %v1631_v30 = vsel %vm1567_vm1, %v3210_v50, 0.0  ;;  %v1630_v62 = vsel %vm1566_vm2, %v3211_v31, 0.0  ;;  %2314 = vrot.lane.b32.xlu2 %v1632_v61, %s3244_s19  ;;  %v2432_v50 = vsel %vm2422_vm11, %v1215_v4, %v7121_v60  ;;  %v959_v19 = vmax.f32 %v813_v13, 0.0  ;;  %v2099_v17 = vpop.permute.xlu0 %2098 }
 0x1df   :  { %v2686_v36 = vmax.f32 %v2622_v15, 0.0  ;;  %v1269_v15 = vsel %vm1205_vm4, %v5748_v29, 0.0  ;;  %2312 = vrot.lane.b32.xlu1 %v1631_v30, %s3244_s19  ;;  %v2496_v31 = vsel %vm287_vm9, %v2432_v50, %v4651_v24  ;;  %2310 = vrot.lane.b32.xlu0 %v1630_v62, %s3244_s19  ;;  %v2101_v60 = vpop.permute.xlu1 %2100  ;;  %v3214_v24 = vld [vmem:[%s6629_s6 + $0x160] sm:$0xff]  ;;  %v821_v62 = vadd.f32 %v5427_v41, %v5020_v8 }
 0x1e0   :  { %v2486_v4 = vsel %vm2422_vm11, %v1269_v15, %v4593_v43  ;;  %vm1570_vm14 = vcmp.eq.s32.totalorder %v3214_v24, 3  ;;  %v3215_v43 = vld [vmem:[%s6629_s6 + $0x158] sm:$0xff]  ;;  %v1207_v15 = vsel %vm1143_vm10, %v4791_v45, 0.0  ;;  %v5795_v8 = vsel %vm287_vm9, %v2485_v55, %v2099_v17  ;;  %v7123_v55 = vld [vmem:[#allocation60_spill] sm:$0xff] }
 0x1e1   :  { %2750 = vst [vmem:[%s6635_s7 + $0x30] sm:$0xff] %v2686_v36  ;;  %v5778_v13 = vpop.f32.mrf.mxu3  ;;  %v5783_v34 = vsel %vm287_vm9, %v2486_v4, %v2101_v60  ;;  %vm1569_vm0 = vcmp.eq.s32.totalorder %v3215_v43, 3  ;;  %v1634_v45 = vsel %vm1570_vm14, %v3216_v9, 0.0  ;;  %vm1153_vm1 = vcmp.eq.s32.totalorder %v4917_v7, 0  ;;  %v7126_v4 = vld [vmem:[#allocation5_spill] sm:$0xff]  ;;  %v7128_v43 = vld [vmem:[#allocation10_spill] sm:$0xff] }
 0x1e2   :  { %v5767_v61 = vpop.f32.mrf.mxu1  ;;  %v962_v21 = vmax.f32 %v821_v62, 0.0  ;;  %v2424_v14 = vsel %vm2422_vm11, %v1207_v15, %v7123_v55  ;;  %v7127_v24 = vld [vmem:[#allocation17_spill] sm:$0xff]  ;;  %v2489_v2 = vsel %vm287_vm9, %v2425_v37, %v7128_v43  ;;  %v952_v15 = vmax.f32 %v796_v46, 0.0 }
 0x1e3   :  { %v2249_v36 = vpop.permute.xlu2 %2248  ;;  %vm1573_vm4 = vcmp.eq.s32.totalorder %v5284_v52, 3  ;;  %v5859_v46 = vsel %vm1153_vm1, %v7130_v22, 0.0  ;;  %v7131_v52 = vld [vmem:[#allocation156_spill] sm:$0xff]  ;;  %vm1580_vm1 = vcmp.eq.s32.totalorder %v5459_v42, 3 }
 0x1e4   :  { %v2561_v30 = vsel %vm2551_vm15, %v2496_v31, %v2249_v36  ;;  %v1218_v31 = vsel %vm1154_vm12, %v4934_v38, 0.0  ;;  %v793_v36 = vadd.f32 %v5427_v41, %v4605_v48  ;;  %v1633_v38 = vsel %vm1569_vm0, %v3217_v10, 0.0 }
 0x1e5   :  { %v2625_v50 = vadd.f32 %v2561_v30, %v959_v19  ;;  %v1635_v19 = vsel %vm1571_vm13, %v5220_v40, 0.0  ;;  %v1211_v48 = vsel %vm1147_vm6, %v4837_v54, 0.0  ;;  %v5823_v40 = vsel %vm1150_vm7, %v4888_v0, 0.0  ;;  %v7124_v54 = vld [vmem:[#allocation86_spill] sm:$0xff]  ;;  %v7125_v0 = vld [vmem:[#allocation64_spill] sm:$0xff] }
 0x1e6   :  { %2320 = vrot.lane.b32.xlu2 %v1635_v19, %s3244_s19  ;;  %v2435_v49 = vsel %vm2422_vm11, %v1218_v31, %v7124_v54  ;;  %vm1157_vm2 = vcmp.eq.s32.totalorder %v7125_v0, 0  ;;  %v2488_v30 = vsel %vm287_vm9, %v2424_v14, %v7126_v4  ;;  %v951_v60 = vmax.f32 %v793_v36, 0.0  ;;  %v2233_v10 = vpop.permute.xlu0 %2232  ;;  %v7132_v14 = vld [vmem:[#allocation74_spill] sm:$0xff] }
 0x1e7   :  { %v2689_v28 = vmax.f32 %v2625_v50, 0.0  ;;  %2318 = vrot.lane.b32.xlu1 %v1634_v45, %s3244_s19  ;;  %v2499_v62 = vsel %vm287_vm9, %v2435_v49, %v7127_v24  ;;  %2316 = vrot.lane.b32.xlu0 %v1633_v38, %s3244_s19  ;;  %v2235_v31 = vpop.permute.xlu1 %2234  ;;  %v7129_v38 = vld [vmem:[#allocation71_spill] sm:$0xff]  ;;  %v2553_v37 = vsel %vm2551_vm15, %v2488_v30, %v2233_v10  ;;  %v1638_v55 = vsel %vm1574_vm3, %v7131_v52, 0.0  ;;  %v7133_v49 = vld [vmem:[#allocation157_spill] sm:$0xff]  ;;  %v7134_v24 = vld [vmem:[#allocation6_spill] sm:$0xff] }
 0x1e8   :  { %v2554_v45 = vsel %vm2551_vm15, %v2489_v2, %v2235_v31  ;;  %vm1572_vm5 = vcmp.eq.s32.totalorder %v7129_v38, 3  ;;  %v2617_v54 = vadd.f32 %v2553_v37, %v951_v60  ;;  %v1637_v4 = vsel %vm1573_vm4, %v7133_v49, 0.0  ;;  %v7136_v2 = vld [vmem:[#allocation78_spill] sm:$0xff]  ;;  %v7137_v30 = vld [vmem:[#allocation27_spill] sm:$0xff]  ;;  %v7144_v37 = vld [vmem:[#allocation4_spill] sm:$0xff] }
 0x1e9   :  { %2753 = vst [vmem:[%s6635_s7 + $0x48] sm:$0xff] %v2689_v28  ;;  %v5850_v36 = vpop.f32.mrf.mxu3  ;;  %v828_v28 = vadd.f32 %v5427_v41, %v5229_v33  ;;  %v2618_v3 = vadd.f32 %v2554_v45, %v952_v15  ;;  %v1221_v33 = vsel %vm1157_vm2, %v7132_v14, 0.0  ;;  %v1636_v15 = vsel %vm1572_vm5, %v7136_v2, 0.0  ;;  %v7138_v31 = vld [vmem:[#allocation54_spill] sm:$0xff] }
 0x1ea   :  { %v5843_v50 = vpop.f32.mrf.mxu1  ;;  %vm1156_vm6 = vcmp.eq.s32.totalorder %v7138_v31, 0  ;;  %v2681_v60 = vmax.f32 %v2617_v54, 0.0  ;;  %v7140_v10 = vld [vmem:[#allocation46_spill] sm:$0xff]  ;;  %v836_v2 = vadd.f32 %v5427_v41, %v5512_v53  ;;  %v7162_v31 = vld [vmem:[#allocation7_spill] sm:$0xff]  ;;  %vm1579_vm2 = vcmp.eq.s32.totalorder %v5479_v59, 3 }
 0x1eb   :  { %v2255_v17 = vpop.permute.xlu2 %2254  ;;  %v2682_v43 = vmax.f32 %v2618_v3, 0.0  ;;  %v965_v0 = vmax.f32 %v828_v28, 0.0  ;;  %vm1149_vm7 = vcmp.eq.s32.totalorder %v7140_v10, 0  ;;  %v7141_v38 = vld [vmem:[#allocation94_spill] sm:$0xff]  ;;  %v7142_v3 = vld [vmem:[#allocation67_spill] sm:$0xff]  ;;  %v1644_v59 = vsel %vm1580_vm1, %v5495_v32, 0.0 }
 0x1ec   :  { %v2564_v19 = vsel %vm2551_vm15, %v2499_v62, %v2255_v17  ;;  %v801_v62 = vadd.f32 %v5427_v41, %v7134_v24  ;;  %v7135_v17 = vld [vmem:[#allocation20_spill] sm:$0xff]  ;;  %v2438_v22 = vsel %vm2422_vm11, %v1221_v33, %v7141_v38  ;;  %vm1160_vm8 = vcmp.eq.s32.totalorder %v7142_v3, 0  ;;  %2745 = vst [vmem:[%s6635_s7 + $0x8] sm:$0xff] %v2681_v60  ;;  %v7148_v60 = vld [vmem:[#allocation89_spill] sm:$0xff] }
 0x1ed   :  { %v2628_v9 = vadd.f32 %v2564_v19, %v962_v21  ;;  %v803_v7 = vadd.f32 %v5427_v41, %v7135_v17  ;;  %v2427_v19 = vsel %vm2422_vm11, %v1210_v63, %v7137_v30  ;;  %2746 = vst [vmem:[%s6635_s7 + $0x10] sm:$0xff] %v2682_v43  ;;  %v7143_v63 = vld [vmem:[#allocation2_spill] sm:$0xff]  ;;  %v7147_v17 = vld [vmem:[#allocation169_spill] sm:$0xff]  ;;  %vm1575_vm13 = vcmp.eq.s32.totalorder %v7148_v60, 3  ;;  %v7150_v38 = vld [vmem:[#allocation172_spill] sm:$0xff] }
 0x1ee   :  { %2326 = vrot.lane.b32.xlu2 %v1638_v55, %s3244_s19  ;;  %v2491_v28 = vsel %vm287_vm9, %v2427_v19, %v7143_v63  ;;  %v954_v54 = vmax.f32 %v801_v62, 0.0  ;;  %vm1576_vm12 = vcmp.eq.s32.totalorder %v7147_v17, 3  ;;  %v2239_v19 = vpop.permute.xlu0 %2238  ;;  %v7151_v63 = vld [vmem:[#allocation95_spill] sm:$0xff] }
 0x1ef   :  { %v2692_v21 = vmax.f32 %v2628_v9, 0.0  ;;  %v7139_v9 = vld [vmem:[#allocation34_spill] sm:$0xff]  ;;  %2324 = vrot.lane.b32.xlu1 %v1637_v4, %s3244_s19  ;;  %2322 = vrot.lane.b32.xlu0 %v1636_v15, %s3244_s19  ;;  %v955_v49 = vmax.f32 %v803_v7, 0.0  ;;  %v2241_v24 = vpop.permute.xlu1 %2240 }
 0x1f0   :  { %v2428_v45 = vsel %vm2422_vm11, %v1211_v48, %v7139_v9  ;;  %v7145_v48 = vld [vmem:[#allocation22_spill] sm:$0xff]  ;;  %v7149_v9 = vld [vmem:[#allocation47_spill] sm:$0xff] }
 0x1f1   :  { %2756 = vst [vmem:[%s6635_s7 + $0x60] sm:$0xff] %v2692_v21  ;;  %v2492_v52 = vsel %vm287_vm9, %v2428_v45, %v7144_v37  ;;  %v2502_v55 = vsel %vm287_vm9, %v2438_v22, %v7145_v48  ;;  %v7146_v21 = vld [vmem:[#allocation166_spill] sm:$0xff]  ;;  %v5904_v43 = vpop.f32.mrf.mxu3  ;;  %v1213_v62 = vsel %vm1149_vm7, %v7149_v9, 0.0  ;;  %v2556_v45 = vsel %vm2551_vm15, %v2491_v28, %v2239_v19  ;;  %v7152_v48 = vld [vmem:[#allocation173_spill] sm:$0xff]  ;;  %v7158_v19 = vld [vmem:[#allocation68_spill] sm:$0xff] }
 0x1f2   :  { %v5899_v14 = vpop.f32.mrf.mxu1  ;;  %vm1577_vm10 = vcmp.eq.s32.totalorder %v7146_v21, 3  ;;  %v2557_v15 = vsel %vm2551_vm15, %v2492_v52, %v2241_v24  ;;  %v1224_v37 = vsel %vm1160_vm8, %v7151_v63, 0.0  ;;  %v1640_v52 = vsel %vm1576_vm12, %v7152_v48, 0.0  ;;  %v7154_v21 = vld [vmem:[#allocation36_spill] sm:$0xff]  ;;  %v7156_v28 = vld [vmem:[#allocation41_spill] sm:$0xff] }
 0x1f3   :  { %v2261_v33 = vpop.permute.xlu2 %2260  ;;  %v2621_v7 = vadd.f32 %v2557_v15, %v955_v49  ;;  %v1641_v22 = vsel %vm1577_vm10, %v7150_v38, 0.0  ;;  %v811_v10 = vadd.f32 %v5427_v41, %v7154_v21  ;;  %v7155_v49 = vld [vmem:[#allocation88_spill] sm:$0xff]  ;;  %v2431_v17 = vsel %vm2422_vm11, %v5823_v40, %v7156_v28  ;;  %v7157_v15 = vld [vmem:[#allocation63_spill] sm:$0xff]  ;;  %v7163_v38 = vld [vmem:[#allocation14_spill] sm:$0xff] }
 0x1f4   :  { %v2567_v4 = vsel %vm2551_vm15, %v2502_v55, %v2261_v33  ;;  %v7153_v55 = vld [vmem:[#allocation30_spill] sm:$0xff]  ;;  %v1639_v24 = vsel %vm1575_vm13, %v7155_v49, 0.0  ;;  %v5930_v3 = vsel %vm1156_vm6, %v7157_v15, 0.0  ;;  %v2430_v60 = vsel %vm2422_vm11, %v1213_v62, %v7158_v19  ;;  %v7159_v9 = vld [vmem:[#allocation56_spill] sm:$0xff]  ;;  %v7166_v15 = vld [vmem:[#allocation61_spill] sm:$0xff] }
 0x1f5   :  { %v2631_v30 = vadd.f32 %v2567_v4, %v965_v0  ;;  %v2620_v0 = vadd.f32 %v2556_v45, %v954_v54  ;;  %v808_v33 = vadd.f32 %v5427_v41, %v7153_v55  ;;  %v2685_v4 = vmax.f32 %v2621_v7, 0.0  ;;  %v7160_v7 = vld [vmem:[#allocation98_spill] sm:$0xff]  ;;  %v7161_v45 = vld [vmem:[#allocation121_spill] sm:$0xff] }
 0x1f6   :  { %v968_v54 = vmax.f32 %v836_v2, 0.0  ;;  %2332 = vrot.lane.b32.xlu2 %v1641_v22, %s3244_s19  ;;  %vm1152_vm14 = vcmp.eq.s32.totalorder %v7159_v9, 0  ;;  %v2441_v40 = vsel %vm2422_vm11, %v1224_v37, %v7160_v7  ;;  %vm1163_vm0 = vcmp.eq.s32.totalorder %v7161_v45, 0  ;;  %v7164_v62 = vld [vmem:[#allocation26_spill] sm:$0xff] }
 0x1f7   :  { %v2695_v53 = vmax.f32 %v2631_v30, 0.0  ;;  %v2684_v30 = vmax.f32 %v2620_v0, 0.0  ;;  %2749 = vst [vmem:[%s6635_s7 + $0x28] sm:$0xff] %v2685_v4  ;;  %2330 = vrot.lane.b32.xlu1 %v1640_v52, %s3244_s19  ;;  %v2494_v2 = vsel %vm287_vm9, %v2430_v60, %v7162_v31  ;;  %v2495_v22 = vsel %vm287_vm9, %v2431_v17, %v7163_v38  ;;  %2328 = vrot.lane.b32.xlu0 %v1639_v24, %s3244_s19  ;;  %v2247_v55 = vpop.permute.xlu1 %2246  ;;  %v2245_v24 = vpop.permute.xlu0 %2244  ;;  %v7165_v17 = vld [vmem:[#allocation126_spill] sm:$0xff] }
 0x1f8   :  { %v2505_v63 = vsel %vm287_vm9, %v2441_v40, %v7164_v62  ;;  %v957_v0 = vmax.f32 %v808_v33, 0.0  ;;  %v958_v48 = vmax.f32 %v811_v10, 0.0  ;;  %v843_v4 = vadd.f32 %v5427_v41, %v5767_v61  ;;  %v7168_v7 = vld [vmem:[#allocation38_spill] sm:$0xff] }
 0x1f9   :  { %2759 = vst [vmem:[%s6635_s7 + $0x78] sm:$0xff] %v2695_v53  ;;  %v5959_v21 = vpop.f32.mrf.mxu3  ;;  %v2560_v28 = vsel %vm2551_vm15, %v2495_v22, %v2247_v55  ;;  %vm1578_vm3 = vcmp.eq.s32.totalorder %v7165_v17, 3  ;;  %v1216_v42 = vsel %vm1152_vm14, %v7166_v15, 0.0  ;;  %v2559_v10 = vsel %vm2551_vm15, %v2494_v2, %v2245_v24  ;;  %v7169_v31 = vld [vmem:[#allocation62_spill] sm:$0xff]  ;;  %v7170_v22 = vld [vmem:[#allocation131_spill] sm:$0xff]  ;;  %v7171_v2 = vld [vmem:[#allocation48_spill] sm:$0xff] }
 0x1fa   :  { %2748 = vst [vmem:[%s6635_s7 + $0x20] sm:$0xff] %v2684_v30  ;;  %v850_v37 = vpop.f32.mrf.mxu1  ;;  %v2624_v33 = vadd.f32 %v2560_v28, %v958_v48  ;;  %v7167_v30 = vld [vmem:[#allocation129_spill] sm:$0xff]  ;;  %v1643_v60 = vsel %vm1579_vm2, %v5504_v20, 0.0  ;;  %v816_v40 = vadd.f32 %v5427_v41, %v7168_v7  ;;  %v818_v9 = vadd.f32 %v5427_v41, %v7169_v31  ;;  %v7178_v28 = vld [vmem:[#allocation19_spill] sm:$0xff]  ;;  %v7179_v17 = vld [vmem:[#allocation32_spill] sm:$0xff] }
 0x1fb   :  { %v2267_v53 = vpop.permute.xlu2 %2266  ;;  %v1227_v19 = vsel %vm1163_vm0, %v7167_v30, 0.0  ;;  %v1642_v62 = vsel %vm1578_vm3, %v7170_v22, 0.0  ;;  %v2434_v32 = vsel %vm2422_vm11, %v5859_v46, %v7171_v2  ;;  %v971_v45 = vmax.f32 %v843_v4, 0.0  ;;  %v7174_v48 = vld [vmem:[#allocation73_spill] sm:$0xff]  ;;  %v7177_v46 = vld [vmem:[#allocation8_spill] sm:$0xff]  ;;  %v7180_v31 = vld [vmem:[#allocation139_spill] sm:$0xff] }
 0x1fc   :  { %v2570_v52 = vsel %vm2551_vm15, %v2505_v63, %v2267_v53  ;;  %v2688_v38 = vmax.f32 %v2624_v33, 0.0  ;;  %v7172_v63 = vld [vmem:[#allocation87_spill] sm:$0xff]  ;;  %v7173_v53 = vld [vmem:[#allocation77_spill] sm:$0xff]  ;;  %vm1155_vm5 = vcmp.eq.s32.totalorder %v7174_v48, 0  ;;  %v2498_v24 = vsel %vm287_vm9, %v2434_v32, %v7178_v28 }
 0x1fd   :  { %v2634_v49 = vadd.f32 %v2570_v52, %v968_v54  ;;  %v2623_v54 = vadd.f32 %v2559_v10, %v957_v0  ;;  %vm1159_vm4 = vcmp.eq.s32.totalorder %v7172_v63, 0  ;;  %v2433_v0 = vsel %vm2422_vm11, %v1216_v42, %v7173_v53  ;;  %v7175_v52 = vld [vmem:[#allocation101_spill] sm:$0xff]  ;;  %v7184_v48 = vld [vmem:[#allocation143_spill] sm:$0xff] }
 0x1fe   :  { %2338 = vrot.lane.b32.xlu2 %v1644_v59, %s3244_s19  ;;  %v2444_v55 = vsel %vm2422_vm11, %v1227_v19, %v7175_v52  ;;  %2752 = vst [vmem:[%s6635_s7 + $0x40] sm:$0xff] %v2688_v38  ;;  %v2497_v4 = vsel %vm287_vm9, %v2433_v0, %v7177_v46  ;;  %vm1583_vm7 = vcmp.eq.s32.totalorder %v5542_v39, 3  ;;  %v960_v10 = vmax.f32 %v816_v40, 0.0  ;;  %v7181_v38 = vld [vmem:[#allocation80_spill] sm:$0xff]  ;;  %v7189_v63 = vld [vmem:[#allocation93_spill] sm:$0xff] }
 0x1ff   :  { %v2698_v61 = vmax.f32 %v2634_v49, 0.0  ;;  %v2687_v20 = vmax.f32 %v2623_v54, 0.0  ;;  %v7176_v49 = vld [vmem:[#allocation134_spill] sm:$0xff]  ;;  %2336 = vrot.lane.b32.xlu1 %v1643_v60, %s3244_s19  ;;  %v2508_v15 = vsel %vm287_vm9, %v2444_v55, %v7179_v17  ;;  %2334 = vrot.lane.b32.xlu0 %v1642_v62, %s3244_s19  ;;  %v961_v59 = vmax.f32 %v818_v9, 0.0  ;;  %v2253_v19 = vpop.permute.xlu1 %2252  ;;  %v2251_v7 = vpop.permute.xlu0 %2250  ;;  %v7185_v55 = vld [vmem:[#allocation84_spill] sm:$0xff]  ;;  %v7188_v17 = vld [vmem:[#allocation85_spill] sm:$0xff] }
 0x200   :  { %vm1166_vm6 = vcmp.eq.s32.totalorder %v7176_v49, 0  ;;  %vm1582_vm8 = vcmp.eq.s32.totalorder %v5559_v16, 3  ;;  %v2563_v60 = vsel %vm2551_vm15, %v2498_v24, %v2253_v19  ;;  %vm1581_vm10 = vcmp.eq.s32.totalorder %v7180_v31, 3  ;;  %v7182_v16 = vld [vmem:[#allocation141_spill] sm:$0xff]  ;;  %v7186_v46 = vld [vmem:[#allocation120_spill] sm:$0xff] }
 0x201   :  { %2762 = vst [vmem:[%s6635_s7 + $0x90] sm:$0xff] %v2698_v61  ;;  %v851_v61 = vadd.f32 %v5427_v41, %v850_v37  ;;  %v1219_v22 = vsel %vm1155_vm5, %v7181_v38, 0.0  ;;  %v2627_v39 = vadd.f32 %v2563_v60, %v961_v59  ;;  %v2562_v40 = vsel %vm2551_vm15, %v2497_v4, %v2251_v7  ;;  %v6020_v62 = vpop.f32.mrf.mxu3  ;;  %v7191_v59 = vld [vmem:[#allocation144_spill] sm:$0xff]  ;;  %v7194_v7 = vld [vmem:[#allocation15_spill] sm:$0xff] }
 0x202   :  { %2751 = vst [vmem:[%s6635_s7 + $0x38] sm:$0xff] %v2687_v20  ;;  %v6007_v42 = vpop.f32.mrf.mxu1  ;;  %v1647_v9 = vsel %vm1583_vm7, %v5574_v44, 0.0  ;;  %v1230_v37 = vsel %vm1166_vm6, %v7182_v16, 0.0  ;;  %v2626_v32 = vadd.f32 %v2562_v40, %v960_v10  ;;  %v7183_v20 = vld [vmem:[#allocation133_spill] sm:$0xff]  ;;  %v1645_v52 = vsel %vm1581_vm10, %v7184_v48, 0.0 }
 0x203   :  { %v2273_v33 = vpop.permute.xlu2 %2272  ;;  %v826_v53 = vadd.f32 %v5427_v41, %v7183_v20  ;;  %v2691_v0 = vmax.f32 %v2627_v39, 0.0  ;;  %v1223_v44 = vsel %vm1159_vm4, %v7185_v55, 0.0  ;;  %v823_v4 = vadd.f32 %v5427_v41, %v7186_v46  ;;  %v7198_v46 = vld [vmem:[#allocation158_spill] sm:$0xff] }
 0x204   :  { %v2573_v30 = vsel %vm2551_vm15, %v2508_v15, %v2273_v33  ;;  %v974_v28 = vmax.f32 %v851_v61, 0.0  ;;  %v2690_v49 = vmax.f32 %v2626_v32, 0.0  ;;  %v2436_v15 = vsel %vm2422_vm11, %v1219_v22, %v7188_v17  ;;  %v7190_v33 = vld [vmem:[#allocation104_spill] sm:$0xff]  ;;  %v7196_v32 = vld [vmem:[#allocation91_spill] sm:$0xff] }
 0x205   :  { %v2637_v54 = vadd.f32 %v2573_v30, %v971_v45  ;;  %v1646_v45 = vsel %vm1582_vm8, %v5586_v1, 0.0  ;;  %v7187_v1 = vld [vmem:[#allocation57_spill] sm:$0xff]  ;;  %vm1158_vm12 = vcmp.eq.s32.totalorder %v7189_v63, 0  ;;  %v2447_v10 = vsel %vm2422_vm11, %v1230_v37, %v7190_v33  ;;  %2755 = vst [vmem:[%s6635_s7 + $0x58] sm:$0xff] %v2691_v0  ;;  %v7192_v30 = vld [vmem:[#allocation3_spill] sm:$0xff]  ;;  %v7197_v0 = vld [vmem:[#allocation152_spill] sm:$0xff] }
 0x206   :  { %2344 = vrot.lane.b32.xlu2 %v1647_v9, %s3244_s19  ;;  %v2437_v24 = vsel %vm2422_vm11, %v5930_v3, %v7187_v1  ;;  %vm1169_vm13 = vcmp.eq.s32.totalorder %v7191_v59, 0  ;;  %v2500_v19 = vsel %vm287_vm9, %v2436_v15, %v7192_v30  ;;  %v7193_v3 = vld [vmem:[#allocation28_spill] sm:$0xff]  ;;  %2754 = vst [vmem:[%s6635_s7 + $0x50] sm:$0xff] %v2690_v49  ;;  %vm1586_vm14 = vcmp.eq.s32.totalorder %v5624_v18, 3 }
 0x207   :  { %v2701_v2 = vmax.f32 %v2637_v54, 0.0  ;;  %2342 = vrot.lane.b32.xlu1 %v1646_v45, %s3244_s19  ;;  %v2511_v61 = vsel %vm287_vm9, %v2447_v10, %v7193_v3  ;;  %2340 = vrot.lane.b32.xlu0 %v1645_v52, %s3244_s19  ;;  %v2501_v31 = vsel %vm287_vm9, %v2437_v24, %v7194_v7  ;;  %v964_v38 = vmax.f32 %v826_v53, 0.0  ;;  %v2259_v39 = vpop.permute.xlu1 %2258  ;;  %v2257_v37 = vpop.permute.xlu0 %2256  ;;  %v7200_v24 = vld [vmem:[#allocation154_spill] sm:$0xff]  ;;  %v7203_v10 = vld [vmem:[#allocation92_spill] sm:$0xff]  ;;  %v7207_v7 = vld [vmem:[#allocation29_spill] sm:$0xff] }
 0x208   :  { %vm1585_vm0 = vcmp.eq.s32.totalorder %v5641_v35, 3  ;;  %v963_v40 = vmax.f32 %v823_v4, 0.0  ;;  %v2566_v16 = vsel %vm2551_vm15, %v2501_v31, %v2259_v39  ;;  %v1222_v18 = vsel %vm1158_vm12, %v7196_v32, 0.0  ;;  %v7204_v30 = vld [vmem:[#allocation128_spill] sm:$0xff]  ;;  %v7208_v31 = vld [vmem:[#allocation43_spill] sm:$0xff] }
 0x209   :  { %2765 = vst [vmem:[%s6635_s7 + $0xa8] sm:$0xff] %v2701_v2  ;;  %v7195_v2 = vld [vmem:[#allocation148_spill] sm:$0xff]  ;;  %v2630_v45 = vadd.f32 %v2566_v16, %v964_v38  ;;  %v2565_v20 = vsel %vm2551_vm15, %v2500_v19, %v2257_v37  ;;  %v1650_v53 = vsel %vm1586_vm14, %v5656_v56, 0.0  ;;  %v1233_v35 = vsel %vm1169_vm13, %v7197_v0, 0.0  ;;  %v6082_v15 = vpop.f32.mrf.mxu3  ;;  %v7205_v19 = vld [vmem:[#allocation107_spill] sm:$0xff] }
 0x20a   :  { %v6059_v54 = vpop.f32.mrf.mxu1  ;;  %vm1584_vm1 = vcmp.eq.s32.totalorder %v7195_v2, 3  ;;  %v2629_v52 = vadd.f32 %v2565_v20, %v963_v40  ;;  %v1649_v55 = vsel %vm1585_vm0, %v5668_v57, 0.0  ;;  %v831_v4 = vadd.f32 %v5427_v41, %v7198_v46  ;;  %v7201_v56 = vld [vmem:[#allocation124_spill] sm:$0xff]  ;;  %v7202_v57 = vld [vmem:[#allocation66_spill] sm:$0xff]  ;;  %v7209_v20 = vld [vmem:[#allocation163_spill] sm:$0xff] }
 0x20b   :  { %v2279_v60 = vpop.permute.xlu2 %2278  ;;  %v2694_v1 = vmax.f32 %v2630_v45, 0.0  ;;  %v1648_v17 = vsel %vm1584_vm1, %v7200_v24, 0.0  ;;  %vm1162_vm2 = vcmp.eq.s32.totalorder %v7201_v56, 0  ;;  %v2440_v33 = vsel %vm2422_vm11, %v1223_v44, %v7202_v57  ;;  %v7214_v56 = vld [vmem:[#allocation75_spill] sm:$0xff] }
 0x20c   :  { %v2576_v22 = vsel %vm2551_vm15, %v2511_v61, %v2279_v60  ;;  %v2693_v63 = vmax.f32 %v2629_v52, 0.0  ;;  %v2439_v59 = vsel %vm2422_vm11, %v1222_v18, %v7203_v10  ;;  %vm1161_vm3 = vcmp.eq.s32.totalorder %v7204_v30, 0  ;;  %v7206_v61 = vld [vmem:[#allocation11_spill] sm:$0xff]  ;;  %v7215_v30 = vld [vmem:[#allocation97_spill] sm:$0xff] }
 0x20d   :  { %v2640_v9 = vadd.f32 %v2576_v22, %v974_v28  ;;  %v7199_v28 = vld [vmem:[#allocation174_spill] sm:$0xff]  ;;  %v2450_v3 = vsel %vm2422_vm11, %v1233_v35, %v7205_v19  ;;  %2758 = vst [vmem:[%s6635_s7 + $0x70] sm:$0xff] %v2694_v1  ;;  %v2503_v60 = vsel %vm287_vm9, %v2439_v59, %v7206_v61  ;;  %v2504_v44 = vsel %vm287_vm9, %v2440_v33, %v7207_v7  ;;  %v7212_v1 = vld [vmem:[#allocation132_spill] sm:$0xff] }
 0x20e   :  { %v833_v49 = vadd.f32 %v5427_v41, %v7199_v28  ;;  %2350 = vrot.lane.b32.xlu2 %v1650_v53, %s3244_s19  ;;  %v2514_v38 = vsel %vm287_vm9, %v2450_v3, %v7208_v31  ;;  %2757 = vst [vmem:[%s6635_s7 + $0x68] sm:$0xff] %v2693_v63  ;;  %vm1589_vm4 = vcmp.eq.s32.totalorder %v5709_v5, 3  ;;  %v966_v40 = vmax.f32 %v831_v4, 0.0  ;;  %v7211_v28 = vld [vmem:[#allocation171_spill] sm:$0xff]  ;;  %v7216_v3 = vld [vmem:[#allocation24_spill] sm:$0xff]  ;;  %v7217_v7 = vld [vmem:[#allocation142_spill] sm:$0xff] }
 0x20f   :  { %v2704_v48 = vmax.f32 %v2640_v9, 0.0  ;;  %2348 = vrot.lane.b32.xlu1 %v1649_v55, %s3244_s19  ;;  %2346 = vrot.lane.b32.xlu0 %v1648_v17, %s3244_s19  ;;  %v2265_v37 = vpop.permute.xlu1 %2264  ;;  %vm1588_vm5 = vcmp.eq.s32.totalorder %v5703_v25, 3  ;;  %v841_v2 = vadd.f32 %v5427_v41, %v5675_v12  ;;  %v2263_v45 = vpop.permute.xlu0 %2262  ;;  %vm1587_vm6 = vcmp.eq.s32.totalorder %v7209_v20, 3  ;;  %v7210_v12 = vld [vmem:[#allocation130_spill] sm:$0xff] }
 0x210   :  { %v967_v9 = vmax.f32 %v833_v49, 0.0  ;;  %v2569_v18 = vsel %vm2551_vm15, %v2504_v44, %v2265_v37  ;;  %v2568_v5 = vsel %vm2551_vm15, %v2503_v60, %v2263_v45  ;;  %v1653_v35 = vsel %vm1589_vm4, %v5748_v29, 0.0  ;;  %v7213_v29 = vld [vmem:[#allocation137_spill] sm:$0xff]  ;;  %v7218_v31 = vld [vmem:[#allocation146_spill] sm:$0xff] }
 0x211   :  { %2768 = vst [vmem:[%s6635_s7 + $0xc0] sm:$0xff] %v2704_v48  ;;  %v838_v48 = vadd.f32 %v5427_v41, %v5594_v58  ;;  %v2632_v25 = vadd.f32 %v2568_v5, %v966_v40  ;;  %v1652_v52 = vsel %vm1588_vm5, %v5740_v6, 0.0  ;;  %v1226_v55 = vsel %vm1162_vm2, %v7210_v12, 0.0  ;;  %v6136_v6 = vpop.f32.mrf.mxu3  ;;  %v3218_v40 = vld [vmem:[%s6629_s6 + $0xb0] sm:$0xff]  ;;  %v7222_v5 = vld [vmem:[#allocation153_spill] sm:$0xff] }
 0x212   :  { %v857_v22 = vpop.f32.mrf.mxu1  ;;  %v2633_v0 = vadd.f32 %v2569_v18, %v967_v9  ;;  %v1651_v49 = vsel %vm1587_vm6, %v7211_v28, 0.0  ;;  %v1225_v24 = vsel %vm1161_vm3, %v7212_v1, 0.0  ;;  %vm1165_vm7 = vcmp.eq.s32.totalorder %v7213_v29, 0  ;;  %v7227_v1 = vld [vmem:[#allocation65_spill] sm:$0xff] }
 0x213   :  { %v2285_v39 = vpop.permute.xlu2 %2284  ;;  %v858_v16 = vadd.f32 %v5427_v41, %v857_v22  ;;  %v2696_v17 = vmax.f32 %v2632_v25, 0.0  ;;  %v970_v58 = vmax.f32 %v841_v2, 0.0  ;;  %v2443_v57 = vsel %vm2422_vm11, %v1226_v55, %v7214_v56  ;;  %v7225_v55 = vld [vmem:[#allocation113_spill] sm:$0xff] }
 0x214   :  { %v2579_v32 = vsel %vm2551_vm15, %v2514_v38, %v2285_v39  ;;  %v2697_v4 = vmax.f32 %v2633_v0, 0.0  ;;  %v969_v33 = vmax.f32 %v838_v48, 0.0  ;;  %v2442_v19 = vsel %vm2422_vm11, %v1225_v24, %v7215_v30  ;;  %v7219_v38 = vld [vmem:[#allocation13_spill] sm:$0xff] }
 0x215   :  { %v977_v53 = vmax.f32 %v858_v16, 0.0  ;;  %2760 = vst [vmem:[%s6635_s7 + $0x80] sm:$0xff] %v2696_v17  ;;  %vm1175_vm8 = vcmp.eq.s32.totalorder %v5435_v11, 0  ;;  %v2507_v61 = vsel %vm287_vm9, %v2443_v57, %v7216_v3  ;;  %v1229_v44 = vsel %vm1165_vm7, %v7217_v7, 0.0  ;;  %v7223_v48 = vld [vmem:[#allocation161_spill] sm:$0xff]  ;;  %v7229_v57 = vld [vmem:[#allocation159_spill] sm:$0xff] }
 0x216   :  { %2356 = vrot.lane.b32.xlu2 %v1653_v35, %s3244_s19  ;;  %2761 = vst [vmem:[%s6635_s7 + $0x88] sm:$0xff] %v2697_v4  ;;  %vm1168_vm10 = vcmp.eq.s32.totalorder %v7218_v31, 0  ;;  %v2506_v22 = vsel %vm287_vm9, %v2442_v19, %v7219_v38  ;;  %vm1164_vm12 = vcmp.eq.s32.totalorder %v3218_v40, 0  ;;  %v848_v9 = vadd.f32 %v5427_v41, %v5899_v14  ;;  %v3219_v14 = vld [vmem:[%s6628_s5 + $0xb0] sm:$0xff]  ;;  %v7226_v4 = vld [vmem:[#allocation155_spill] sm:$0xff] }
 0x217   :  { %v2643_v46 = vadd.f32 %v2579_v32, %v977_v53  ;;  %2354 = vrot.lane.b32.xlu1 %v1652_v52, %s3244_s19  ;;  %2352 = vrot.lane.b32.xlu0 %v1651_v49, %s3244_s19  ;;  %v2271_v60 = vpop.permute.xlu1 %2270  ;;  %v2269_v11 = vpop.permute.xlu0 %2268  ;;  %v1239_v2 = vsel %vm1175_vm8, %v5468_v51, 0.0  ;;  %v7220_v32 = vld [vmem:[#allocation23_spill] sm:$0xff]  ;;  %v846_v45 = vadd.f32 %v5427_v41, %v5843_v50  ;;  %v1232_v35 = vsel %vm1168_vm10, %v7222_v5, 0.0 }
 0x218   :  { %v2572_v39 = vsel %vm2551_vm15, %v2507_v61, %v2271_v60  ;;  %v2571_v37 = vsel %vm2551_vm15, %v2506_v22, %v2269_v11  ;;  %v873_v18 = vadd.f32 %v5427_v41, %v7220_v32  ;;  %v7221_v53 = vld [vmem:[#allocation151_spill] sm:$0xff]  ;;  %vm1171_vm14 = vcmp.eq.s32.totalorder %v7223_v48, 0  ;;  %v7231_v60 = vld [vmem:[#allocation181_spill] sm:$0xff]  ;;  %v7241_v48 = vld [vmem:[#allocation110_spill] sm:$0xff] }
 0x219   :  { %v2707_v63 = vmax.f32 %v2643_v46, 0.0  ;;  %v2636_v16 = vadd.f32 %v2572_v39, %v970_v58  ;;  %v2635_v20 = vadd.f32 %v2571_v37, %v969_v33  ;;  %vm1167_vm13 = vcmp.eq.s32.totalorder %v7221_v53, 0  ;;  %v7224_v52 = vld [vmem:[#allocation83_spill] sm:$0xff]  ;;  %v7230_v33 = vld [vmem:[#allocation40_spill] sm:$0xff]  ;;  %v6200_v61 = vpop.f32.mrf.mxu3  ;;  %v7235_v53 = vld [vmem:[#allocation90_spill] sm:$0xff] }
 0x21a   :  { %v6144_v10 = vpop.f32.mrf.mxu1  ;;  %v1228_v25 = vsel %vm1164_vm12, %v3219_v14, 0.0  ;;  %v2446_v12 = vsel %vm2422_vm11, %v1229_v44, %v7224_v52  ;;  %v2456_v50 = vsel %vm2422_vm11, %v1239_v2, %v7225_v55  ;;  %vm1178_vm0 = vcmp.eq.s32.totalorder %v5517_v26, 0  ;;  %v7232_v44 = vld [vmem:[#allocation16_spill] sm:$0xff]  ;;  %v7237_v14 = vld [vmem:[#allocation165_spill] sm:$0xff]  ;;  %v7239_v52 = vld [vmem:[#allocation115_spill] sm:$0xff] }
 0x21b   :  { %v6146_v59 = vpop.permute.xlu2 %2290  ;;  %2771 = vst [vmem:[%s6635_s7 + $0xd8] sm:$0xff] %v2707_v63  ;;  %v2700_v0 = vmax.f32 %v2636_v16, 0.0  ;;  %v2699_v51 = vmax.f32 %v2635_v20, 0.0  ;;  %v973_v46 = vmax.f32 %v848_v9, 0.0  ;;  %v1231_v28 = vsel %vm1167_vm13, %v7226_v4, 0.0  ;;  %v7228_v63 = vld [vmem:[#allocation100_spill] sm:$0xff] }
 0x21c   :  { %v983_v49 = vmax.f32 %v873_v18, 0.0  ;;  %v2520_v24 = vsel %vm287_vm9, %v2456_v50, %v7227_v1  ;;  %v972_v17 = vmax.f32 %v846_v45, 0.0  ;;  %v2445_v56 = vsel %vm2422_vm11, %v1228_v25, %v7228_v63  ;;  %v7233_v16 = vld [vmem:[#allocation39_spill] sm:$0xff]  ;;  %v7234_v18 = vld [vmem:[#allocation168_spill] sm:$0xff] }
 0x21d   :  { %2764 = vst [vmem:[%s6635_s7 + $0xa0] sm:$0xff] %v2700_v0  ;;  %vm1172_vm1 = vcmp.eq.s32.totalorder %v7229_v57, 0  ;;  %v2510_v30 = vsel %vm287_vm9, %v2446_v12, %v7230_v33  ;;  %v1242_v7 = vsel %vm1178_vm0, %v7231_v60, 0.0  ;;  %v2509_v31 = vsel %vm287_vm9, %v2445_v56, %v7232_v44  ;;  %v7238_v25 = vld [vmem:[#allocation103_spill] sm:$0xff]  ;;  %v7240_v55 = vld [vmem:[#allocation184_spill] sm:$0xff]  ;;  %v7246_v60 = vld [vmem:[#allocation69_spill] sm:$0xff] }
 0x21e   :  { %2763 = vst [vmem:[%s6635_s7 + $0x98] sm:$0xff] %v2699_v51  ;;  %vm1181_vm2 = vcmp.eq.s32.totalorder %v5599_v27, 0  ;;  %v856_v11 = vadd.f32 %v5427_v41, %v6059_v54  ;;  %v881_v37 = vadd.f32 %v5427_v41, %v7233_v16  ;;  %v853_v26 = vadd.f32 %v5427_v41, %v6007_v42  ;;  %v7236_v54 = vld [vmem:[#allocation170_spill] sm:$0xff]  ;;  %v7244_v63 = vld [vmem:[#allocation35_spill] sm:$0xff] }
 0x21f   :  { %v2277_v3 = vpop.permute.xlu1 %2276  ;;  %v2275_v39 = vpop.permute.xlu0 %2274  ;;  %v1236_v45 = vsel %vm1172_vm1, %v7234_v18, 0.0  ;;  %v2449_v0 = vsel %vm2422_vm11, %v1232_v35, %v7235_v53  ;;  %v1235_v5 = vsel %vm1171_vm14, %v7236_v54, 0.0  ;;  %vm1170_vm3 = vcmp.eq.s32.totalorder %v7237_v14, 0  ;;  %v7249_v14 = vld [vmem:[#allocation123_spill] sm:$0xff] }
 0x220   :  { %v2575_v22 = vsel %vm2551_vm15, %v2510_v30, %v2277_v3  ;;  %v2574_v9 = vsel %vm2551_vm15, %v2509_v31, %v2275_v39  ;;  %v2448_v51 = vsel %vm2422_vm11, %v1231_v28, %v7238_v25  ;;  %v2459_v12 = vsel %vm2422_vm11, %v1242_v7, %v7239_v52 }
 0x221   :  { %v2639_v40 = vadd.f32 %v2575_v22, %v973_v46  ;;  %v2638_v32 = vadd.f32 %v2574_v9, %v972_v17  ;;  %v1245_v35 = vsel %vm1181_vm2, %v7240_v55, 0.0  ;;  %v976_v50 = vmax.f32 %v856_v11, 0.0  ;;  %v7243_v17 = vld [vmem:[#allocation12_spill] sm:$0xff]  ;;  %v6259_v22 = vld [vmem:[%s6634_s4] ss:$0 sm:$0xff]  ;;  %v6263_v16 = vpop.f32.mrf.mxu3 }
 0x222   :  { %v862_v29 = vpop.f32.mrf.mxu1  ;;  %v2453_v46 = vsel %vm2422_vm11, %v1236_v45, %v7241_v48  ;;  %v986_v4 = vmax.f32 %v881_v37, 0.0  ;;  %v975_v28 = vmax.f32 %v853_v26, 0.0  ;;  %v2513_v56 = vsel %vm287_vm9, %v2449_v0, %v7244_v63 }
 0x223   :  { %v2297_v58 = vpop.permute.xlu2 %2296  ;;  %v2703_v20 = vmax.f32 %v2639_v40, 0.0  ;;  %v2702_v42 = vmax.f32 %v2638_v32, 0.0  ;;  %v888_v7 = vadd.f32 %v5427_v41, %v7246_v60  ;;  %v863_v39 = vadd.f32 %v6259_v22, %v862_v29  ;;  %v3221_v29 = vld [vmem:[%s6628_s5 + $0xe0] sm:$0xff] }
 0x224   :  { %v2585_v19 = vsel %vm2551_vm15, %v2520_v24, %v2297_v58  ;;  %v2512_v58 = vsel %vm287_vm9, %v2448_v51, %v7243_v17  ;;  %v1234_v45 = vsel %vm1170_vm3, %v3221_v29, 0.0  ;;  %vm1184_vm4 = vcmp.eq.s32.totalorder %v5680_v23, 0 }
 0x225   :  { %v2649_v38 = vadd.f32 %v2585_v19, %v983_v49  ;;  %2767 = vst [vmem:[%s6635_s7 + $0xb8] sm:$0xff] %v2703_v20  ;;  %v7242_v49 = vld [vmem:[#allocation72_spill] sm:$0xff]  ;;  %v7245_v19 = vld [vmem:[#allocation53_spill] sm:$0xff]  ;;  %v979_v54 = vmax.f32 %v863_v39, 0.0  ;;  %v989_v51 = vmax.f32 %v888_v7, 0.0  ;;  %v1248_v63 = vsel %vm1184_vm4, %v5718_v47, 0.0 }
 0x226   :  { %v2523_v1 = vsel %vm287_vm9, %v2459_v12, %v7242_v49  ;;  %2766 = vst [vmem:[%s6635_s7 + $0xb0] sm:$0xff] %v2702_v42  ;;  %v2517_v3 = vsel %vm287_vm9, %v2453_v46, %v7245_v19  ;;  %v7250_v12 = vld [vmem:[#allocation106_spill] sm:$0xff]  ;;  %v3225_v39 = vld [vmem:[%s6628_s5 + $0xf8] sm:$0xff] }
 0x227   :  { %v2713_v2 = vmax.f32 %v2649_v38, 0.0  ;;  %v2283_v30 = vpop.permute.xlu1 %2282  ;;  %v2281_v38 = vpop.permute.xlu0 %2280  ;;  %v2582_v37 = vsel %vm2551_vm15, %v2517_v3, %v6146_v59  ;;  %v7248_v59 = vld [vmem:[#allocation117_spill] sm:$0xff]  ;;  %v2451_v55 = vsel %vm2422_vm11, %v1234_v45, %v7250_v12  ;;  %v3222_v49 = vld [vmem:[%s6629_s6 + $0x100] sm:$0xff] }
 0x228   :  { %v2578_v31 = vsel %vm2551_vm15, %v2513_v56, %v2283_v30  ;;  %v2577_v9 = vsel %vm2551_vm15, %v2512_v58, %v2281_v38  ;;  %v2462_v0 = vsel %vm2422_vm11, %v1245_v35, %v7248_v59  ;;  %v7251_v35 = vld [vmem:[#allocation55_spill] sm:$0xff]  ;;  %vm1174_vm5 = vcmp.eq.s32.totalorder %v3222_v49, 0  ;;  %v3223_v58 = vld [vmem:[%s6629_s6 + $0xf8] sm:$0xff]  ;;  %v3224_v7 = vld [vmem:[%s6628_s5 + $0x100] sm:$0xff] }
 0x229   :  { %2777 = vst [vmem:[%s6635_s7 + $0x108] sm:$0xff] %v2713_v2  ;;  %v2642_v40 = vadd.f32 %v2578_v31, %v976_v50  ;;  %v2641_v2 = vadd.f32 %v2577_v9, %v975_v28  ;;  %v2526_v25 = vsel %vm287_vm9, %v2462_v0, %v7249_v14  ;;  %vm1173_vm6 = vcmp.eq.s32.totalorder %v3223_v58, 0  ;;  %v7254_v31 = vld [vmem:[#allocation9_spill] sm:$0xff]  ;;  %v6319_v47 = vpop.f32.mrf.mxu3  ;;  %v7255_v9 = vld [vmem:[#allocation119_spill] sm:$0xff]  ;;  %v7259_v59 = vld [vmem:[#allocation58_spill] sm:$0xff] }
 0x22a   :  { %v865_v24 = vpop.f32.mrf.mxu1  ;;  %v871_v38 = vadd.f32 %v6259_v22, %v7254_v31  ;;  %v3226_v14 = vld [vmem:[%s6629_s6 + $0x118] sm:$0xff]  ;;  %v3229_v58 = vld [vmem:[%s6628_s5 + $0x110] sm:$0xff] }
 0x22b   :  { %v2303_v27 = vpop.permute.xlu2 %2302  ;;  %v866_v57 = vadd.f32 %v5427_v41, %v865_v24  ;;  %v861_v41 = vadd.f32 %v6259_v22, %v6144_v10  ;;  %v2706_v18 = vmax.f32 %v2642_v40, 0.0  ;;  %v2705_v20 = vmax.f32 %v2641_v2, 0.0  ;;  %v7247_v10 = vld [vmem:[#allocation96_spill] sm:$0xff] }
 0x22c   :  { %v2588_v33 = vsel %vm2551_vm15, %v2523_v1, %v2303_v27  ;;  %v2452_v53 = vsel %vm2422_vm11, %v1235_v5, %v7247_v10  ;;  %v7252_v1 = vld [vmem:[#allocation25_spill] sm:$0xff]  ;;  %v7257_v2 = vld [vmem:[#allocation136_spill] sm:$0xff]  ;;  %vm1177_vm7 = vcmp.eq.s32.totalorder %v3226_v14, 0 }
 0x22d   :  { %v2652_v44 = vadd.f32 %v2588_v33, %v986_v4  ;;  %v980_v11 = vmax.f32 %v866_v57, 0.0  ;;  %2770 = vst [vmem:[%s6635_s7 + $0xd0] sm:$0xff] %v2706_v18  ;;  %v978_v52 = vmax.f32 %v861_v41, 0.0  ;;  %v2516_v50 = vsel %vm287_vm9, %v2452_v53, %v7251_v35  ;;  %v7253_v33 = vld [vmem:[#allocation138_spill] sm:$0xff]  ;;  %v7265_v31 = vld [vmem:[#allocation112_spill] sm:$0xff] }
 0x22e   :  { %2769 = vst [vmem:[%s6635_s7 + $0xc8] sm:$0xff] %v2705_v20  ;;  %v2515_v28 = vsel %vm287_vm9, %v2451_v55, %v7252_v1  ;;  %v896_v30 = vadd.f32 %v6259_v22, %v7253_v33  ;;  %v2465_v41 = vsel %vm2422_vm11, %v1248_v63, %v7255_v9  ;;  %v7258_v20 = vld [vmem:[#allocation109_spill] sm:$0xff]  ;;  %v982_v53 = vmax.f32 %v871_v38, 0.0  ;;  %v3227_v55 = vld [vmem:[%s6629_s6 + $0x110] sm:$0xff] }
 0x22f   :  { %v2716_v26 = vmax.f32 %v2652_v44, 0.0  ;;  %v2646_v32 = vadd.f32 %v2582_v37, %v980_v11  ;;  %v2289_v46 = vpop.permute.xlu1 %2288  ;;  %v2287_v17 = vpop.permute.xlu0 %2286  ;;  %v1238_v44 = vsel %vm1174_vm5, %v3224_v7, 0.0  ;;  %v1237_v11 = vsel %vm1173_vm6, %v3225_v39, 0.0  ;;  %v7256_v37 = vld [vmem:[#allocation99_spill] sm:$0xff]  ;;  %v3228_v1 = vld [vmem:[%s6628_s5 + $0x118] sm:$0xff] }
 0x230   :  { %v2581_v27 = vsel %vm2551_vm15, %v2516_v50, %v2289_v46  ;;  %v2580_v57 = vsel %vm2551_vm15, %v2515_v28, %v2287_v17  ;;  %v992_v18 = vmax.f32 %v896_v30, 0.0  ;;  %v2454_v10 = vsel %vm2422_vm11, %v1237_v11, %v7258_v20  ;;  %v7266_v39 = vld [vmem:[#allocation81_spill] sm:$0xff] }
 0x231   :  { %2780 = vst [vmem:[%s6635_s7 + $0x120] sm:$0xff] %v2716_v26  ;;  %v2710_v42 = vmax.f32 %v2646_v32, 0.0  ;;  %v2645_v56 = vadd.f32 %v2581_v27, %v979_v54  ;;  %v2644_v3 = vadd.f32 %v2580_v57, %v978_v52  ;;  %v2455_v26 = vsel %vm2422_vm11, %v1238_v44, %v7256_v37  ;;  %v6372_v30 = vpop.f32.mrf.mxu3  ;;  %v7268_v37 = vld [vmem:[#allocation37_spill] sm:$0xff] }
 0x232   :  { %v867_v4 = vpop.f32.mrf.mxu1  ;;  %v2529_v32 = vsel %vm287_vm9, %v2465_v41, %v7257_v2  ;;  %v2519_v0 = vsel %vm287_vm9, %v2455_v26, %v7259_v59  ;;  %vm1176_vm8 = vcmp.eq.s32.totalorder %v3227_v55, 0  ;;  %v1241_v28 = vsel %vm1177_vm7, %v3228_v1, 0.0  ;;  %v7271_v55 = vld [vmem:[#allocation44_spill] sm:$0xff] }
 0x233   :  { %v2309_v5 = vpop.permute.xlu2 %2308  ;;  %2774 = vst [vmem:[%s6635_s7 + $0xf0] sm:$0xff] %v2710_v42  ;;  %v868_v60 = vadd.f32 %v6259_v22, %v867_v4  ;;  %v2709_v23 = vmax.f32 %v2645_v56, 0.0  ;;  %v2708_v40 = vmax.f32 %v2644_v3, 0.0  ;;  %v1240_v63 = vsel %vm1176_vm8, %v3229_v58, 0.0  ;;  %v7263_v56 = vld [vmem:[#allocation18_spill] sm:$0xff] }
 0x234   :  { %v2591_v48 = vsel %vm2551_vm15, %v2526_v25, %v2309_v5  ;;  %v7260_v25 = vld [vmem:[#allocation21_spill] sm:$0xff]  ;;  %v876_v57 = vadd.f32 %v6259_v22, %v7263_v56  ;;  %v2457_v38 = vsel %vm2422_vm11, %v1240_v63, %v7265_v31  ;;  %v7275_v63 = vld [vmem:[#allocation164_spill] sm:$0xff] }
 0x235   :  { %v2655_v24 = vadd.f32 %v2591_v48, %v989_v51  ;;  %2773 = vst [vmem:[%s6635_s7 + $0xe8] sm:$0xff] %v2709_v23  ;;  %v981_v29 = vmax.f32 %v868_v60, 0.0  ;;  %v2518_v51 = vsel %vm287_vm9, %v2454_v10, %v7260_v25  ;;  %v7261_v48 = vld [vmem:[#allocation176_spill] sm:$0xff]  ;;  %v2521_v26 = vsel %vm287_vm9, %v2457_v38, %v7268_v37  ;;  %v7270_v25 = vld [vmem:[#allocation42_spill] sm:$0xff] }
 0x236   :  { %2772 = vst [vmem:[%s6635_s7 + $0xe0] sm:$0xff] %v2708_v40  ;;  %v903_v46 = vadd.f32 %v6259_v22, %v7261_v48  ;;  %v3230_v60 = vld [vmem:[%s6629_s6 + $0x130] sm:$0xff]  ;;  %v7267_v40 = vld [vmem:[#allocation149_spill] sm:$0xff]  ;;  %v984_v2 = vmax.f32 %v876_v57, 0.0  ;;  %v3235_v38 = vld [vmem:[%s6629_s6 + $0x140] sm:$0xff] }
 0x237   :  { %v2719_v19 = vmax.f32 %v2655_v24, 0.0  ;;  %v2293_v12 = vpop.permute.xlu0 %2292  ;;  %v7262_v24 = vld [vmem:[#allocation33_spill] sm:$0xff]  ;;  %vm1180_vm10 = vcmp.eq.s32.totalorder %v3230_v60, 0  ;;  %vm1182_vm14 = vcmp.eq.s32.totalorder %v3235_v38, 0 }
 0x238   :  { %v2583_v50 = vsel %vm2551_vm15, %v2518_v51, %v2293_v12  ;;  %v878_v27 = vadd.f32 %v6259_v22, %v7262_v24  ;;  %v995_v7 = vmax.f32 %v903_v46, 0.0  ;;  %v886_v51 = vadd.f32 %v6259_v22, %v7270_v25  ;;  %v7272_v48 = vld [vmem:[#allocation105_spill] sm:$0xff]  ;;  %v7281_v25 = vld [vmem:[#allocation140_spill] sm:$0xff] }
 0x239   :  { %2783 = vst [vmem:[%s6635_s7 + $0x138] sm:$0xff] %v2719_v19  ;;  %v2295_v42 = vpop.permute.xlu1 %2294  ;;  %v2647_v49 = vadd.f32 %v2583_v50, %v981_v29  ;;  %v7264_v19 = vld [vmem:[#allocation102_spill] sm:$0xff] }
 0x23a   :  { %v2584_v5 = vsel %vm2551_vm15, %v2519_v0, %v2295_v42  ;;  %v2458_v3 = vsel %vm2422_vm11, %v1241_v28, %v7264_v19  ;;  %v985_v23 = vmax.f32 %v878_v27, 0.0  ;;  %v3232_v42 = vld [vmem:[%s6628_s5 + $0x130] sm:$0xff]  ;;  %v7273_v28 = vld [vmem:[#allocation114_spill] sm:$0xff]  ;;  %v7274_v27 = vld [vmem:[#allocation127_spill] sm:$0xff]  ;;  %v988_v58 = vmax.f32 %v886_v51, 0.0 }
 0x23b   :  { %v2315_v45 = vpop.permute.xlu2 %2314  ;;  %v2648_v35 = vadd.f32 %v2584_v5, %v982_v53  ;;  %v2711_v33 = vmax.f32 %v2647_v49, 0.0  ;;  %v2522_v11 = vsel %vm287_vm9, %v2458_v3, %v7266_v39  ;;  %v7269_v53 = vld [vmem:[#allocation70_spill] sm:$0xff]  ;;  %v1244_v14 = vsel %vm1180_vm10, %v3232_v42, 0.0  ;;  %v3233_v5 = vld [vmem:[%s6628_s5 + $0x128] sm:$0xff]  ;;  %v7280_v42 = vld [vmem:[#allocation116_spill] sm:$0xff] }
 0x23c   :  { %v2594_v54 = vsel %vm2551_vm15, %v2529_v32, %v2315_v45  ;;  %v3231_v45 = vld [vmem:[%s6629_s6 + $0x128] sm:$0xff]  ;;  %v911_v59 = vadd.f32 %v6259_v22, %v7269_v53  ;;  %v2461_v46 = vsel %vm2422_vm11, %v1244_v14, %v7272_v48 }
 0x23d   :  { %v2658_v52 = vadd.f32 %v2594_v54, %v992_v18  ;;  %v2712_v17 = vmax.f32 %v2648_v35, 0.0  ;;  %2775 = vst [vmem:[%s6635_s7 + $0xf8] sm:$0xff] %v2711_v33  ;;  %vm1179_vm12 = vcmp.eq.s32.totalorder %v3231_v45, 0  ;;  %v883_v35 = vadd.f32 %v6259_v22, %v7271_v55  ;;  %v6428_v33 = vpop.f32.mrf.mxu3  ;;  %v7276_v19 = vld [vmem:[#allocation31_spill] sm:$0xff]  ;;  %v7278_v45 = vld [vmem:[#allocation76_spill] sm:$0xff] }
 0x23e   :  { %v1243_v12 = vsel %vm1179_vm12, %v3233_v5, 0.0  ;;  %v998_v49 = vmax.f32 %v911_v59, 0.0  ;;  %v3238_v59 = vld [vmem:[%s6629_s6 + $0x160] sm:$0xff]  ;;  %v7282_v5 = vld [vmem:[#allocation177_spill] sm:$0xff] }
 0x23f   :  { %v2722_v4 = vmax.f32 %v2658_v52, 0.0  ;;  %2776 = vst [vmem:[%s6635_s7 + $0x100] sm:$0xff] %v2712_v17  ;;  %v2460_v24 = vsel %vm2422_vm11, %v1243_v12, %v7273_v28  ;;  %v2525_v17 = vsel %vm287_vm9, %v2461_v46, %v7274_v27  ;;  %v987_v60 = vmax.f32 %v883_v35, 0.0  ;;  %v7283_v35 = vld [vmem:[#allocation52_spill] sm:$0xff] }
 0x240   :  { %v2299_v29 = vpop.permute.xlu0 %2298  ;;  %v2524_v3 = vsel %vm287_vm9, %v2460_v24, %v7276_v19  ;;  %vm1186_vm0 = vcmp.eq.s32.totalorder %v3238_v59, 0  ;;  %v7284_v19 = vld [vmem:[#allocation162_spill] sm:$0xff] }
 0x241   :  { %2786 = vst [vmem:[%s6635_s7 + $0x150] sm:$0xff] %v2722_v4  ;;  %v2301_v41 = vpop.permute.xlu1 %2300  ;;  %v2586_v10 = vsel %vm2551_vm15, %v2521_v26, %v2299_v29  ;;  %v3234_v4 = vld [vmem:[%s6629_s6 + $0x148] sm:$0xff]  ;;  %v7277_v26 = vld [vmem:[#allocation125_spill] sm:$0xff] }
 0x242   :  { %v2587_v18 = vsel %vm2551_vm15, %v2522_v11, %v2301_v41  ;;  %v2650_v54 = vadd.f32 %v2586_v10, %v984_v2  ;;  %vm1183_vm13 = vcmp.eq.s32.totalorder %v3234_v4, 0  ;;  %v918_v11 = vadd.f32 %v6259_v22, %v5904_v43  ;;  %v3236_v41 = vld [vmem:[%s6628_s5 + $0x148] sm:$0xff]  ;;  %v7279_v10 = vld [vmem:[#allocation108_spill] sm:$0xff] }
 0x243   :  { %v2321_v44 = vpop.permute.xlu2 %2320  ;;  %v2651_v20 = vadd.f32 %v2587_v18, %v985_v23  ;;  %v1247_v37 = vsel %vm1183_vm13, %v3236_v41, 0.0  ;;  %v893_v2 = vadd.f32 %v6259_v22, %v7277_v26  ;;  %v3237_v18 = vld [vmem:[%s6628_s5 + $0x140] sm:$0xff]  ;;  %v891_v43 = vadd.f32 %v6259_v22, %v7278_v45  ;;  %v7290_v45 = vld [vmem:[#allocation49_spill] sm:$0xff] }
 0x244   :  { %v2597_v9 = vsel %vm2551_vm15, %v7267_v40, %v2321_v44  ;;  %v2714_v50 = vmax.f32 %v2650_v54, 0.0  ;;  %v1246_v29 = vsel %vm1182_vm14, %v3237_v18, 0.0  ;;  %v2464_v53 = vsel %vm2422_vm11, %v1247_v37, %v7279_v10  ;;  %v7288_v37 = vld [vmem:[#allocation150_spill] sm:$0xff] }
 0x245   :  { %v2661_v32 = vadd.f32 %v2597_v9, %v995_v7  ;;  %v2715_v52 = vmax.f32 %v2651_v20, 0.0  ;;  %v2463_v14 = vsel %vm2422_vm11, %v1246_v29, %v7280_v42  ;;  %v2528_v51 = vsel %vm287_vm9, %v2464_v53, %v7281_v25  ;;  %v6477_v27 = vpop.f32.mrf.mxu3 }
 0x246   :  { %2778 = vst [vmem:[%s6635_s7 + $0x110] sm:$0xff] %v2714_v50  ;;  %v2527_v50 = vsel %vm287_vm9, %v2463_v14, %v7283_v35  ;;  %v990_v48 = vmax.f32 %v891_v43, 0.0  ;;  %v933_v42 = vadd.f32 %v6259_v22, %v6263_v16 }
 0x247   :  { %v2725_v0 = vmax.f32 %v2661_v32, 0.0  ;;  %2779 = vst [vmem:[%s6635_s7 + $0x118] sm:$0xff] %v2715_v52  ;;  %v991_v52 = vmax.f32 %v893_v2, 0.0 }
 0x248   :  { %v1007_v16 = vmax.f32 %v933_v42, 0.0 }
 0x249   :  { %2789 = vst [vmem:[%s6635_s7 + $0x168] sm:$0xff] %v2725_v0  ;;  %v2307_v57 = vpop.permute.xlu1 %2306  ;;  %v2305_v31 = vpop.permute.xlu0 %2304  ;;  %v1001_v0 = vmax.f32 %v918_v11, 0.0 }
 0x24a   :  { %v2590_v44 = vsel %vm2551_vm15, %v2525_v17, %v2307_v57  ;;  %v2589_v39 = vsel %vm2551_vm15, %v2524_v3, %v2305_v31  ;;  %v926_v17 = vadd.f32 %v6259_v22, %v6082_v15  ;;  %v901_v3 = vadd.f32 %v6259_v22, %v7284_v19  ;;  %v7285_v31 = vld [vmem:[#allocation147_spill] sm:$0xff]  ;;  %v7295_v19 = vld [vmem:[#allocation82_spill] sm:$0xff] }
 0x24b   :  { %v2327_v1 = vpop.permute.xlu2 %2326  ;;  %v2654_v23 = vadd.f32 %v2590_v44, %v988_v58  ;;  %v2653_v9 = vadd.f32 %v2589_v39, %v987_v60  ;;  %v898_v15 = vadd.f32 %v6259_v22, %v7285_v31 }
 0x24c   :  { %v2600_v56 = vsel %vm2551_vm15, %v7275_v63, %v2327_v1  ;;  %v3239_v1 = vld [vmem:[%s6629_s6 + $0x158] sm:$0xff]  ;;  %v1004_v11 = vmax.f32 %v926_v17, 0.0  ;;  %v994_v2 = vmax.f32 %v901_v3, 0.0 }
 0x24d   :  { %v2664_v7 = vadd.f32 %v2600_v56, %v998_v49  ;;  %v2718_v32 = vmax.f32 %v2654_v23, 0.0  ;;  %v2717_v20 = vmax.f32 %v2653_v9, 0.0  ;;  %vm1185_vm1 = vcmp.eq.s32.totalorder %v3239_v1, 0  ;;  %v3240_v56 = vld [vmem:[%s6628_s5 + $0x160] sm:$0xff]  ;;  %v7286_v23 = vld [vmem:[#allocation111_spill] sm:$0xff] }
 0x24e   :  { %v1250_v57 = vsel %vm1186_vm0, %v3240_v56, 0.0  ;;  %v7287_v9 = vld [vmem:[#allocation118_spill] sm:$0xff] }
 0x24f   :  { %v2728_v40 = vmax.f32 %v2664_v7, 0.0  ;;  %2782 = vst [vmem:[%s6635_s7 + $0x130] sm:$0xff] %v2718_v32  ;;  %v3241_v7 = vld [vmem:[%s6628_s5 + $0x158] sm:$0xff]  ;;  %v2467_v39 = vsel %vm2422_vm11, %v1250_v57, %v7286_v23  ;;  %v7289_v32 = vld [vmem:[#allocation179_spill] sm:$0xff] }
 0x250   :  { %2781 = vst [vmem:[%s6635_s7 + $0x128] sm:$0xff] %v2717_v20  ;;  %v1249_v44 = vsel %vm1185_vm1, %v3241_v7, 0.0  ;;  %v2531_v26 = vsel %vm287_vm9, %v2467_v39, %v7288_v37  ;;  %v993_v20 = vmax.f32 %v898_v15, 0.0  ;;  %v913_v15 = vadd.f32 %v6259_v22, %v5778_v13  ;;  %v7297_v37 = vld [vmem:[#allocation178_spill] sm:$0xff] }
 0x251   :  { %2792 = vst [vmem:[%s6635_s7 + $0x180] sm:$0xff] %v2728_v40  ;;  %v2313_v55 = vpop.permute.xlu1 %2312  ;;  %v2311_v49 = vpop.permute.xlu0 %2310  ;;  %v2466_v41 = vsel %vm2422_vm11, %v1249_v44, %v7287_v9  ;;  %v916_v44 = vadd.f32 %v6259_v22, %v5850_v36 }
 0x252   :  { %v2593_v4 = vsel %vm2551_vm15, %v2528_v51, %v2313_v55  ;;  %v2592_v24 = vsel %vm2551_vm15, %v2527_v50, %v2311_v49  ;;  %v2530_v43 = vsel %vm287_vm9, %v2466_v41, %v7290_v45  ;;  %v7291_v51 = vld [vmem:[#allocation59_spill] sm:$0xff]  ;;  %v999_v9 = vmax.f32 %v913_v15, 0.0 }
 0x253   :  { %v2333_v54 = vpop.permute.xlu2 %2332  ;;  %v2657_v28 = vadd.f32 %v2593_v4, %v991_v52  ;;  %v2656_v63 = vadd.f32 %v2592_v24, %v990_v48  ;;  %v908_v52 = vadd.f32 %v6259_v22, %v7291_v51  ;;  %v7292_v55 = vld [vmem:[#allocation51_spill] sm:$0xff]  ;;  %v7293_v4 = vld [vmem:[#allocation182_spill] sm:$0xff]  ;;  %v941_v24 = vadd.f32 %v6259_v22, %v6428_v33 }
 0x254   :  { %v2603_v12 = vsel %vm2551_vm15, %v7282_v5, %v2333_v54  ;;  %v906_v35 = vadd.f32 %v6259_v22, %v7292_v55  ;;  %v1000_v39 = vmax.f32 %v916_v44, 0.0 }
 0x255   :  { %v2667_v46 = vadd.f32 %v2603_v12, %v1001_v0  ;;  %v2721_v60 = vmax.f32 %v2657_v28, 0.0  ;;  %v2720_v38 = vmax.f32 %v2656_v63, 0.0  ;;  %v6517_v12 = vpop.f32.mrf.mxu3 }
 0x256   :  { %v996_v28 = vmax.f32 %v906_v35, 0.0 }
 0x257   :  { %v2731_v58 = vmax.f32 %v2667_v46, 0.0  ;;  %2785 = vst [vmem:[%s6635_s7 + $0x148] sm:$0xff] %v2721_v60  ;;  %v997_v46 = vmax.f32 %v908_v52, 0.0  ;;  %v7299_v52 = vld [vmem:[#allocation180_spill] sm:$0xff] }
 0x258   :  { %2784 = vst [vmem:[%s6635_s7 + $0x140] sm:$0xff] %v2720_v38  ;;  %v1010_v38 = vmax.f32 %v941_v24, 0.0 }
 0x259   :  { %2795 = vst [vmem:[%s6635_s7 + $0x198] sm:$0xff] %v2731_v58  ;;  %v2319_v29 = vpop.permute.xlu1 %2318  ;;  %v2317_v59 = vpop.permute.xlu0 %2316  ;;  %v7294_v58 = vld [vmem:[#allocation167_spill] sm:$0xff] }
 0x25a   :  { %v2596_v53 = vsel %vm2551_vm15, %v2531_v26, %v2319_v29  ;;  %v2595_v54 = vsel %vm2551_vm15, %v2530_v43, %v2317_v59  ;;  %v7298_v29 = vld [vmem:[#allocation122_spill] sm:$0xff]  ;;  %v921_v59 = vadd.f32 %v6259_v22, %v5959_v21 }
 0x25b   :  { %v2339_v40 = vpop.permute.xlu2 %2338  ;;  %v2660_v0 = vadd.f32 %v2596_v53, %v994_v2  ;;  %v2659_v25 = vadd.f32 %v2595_v54, %v993_v20 }
 0x25c   :  { %v2606_v18 = vsel %vm2551_vm15, %v7289_v32, %v2339_v40 }
 0x25d   :  { %v2670_v10 = vadd.f32 %v2606_v18, %v1004_v11  ;;  %v2724_v5 = vmax.f32 %v2660_v0, 0.0  ;;  %v2723_v50 = vmax.f32 %v2659_v25, 0.0  ;;  %v947_v23 = vpop.f32.mrf.mxu3  ;;  %v7296_v11 = vld [vmem:[#allocation185_spill] sm:$0xff]  ;;  %v1002_v25 = vmax.f32 %v921_v59, 0.0 }
 0x25e   :  { %v948_v32 = vadd.f32 %v6259_v22, %v947_v23 }
 0x25f   :  { %v2734_v14 = vmax.f32 %v2670_v10, 0.0  ;;  %2788 = vst [vmem:[%s6635_s7 + $0x160] sm:$0xff] %v2724_v5  ;;  %v923_v10 = vadd.f32 %v6259_v22, %v6020_v62 }
 0x260   :  { %2787 = vst [vmem:[%s6635_s7 + $0x158] sm:$0xff] %v2723_v50  ;;  %v1013_v54 = vmax.f32 %v948_v32, 0.0  ;;  %v7300_v50 = vld [vmem:[#allocation135_spill] sm:$0xff] }
 0x261   :  { %2798 = vst [vmem:[%s6635_s7 + $0x1b0] sm:$0xff] %v2734_v14  ;;  %v2325_v1 = vpop.permute.xlu1 %2324  ;;  %v2323_v56 = vpop.permute.xlu0 %2322  ;;  %v1003_v62 = vmax.f32 %v923_v10, 0.0 }
 0x262   :  { %v2599_v63 = vsel %vm2551_vm15, %v7294_v58, %v2325_v1  ;;  %v2598_v3 = vsel %vm2551_vm15, %v7295_v19, %v2323_v56  ;;  %v7302_v56 = vld [vmem:[#allocation145_spill] sm:$0xff] }
 0x263   :  { %v2345_v48 = vpop.permute.xlu2 %2344  ;;  %v2663_v57 = vadd.f32 %v2599_v63, %v997_v46  ;;  %v2662_v7 = vadd.f32 %v2598_v3, %v996_v28  ;;  %v938_v3 = vadd.f32 %v6259_v22, %v6372_v30 }
 0x264   :  { %v2609_v49 = vsel %vm2551_vm15, %v7293_v4, %v2345_v48  ;;  %v931_v4 = vadd.f32 %v6259_v22, %v6200_v61 }
 0x265   :  { %v2673_v17 = vadd.f32 %v2609_v49, %v1007_v16  ;;  %v2727_v31 = vmax.f32 %v2663_v57, 0.0  ;;  %v2726_v33 = vmax.f32 %v2662_v7, 0.0  ;;  %v936_v7 = vadd.f32 %v6259_v22, %v6319_v47 }
 0x266   :  { %v1006_v28 = vmax.f32 %v931_v4, 0.0 }
 0x267   :  { %v2737_v60 = vmax.f32 %v2673_v17, 0.0  ;;  %2791 = vst [vmem:[%s6635_s7 + $0x178] sm:$0xff] %v2727_v31  ;;  %v7301_v17 = vld [vmem:[#allocation183_spill] sm:$0xff]  ;;  %v1009_v31 = vmax.f32 %v938_v3, 0.0 }
 0x268   :  { %2790 = vst [vmem:[%s6635_s7 + $0x170] sm:$0xff] %v2726_v33  ;;  %v7303_v33 = vld [vmem:[#allocation186_spill] sm:$0xff] }
 0x269   :  { %2801 = vst [vmem:[%s6635_s7 + $0x1c8] sm:$0xff] %v2737_v60  ;;  %v2331_v40 = vpop.permute.xlu1 %2330  ;;  %v2329_v2 = vpop.permute.xlu0 %2328 }
 0x26a   :  { %v2602_v26 = vsel %vm2551_vm15, %v7297_v37, %v2331_v40  ;;  %v2601_v45 = vsel %vm2551_vm15, %v7298_v29, %v2329_v2  ;;  %v7305_v29 = vld [vmem:[#allocation175_spill] sm:$0xff] }
 0x26b   :  { %v2351_v36 = vpop.permute.xlu2 %2350  ;;  %v2666_v18 = vadd.f32 %v2602_v26, %v1000_v39  ;;  %v2665_v20 = vadd.f32 %v2601_v45, %v999_v9  ;;  %v7304_v39 = vld [vmem:[#allocation160_spill] sm:$0xff]  ;;  %v943_v9 = vadd.f32 %v6259_v22, %v6477_v27 }
 0x26c   :  { %v2612_v13 = vsel %vm2551_vm15, %v7296_v11, %v2351_v36 }
 0x26d   :  { %v2676_v41 = vadd.f32 %v2612_v13, %v1010_v38  ;;  %v2730_v53 = vmax.f32 %v2666_v18, 0.0  ;;  %v2729_v0 = vmax.f32 %v2665_v20, 0.0  ;;  %v1008_v38 = vmax.f32 %v936_v7, 0.0 }
 0x26e   :  { %v946_v13 = vadd.f32 %v6259_v22, %v6517_v12  ;;  %v1011_v2 = vmax.f32 %v943_v9, 0.0 }
 0x26f   :  { %v2740_v43 = vmax.f32 %v2676_v41, 0.0  ;;  %2794 = vst [vmem:[%s6635_s7 + $0x190] sm:$0xff] %v2730_v53 }
 0x270   :  { %2793 = vst [vmem:[%s6635_s7 + $0x188] sm:$0xff] %v2729_v0  ;;  %v1012_v37 = vmax.f32 %v946_v13, 0.0 }
 0x271   :  { %2804 = vst [vmem:[%s6635_s7 + $0x1e0] sm:$0xff] %v2740_v43  ;;  %v2337_v21 = vpop.permute.xlu1 %2336  ;;  %v2335_v55 = vpop.permute.xlu0 %2334 }
 0x272   :  { %v2605_v5 = vsel %vm2551_vm15, %v7299_v52, %v2337_v21  ;;  %v2604_v16 = vsel %vm2551_vm15, %v7300_v50, %v2335_v55 }
 0x273   :  { %v2357_v42 = vpop.permute.xlu2 %2356  ;;  %v2669_v35 = vadd.f32 %v2605_v5, %v1003_v62  ;;  %v2668_v46 = vadd.f32 %v2604_v16, %v1002_v25 }
 0x274   :  { %v2615_v14 = vsel %vm2551_vm15, %v5783_v34, %v2357_v42  ;;  %v928_v34 = vadd.f32 %v6259_v22, %v6136_v6 }
 0x275   :  { %v2679_v51 = vadd.f32 %v2615_v14, %v1013_v54  ;;  %v2733_v49 = vmax.f32 %v2669_v35, 0.0  ;;  %v2732_v1 = vmax.f32 %v2668_v46, 0.0 }
 0x276   :  { %v1005_v61 = vmax.f32 %v928_v34, 0.0 }
 0x277   :  { %v2743_v48 = vmax.f32 %v2679_v51, 0.0  ;;  %2797 = vst [vmem:[%s6635_s7 + $0x1a8] sm:$0xff] %v2733_v49 }
 0x278   :  { %2796 = vst [vmem:[%s6635_s7 + $0x1a0] sm:$0xff] %v2732_v1 }
 0x279   :  { %2807 = vst [vmem:[%s6635_s7 + $0x1f8] sm:$0xff] %v2743_v48  ;;  %v2343_v24 = vpop.permute.xlu1 %2342  ;;  %v2341_v6 = vpop.permute.xlu0 %2340 }
 0x27a   :  { %v2608_v58 = vsel %vm2551_vm15, %v7301_v17, %v2343_v24  ;;  %v2607_v57 = vsel %vm2551_vm15, %v7302_v56, %v2341_v6 }
 0x27b   :  { %v2672_v63 = vadd.f32 %v2608_v58, %v1006_v28  ;;  %v2671_v19 = vadd.f32 %v2607_v57, %v1005_v61 }
 0x27d   :  { %v2736_v60 = vmax.f32 %v2672_v63, 0.0  ;;  %v2735_v44 = vmax.f32 %v2671_v19, 0.0 }
 0x27f   :  { %2800 = vst [vmem:[%s6635_s7 + $0x1c0] sm:$0xff] %v2736_v60 }
 0x280   :  { %2799 = vst [vmem:[%s6635_s7 + $0x1b8] sm:$0xff] %v2735_v44 }
 0x281   :  { %v2349_v15 = vpop.permute.xlu1 %2348  ;;  %v2347_v30 = vpop.permute.xlu0 %2346 }
 0x282   :  { %v2611_v23 = vsel %vm2551_vm15, %v7303_v33, %v2349_v15  ;;  %v2610_v47 = vsel %vm2551_vm15, %v7304_v39, %v2347_v30 }
 0x283   :  { %v2675_v36 = vadd.f32 %v2611_v23, %v1009_v31  ;;  %v2674_v11 = vadd.f32 %v2610_v47, %v1008_v38 }
 0x285   :  { %v2739_v40 = vmax.f32 %v2675_v36, 0.0  ;;  %v2738_v41 = vmax.f32 %v2674_v11, 0.0 }
 0x287   :  { %2803 = vst [vmem:[%s6635_s7 + $0x1d8] sm:$0xff] %v2739_v40 }
 0x288   :  { %2802 = vst [vmem:[%s6635_s7 + $0x1d0] sm:$0xff] %v2738_v41 }
 0x289   :  { %v2355_v26 = vpop.permute.xlu1 %2354  ;;  %v2353_v12 = vpop.permute.xlu0 %2352 }
 0x28a   :  { %v2614_v32 = vsel %vm2551_vm15, %v5795_v8, %v2355_v26  ;;  %v2613_v22 = vsel %vm2551_vm15, %v7305_v29, %v2353_v12 }
 0x28b   :  { %v2678_v18 = vadd.f32 %v2614_v32, %v1012_v37  ;;  %v2677_v27 = vadd.f32 %v2613_v22, %v1011_v2 }
 0x28d   :  { %v2742_v45 = vmax.f32 %v2678_v18, 0.0  ;;  %v2741_v43 = vmax.f32 %v2677_v27, 0.0 }
 0x28f   :  { %2806 = vst [vmem:[%s6635_s7 + $0x1f0] sm:$0xff] %v2742_v45 }
 0x290   :  { %2805 = vst [vmem:[%s6635_s7 + $0x1e8] sm:$0xff] %v2741_v43 }

</bundles_post_ra>
